<compile_context>
chip_gen: v5e
topology: v5e:2x2
jax: 0.10.0
libtpu: 0.0.40
codegen_flags: <defaults>
</compile_context>

<pallas_src>
import functools

import jax
import jax.numpy as jnp
from jax import lax
from jax.experimental import pallas as pl
from jax.experimental.pallas import tpu as pltpu


# ----------------------------------------------------------------------------
# Fused GRUNet kernel: all layers + FC, single invocation, VMEM-resident.
#
# Ref layout (positional):
#   refs[0]                      : x2d      (T*B, input_size)   time-major rows
#   refs[1 + 4*l .. 4 + 4*l]     : per layer l:
#        wih  (3, in_l, H)   gate-separated, already transposed
#        whh  (3, H,   H)    gate-separated, already transposed
#        bi   (3, 1,   H)    [b_ir+b_hr, b_iz+b_hz, b_in]
#        bhn  (1, H)         b_hn
#   refs[1 + 4*L]                : fc_w^T   (H, O)
#   refs[2 + 4*L]                : fc_b     (1, O)
#   refs[3 + 4*L]                : out      (B, O)                (output)
#   refs[4 + 4*L ..]             : gi_r, gi_z, gi_n, seq  (T*B, H) VMEM scratch
# ----------------------------------------------------------------------------
def _grunet_kernel(*refs, num_layers, seq_len, batch, hidden):
    T, B, H = seq_len, batch, hidden

    x_ref = refs[0]
    fcw_ref = refs[1 + 4 * num_layers]
    fcb_ref = refs[2 + 4 * num_layers]
    out_ref = refs[3 + 4 * num_layers]
    gi_r_ref, gi_z_ref, gi_n_ref, seq_ref = refs[4 + 4 * num_layers:]

    h = jnp.zeros((B, H), jnp.float32)

    for layer in range(num_layers):
        wih_ref, whh_ref, bi_ref, bhn_ref = refs[1 + 4 * layer: 5 + 4 * layer]

        # ---- batched input projection for ALL timesteps (off the serial path)
        xin = x_ref[...] if layer == 0 else seq_ref[...]        # (T*B, in_l)
        gi_r_ref[...] = (jnp.dot(xin, wih_ref[0],
                                 preferred_element_type=jnp.float32)
                         + bi_ref[0])
        gi_z_ref[...] = (jnp.dot(xin, wih_ref[1],
                                 preferred_element_type=jnp.float32)
                         + bi_ref[1])
        gi_n_ref[...] = (jnp.dot(xin, wih_ref[2],
                                 preferred_element_type=jnp.float32)
                         + bi_ref[2])

        # Hoist recurrent weights / bias out of the time loop.
        whh_r = whh_ref[0]                                      # (H, H)
        whh_z = whh_ref[1]
        whh_n = whh_ref[2]
        b_hn = bhn_ref[...]                                     # (1, H)

        h = jnp.zeros((B, H), jnp.float32)                      # h0 = 0

        # ---- serial recurrence: only the small hidden-state matmuls per step.
        for t in range(T):                                      # static unroll
            rows = pl.ds(t * B, B)
            gh_r = jnp.dot(h, whh_r, preferred_element_type=jnp.float32)
            gh_z = jnp.dot(h, whh_z, preferred_element_type=jnp.float32)
            gh_n = jnp.dot(h, whh_n, preferred_element_type=jnp.float32)

            r = jax.nn.sigmoid(gi_r_ref[rows, :] + gh_r)
            z = jax.nn.sigmoid(gi_z_ref[rows, :] + gh_z)
            n = jnp.tanh(gi_n_ref[rows, :] + r * (gh_n + b_hn))
            h = (1.0 - z) * n + z * h

            if layer < num_layers - 1:                          # feed next layer
                seq_ref[rows, :] = h

    # ---- final Linear on the last hidden state (out[:, -1, :] @ W^T + b).
    out_ref[...] = (jnp.dot(h, fcw_ref[...],
                            preferred_element_type=jnp.float32)
                    + fcb_ref[...]).astype(out_ref.dtype)


# ----------------------------------------------------------------------------
# Parameter preprocessing: gate-separated, transposed weights + folded biases.
# ----------------------------------------------------------------------------
def _prep_gru_layer(w_ih, w_hh, b_ih, b_hh):
    H = w_hh.shape[1]
    wih = jnp.stack([jnp.transpose(w_ih[g * H:(g + 1) * H, :]) for g in range(3)])
    whh = jnp.stack([jnp.transpose(w_hh[g * H:(g + 1) * H, :]) for g in range(3)])
    b_r = (b_ih[0:H] + b_hh[0:H]).reshape(1, H)
    b_z = (b_ih[H:2 * H] + b_hh[H:2 * H]).reshape(1, H)
    b_n = b_ih[2 * H:3 * H].reshape(1, H)
    bi = jnp.stack([b_r, b_z, b_n])                 # (3, 1, H)
    bhn = b_hh[2 * H:3 * H].reshape(1, H)           # (1, H)
    return wih, whh, bi, bhn


# ----------------------------------------------------------------------------
# Full GRUNet forward (single fused pallas_call).
# ----------------------------------------------------------------------------
def gru_net_forward(x, params):
    """x: (B, T, input_size) batch-first (like PyTorch).  Returns (B, output_size)."""
    B, T, I = x.shape
    L = len(params["gru_layers"])
    H = params["gru_layers"][0][1].shape[1]
    O = params["fc_w"].shape[0]

    # Time-major flattened rows: row index = t*B + b.
    x2d = jnp.transpose(x, (1, 0, 2)).reshape(T * B, I)

    args = [x2d]
    for layer_params in params["gru_layers"]:
        args.extend(_prep_gru_layer(*layer_params))
    args.append(jnp.transpose(params["fc_w"]))       # (H, O)
    args.append(params["fc_b"].reshape(1, O))        # (1, O)

    kernel = functools.partial(
        _grunet_kernel, num_layers=L, seq_len=T, batch=B, hidden=H)

    vmem_spec = pl.BlockSpec(memory_space=pltpu.MemorySpace.VMEM)

    return pl.pallas_call(
        kernel,
        out_shape=jax.ShapeDtypeStruct((B, O), jnp.float32),
        in_specs=[pl.BlockSpec(memory_space=pltpu.MemorySpace.VMEM)
                  for _ in range(len(args))],
        out_specs=vmem_spec,
        scratch_shapes=[pltpu.VMEM((T * B, H), jnp.float32) for _ in range(4)],
    )(*args)


# ----------------------------------------------------------------------------
# Pure-JAX reference (same math, lax.scan) for a correctness sanity check.
# ----------------------------------------------------------------------------
def gru_net_reference(x, params):
    h_seq = jnp.transpose(x, (1, 0, 2))
    for (w_ih, w_hh, b_ih, b_hh) in params["gru_layers"]:
        B = h_seq.shape[1]
        H = w_hh.shape[0] // 3

        def step(h, x_t):
            gi = x_t @ w_ih.T + b_ih
            gh = h @ w_hh.T + b_hh
            i_r, i_z, i_n = gi[:, :H], gi[:, H:2 * H], gi[:, 2 * H:]
            h_r, h_z, h_n = gh[:, :H], gh[:, H:2 * H], gh[:, 2 * H:]
            r = jax.nn.sigmoid(i_r + h_r)
            z = jax.nn.sigmoid(i_z + h_z)
            n = jnp.tanh(i_n + r * h_n)
            h_new = (1.0 - z) * n + z * h
            return h_new, h_new

        h0 = jnp.zeros((B, H), jnp.float32)
        _, h_seq = lax.scan(step, h0, h_seq)
    last = h_seq[-1]
    return last @ params["fc_w"].T + params["fc_b"]


# ----------------------------------------------------------------------------
# Deterministic parameter init (shapes follow nn.GRU / nn.Linear).
# ----------------------------------------------------------------------------
def init_params(key, input_size, hidden_size, num_layers, output_size):
    params = {"gru_layers": []}
    scale = 1.0 / jnp.sqrt(hidden_size)
    for layer in range(num_layers):
        in_sz = input_size if layer == 0 else hidden_size
        key, k1, k2, k3, k4 = jax.random.split(key, 5)
        w_ih = jax.random.uniform(k1, (3 * hidden_size, in_sz),
                                  jnp.float32, -scale, scale)
        w_hh = jax.random.uniform(k2, (3 * hidden_size, hidden_size),
                                  jnp.float32, -scale, scale)
        b_ih = jax.random.uniform(k3, (3 * hidden_size,), jnp.float32, -scale, scale)
        b_hh = jax.random.uniform(k4, (3 * hidden_size,), jnp.float32, -scale, scale)
        params["gru_layers"].append((w_ih, w_hh, b_ih, b_hh))
    key, k5, k6 = jax.random.split(key, 3)
    fc_scale = 1.0 / jnp.sqrt(hidden_size)
    params["fc_w"] = jax.random.uniform(k5, (output_size, hidden_size),
                                        jnp.float32, -fc_scale, fc_scale)
    params["fc_b"] = jax.random.uniform(k6, (output_size,), jnp.float32,
                                        -fc_scale, fc_scale)
    return params


if __name__ == "__main__":
    # Small shapes consistent with the module's forward.
    batch, seq = 2, 8
    input_size, hidden_size, num_layers, output_size = 8, 32, 2, 4

    key = jax.random.PRNGKey(0)
    key, kx = jax.random.split(key)
    x = jax.random.normal(kx, (batch, seq, input_size), jnp.float32)

    params = init_params(key, input_size, hidden_size, num_layers, output_size)

    out = gru_net_forward(x, params)
    out = jax.block_until_ready(out)

    ref = gru_net_reference(x, params)
    assert out.shape == (batch, output_size)
    assert jnp.allclose(out, ref, rtol=1e-4, atol=1e-4), "mismatch vs reference"

    print("KERNEL_OK")
</pallas_src>

<mosaic_0001>
module attributes {stable_mosaic.version = 11 : i64} {
  func.func @_grunet_kernel(%arg0: memref<16x8xf32, #tpu.memory_space<vmem>>, %arg1: memref<3x8x32xf32, #tpu.memory_space<vmem>>, %arg2: memref<3x32x32xf32, #tpu.memory_space<vmem>>, %arg3: memref<3x1x32xf32, #tpu.memory_space<vmem>>, %arg4: memref<1x32xf32, #tpu.memory_space<vmem>>, %arg5: memref<3x32x32xf32, #tpu.memory_space<vmem>>, %arg6: memref<3x32x32xf32, #tpu.memory_space<vmem>>, %arg7: memref<3x1x32xf32, #tpu.memory_space<vmem>>, %arg8: memref<1x32xf32, #tpu.memory_space<vmem>>, %arg9: memref<32x4xf32, #tpu.memory_space<vmem>>, %arg10: memref<1x4xf32, #tpu.memory_space<vmem>>, %arg11: memref<2x4xf32, #tpu.memory_space<vmem>>, %arg12: memref<16x32xf32, #tpu.memory_space<vmem>>, %arg13: memref<16x32xf32, #tpu.memory_space<vmem>>, %arg14: memref<16x32xf32, #tpu.memory_space<vmem>>, %arg15: memref<16x32xf32, #tpu.memory_space<vmem>>) attributes {dimension_semantics = [], scalar_prefetch = 0 : i64, scratch_operands = 4 : i64, tpu.core_type = #tpu.core_type<tc>} {
    %c0 = arith.constant 0 : index
    %c0_0 = arith.constant 0 : index
    %0 = vector.load %arg0[%c0, %c0_0] : memref<16x8xf32, #tpu.memory_space<vmem>>, vector<16x8xf32>
    %c0_1 = arith.constant 0 : index
    %c0_2 = arith.constant 0 : index
    %c0_3 = arith.constant 0 : index
    %1 = vector.load %arg1[%c0_1, %c0_2, %c0_3] : memref<3x8x32xf32, #tpu.memory_space<vmem>>, vector<1x8x32xf32>
    %2 = vector.shape_cast %1 : vector<1x8x32xf32> to vector<8x32xf32>
    %cst = arith.constant dense<0.000000e+00> : vector<16x32xf32>
    %3 = tpu.matmul %0, %2, %cst {dimension_numbers = #tpu.dot_dimension_numbers<[1], [0], [0], [1], [0, 0, 1, 1], [], []>} : vector<16x8xf32>, vector<8x32xf32>, vector<16x32xf32> -> vector<16x32xf32>
    %c0_4 = arith.constant 0 : index
    %c0_5 = arith.constant 0 : index
    %c0_6 = arith.constant 0 : index
    %4 = vector.load %arg3[%c0_4, %c0_5, %c0_6] : memref<3x1x32xf32, #tpu.memory_space<vmem>>, vector<1x1x32xf32>
    %5 = vector.shape_cast %4 : vector<1x1x32xf32> to vector<1x32xf32>
    %6 = vector.broadcast %5 : vector<1x32xf32> to vector<16x32xf32>
    %7 = arith.addf %3, %6 : vector<16x32xf32>
    %c0_7 = arith.constant 0 : index
    %c0_8 = arith.constant 0 : index
    %8 = vector.load %arg12[%c0_7, %c0_8] : memref<16x32xf32, #tpu.memory_space<vmem>>, vector<16x32xf32>
    tpu.vector_store %arg12[%c0_7, %c0_8], %7 {strides = array<i32>} : memref<16x32xf32, #tpu.memory_space<vmem>>, vector<16x32xf32>,
    %c1 = arith.constant 1 : index
    %c0_9 = arith.constant 0 : index
    %c0_10 = arith.constant 0 : index
    %9 = vector.load %arg1[%c1, %c0_9, %c0_10] : memref<3x8x32xf32, #tpu.memory_space<vmem>>, vector<1x8x32xf32>
    %10 = vector.shape_cast %9 : vector<1x8x32xf32> to vector<8x32xf32>
    %cst_11 = arith.constant dense<0.000000e+00> : vector<16x32xf32>
    %11 = tpu.matmul %0, %10, %cst_11 {dimension_numbers = #tpu.dot_dimension_numbers<[1], [0], [0], [1], [0, 0, 1, 1], [], []>} : vector<16x8xf32>, vector<8x32xf32>, vector<16x32xf32> -> vector<16x32xf32>
    %c1_12 = arith.constant 1 : index
    %c0_13 = arith.constant 0 : index
    %c0_14 = arith.constant 0 : index
    %12 = vector.load %arg3[%c1_12, %c0_13, %c0_14] : memref<3x1x32xf32, #tpu.memory_space<vmem>>, vector<1x1x32xf32>
    %13 = vector.shape_cast %12 : vector<1x1x32xf32> to vector<1x32xf32>
    %14 = vector.broadcast %13 : vector<1x32xf32> to vector<16x32xf32>
    %15 = arith.addf %11, %14 : vector<16x32xf32>
    %c0_15 = arith.constant 0 : index
    %c0_16 = arith.constant 0 : index
    %16 = vector.load %arg13[%c0_15, %c0_16] : memref<16x32xf32, #tpu.memory_space<vmem>>, vector<16x32xf32>
    tpu.vector_store %arg13[%c0_15, %c0_16], %15 {strides = array<i32>} : memref<16x32xf32, #tpu.memory_space<vmem>>, vector<16x32xf32>,
    %c2 = arith.constant 2 : index
    %c0_17 = arith.constant 0 : index
    %c0_18 = arith.constant 0 : index
    %17 = vector.load %arg1[%c2, %c0_17, %c0_18] : memref<3x8x32xf32, #tpu.memory_space<vmem>>, vector<1x8x32xf32>
    %18 = vector.shape_cast %17 : vector<1x8x32xf32> to vector<8x32xf32>
    %cst_19 = arith.constant dense<0.000000e+00> : vector<16x32xf32>
    %19 = tpu.matmul %0, %18, %cst_19 {dimension_numbers = #tpu.dot_dimension_numbers<[1], [0], [0], [1], [0, 0, 1, 1], [], []>} : vector<16x8xf32>, vector<8x32xf32>, vector<16x32xf32> -> vector<16x32xf32>
    %c2_20 = arith.constant 2 : index
    %c0_21 = arith.constant 0 : index
    %c0_22 = arith.constant 0 : index
    %20 = vector.load %arg3[%c2_20, %c0_21, %c0_22] : memref<3x1x32xf32, #tpu.memory_space<vmem>>, vector<1x1x32xf32>
    %21 = vector.shape_cast %20 : vector<1x1x32xf32> to vector<1x32xf32>
    %22 = vector.broadcast %21 : vector<1x32xf32> to vector<16x32xf32>
    %23 = arith.addf %19, %22 : vector<16x32xf32>
    %c0_23 = arith.constant 0 : index
    %c0_24 = arith.constant 0 : index
    %24 = vector.load %arg14[%c0_23, %c0_24] : memref<16x32xf32, #tpu.memory_space<vmem>>, vector<16x32xf32>
    tpu.vector_store %arg14[%c0_23, %c0_24], %23 {strides = array<i32>} : memref<16x32xf32, #tpu.memory_space<vmem>>, vector<16x32xf32>,
    %c0_25 = arith.constant 0 : index
    %c0_26 = arith.constant 0 : index
    %c0_27 = arith.constant 0 : index
    %25 = vector.load %arg2[%c0_25, %c0_26, %c0_27] : memref<3x32x32xf32, #tpu.memory_space<vmem>>, vector<1x32x32xf32>
    %26 = vector.shape_cast %25 : vector<1x32x32xf32> to vector<32x32xf32>
    %c1_28 = arith.constant 1 : index
    %c0_29 = arith.constant 0 : index
    %c0_30 = arith.constant 0 : index
    %27 = vector.load %arg2[%c1_28, %c0_29, %c0_30] : memref<3x32x32xf32, #tpu.memory_space<vmem>>, vector<1x32x32xf32>
    %28 = vector.shape_cast %27 : vector<1x32x32xf32> to vector<32x32xf32>
    %c2_31 = arith.constant 2 : index
    %c0_32 = arith.constant 0 : index
    %c0_33 = arith.constant 0 : index
    %29 = vector.load %arg2[%c2_31, %c0_32, %c0_33] : memref<3x32x32xf32, #tpu.memory_space<vmem>>, vector<1x32x32xf32>
    %30 = vector.shape_cast %29 : vector<1x32x32xf32> to vector<32x32xf32>
    %c0_34 = arith.constant 0 : index
    %c0_35 = arith.constant 0 : index
    %31 = vector.load %arg4[%c0_34, %c0_35] : memref<1x32xf32, #tpu.memory_space<vmem>>, vector<1x32xf32>
    %cst_36 = arith.constant 0.000000e+00 : f32
    %32 = vector.broadcast %cst_36 : f32 to vector<2x32xf32>
    %cst_37 = arith.constant dense<0.000000e+00> : vector<2x32xf32>
    %33 = tpu.matmul %32, %26, %cst_37 {dimension_numbers = #tpu.dot_dimension_numbers<[1], [0], [0], [1], [0, 0, 1, 1], [], []>} : vector<2x32xf32>, vector<32x32xf32>, vector<2x32xf32> -> vector<2x32xf32>
    %cst_38 = arith.constant dense<0.000000e+00> : vector<2x32xf32>
    %34 = tpu.matmul %32, %28, %cst_38 {dimension_numbers = #tpu.dot_dimension_numbers<[1], [0], [0], [1], [0, 0, 1, 1], [], []>} : vector<2x32xf32>, vector<32x32xf32>, vector<2x32xf32> -> vector<2x32xf32>
    %cst_39 = arith.constant dense<0.000000e+00> : vector<2x32xf32>
    %35 = tpu.matmul %32, %30, %cst_39 {dimension_numbers = #tpu.dot_dimension_numbers<[1], [0], [0], [1], [0, 0, 1, 1], [], []>} : vector<2x32xf32>, vector<32x32xf32>, vector<2x32xf32> -> vector<2x32xf32>
    %c0_40 = arith.constant 0 : index
    %c0_41 = arith.constant 0 : index
    %36 = vector.load %arg12[%c0_40, %c0_41] : memref<16x32xf32, #tpu.memory_space<vmem>>, vector<2x32xf32>
    %37 = arith.addf %36, %33 : vector<2x32xf32>
    %38 = arith.negf %37 : vector<2x32xf32>
    %39 = math.exp %38 : vector<2x32xf32>
    %cst_42 = arith.constant 1.000000e+00 : f32
    %40 = vector.broadcast %cst_42 : f32 to vector<2x32xf32>
    %41 = arith.addf %40, %39 : vector<2x32xf32>
    %42 = arith.divf %40, %41 : vector<2x32xf32>
    %c0_43 = arith.constant 0 : index
    %c0_44 = arith.constant 0 : index
    %43 = vector.load %arg13[%c0_43, %c0_44] : memref<16x32xf32, #tpu.memory_space<vmem>>, vector<2x32xf32>
    %44 = arith.addf %43, %34 : vector<2x32xf32>
    %45 = arith.negf %44 : vector<2x32xf32>
    %46 = math.exp %45 : vector<2x32xf32>
    %cst_45 = arith.constant 1.000000e+00 : f32
    %47 = vector.broadcast %cst_45 : f32 to vector<2x32xf32>
    %48 = arith.addf %47, %46 : vector<2x32xf32>
    %49 = arith.divf %47, %48 : vector<2x32xf32>
    %c0_46 = arith.constant 0 : index
    %c0_47 = arith.constant 0 : index
    %50 = vector.load %arg14[%c0_46, %c0_47] : memref<16x32xf32, #tpu.memory_space<vmem>>, vector<2x32xf32>
    %51 = vector.broadcast %31 : vector<1x32xf32> to vector<2x32xf32>
    %52 = arith.addf %35, %51 : vector<2x32xf32>
    %53 = arith.mulf %42, %52 : vector<2x32xf32>
    %54 = arith.addf %50, %53 : vector<2x32xf32>
    %55 = math.tanh %54 : vector<2x32xf32>
    %cst_48 = arith.constant 1.000000e+00 : f32
    %56 = vector.broadcast %cst_48 : f32 to vector<2x32xf32>
    %57 = arith.subf %56, %49 : vector<2x32xf32>
    %58 = arith.mulf %57, %55 : vector<2x32xf32>
    %59 = arith.mulf %49, %32 : vector<2x32xf32>
    %60 = arith.addf %58, %59 : vector<2x32xf32>
    %c0_49 = arith.constant 0 : index
    %c0_50 = arith.constant 0 : index
    %61 = vector.load %arg15[%c0_49, %c0_50] : memref<16x32xf32, #tpu.memory_space<vmem>>, vector<2x32xf32>
    tpu.vector_store %arg15[%c0_49, %c0_50], %60 {strides = array<i32>} : memref<16x32xf32, #tpu.memory_space<vmem>>, vector<2x32xf32>,
    %cst_51 = arith.constant dense<0.000000e+00> : vector<2x32xf32>
    %62 = tpu.matmul %60, %26, %cst_51 {dimension_numbers = #tpu.dot_dimension_numbers<[1], [0], [0], [1], [0, 0, 1, 1], [], []>} : vector<2x32xf32>, vector<32x32xf32>, vector<2x32xf32> -> vector<2x32xf32>
    %cst_52 = arith.constant dense<0.000000e+00> : vector<2x32xf32>
    %63 = tpu.matmul %60, %28, %cst_52 {dimension_numbers = #tpu.dot_dimension_numbers<[1], [0], [0], [1], [0, 0, 1, 1], [], []>} : vector<2x32xf32>, vector<32x32xf32>, vector<2x32xf32> -> vector<2x32xf32>
    %cst_53 = arith.constant dense<0.000000e+00> : vector<2x32xf32>
    %64 = tpu.matmul %60, %30, %cst_53 {dimension_numbers = #tpu.dot_dimension_numbers<[1], [0], [0], [1], [0, 0, 1, 1], [], []>} : vector<2x32xf32>, vector<32x32xf32>, vector<2x32xf32> -> vector<2x32xf32>
    %c2_54 = arith.constant 2 : index
    %c0_55 = arith.constant 0 : index
    %65 = vector.load %arg12[%c2_54, %c0_55] : memref<16x32xf32, #tpu.memory_space<vmem>>, vector<2x32xf32>
    %66 = arith.addf %65, %62 : vector<2x32xf32>
    %67 = arith.negf %66 : vector<2x32xf32>
    %68 = math.exp %67 : vector<2x32xf32>
    %cst_56 = arith.constant 1.000000e+00 : f32
    %69 = vector.broadcast %cst_56 : f32 to vector<2x32xf32>
    %70 = arith.addf %69, %68 : vector<2x32xf32>
    %71 = arith.divf %69, %70 : vector<2x32xf32>
    %c2_57 = arith.constant 2 : index
    %c0_58 = arith.constant 0 : index
    %72 = vector.load %arg13[%c2_57, %c0_58] : memref<16x32xf32, #tpu.memory_space<vmem>>, vector<2x32xf32>
    %73 = arith.addf %72, %63 : vector<2x32xf32>
    %74 = arith.negf %73 : vector<2x32xf32>
    %75 = math.exp %74 : vector<2x32xf32>
    %cst_59 = arith.constant 1.000000e+00 : f32
    %76 = vector.broadcast %cst_59 : f32 to vector<2x32xf32>
    %77 = arith.addf %76, %75 : vector<2x32xf32>
    %78 = arith.divf %76, %77 : vector<2x32xf32>
    %c2_60 = arith.constant 2 : index
    %c0_61 = arith.constant 0 : index
    %79 = vector.load %arg14[%c2_60, %c0_61] : memref<16x32xf32, #tpu.memory_space<vmem>>, vector<2x32xf32>
    %80 = vector.broadcast %31 : vector<1x32xf32> to vector<2x32xf32>
    %81 = arith.addf %64, %80 : vector<2x32xf32>
    %82 = arith.mulf %71, %81 : vector<2x32xf32>
    %83 = arith.addf %79, %82 : vector<2x32xf32>
    %84 = math.tanh %83 : vector<2x32xf32>
    %cst_62 = arith.constant 1.000000e+00 : f32
    %85 = vector.broadcast %cst_62 : f32 to vector<2x32xf32>
    %86 = arith.subf %85, %78 : vector<2x32xf32>
    %87 = arith.mulf %86, %84 : vector<2x32xf32>
    %88 = arith.mulf %78, %60 : vector<2x32xf32>
    %89 = arith.addf %87, %88 : vector<2x32xf32>
    %c2_63 = arith.constant 2 : index
    %c0_64 = arith.constant 0 : index
    %90 = vector.load %arg15[%c2_63, %c0_64] : memref<16x32xf32, #tpu.memory_space<vmem>>, vector<2x32xf32>
    tpu.vector_store %arg15[%c2_63, %c0_64], %89 {strides = array<i32>} : memref<16x32xf32, #tpu.memory_space<vmem>>, vector<2x32xf32>,
    %cst_65 = arith.constant dense<0.000000e+00> : vector<2x32xf32>
    %91 = tpu.matmul %89, %26, %cst_65 {dimension_numbers = #tpu.dot_dimension_numbers<[1], [0], [0], [1], [0, 0, 1, 1], [], []>} : vector<2x32xf32>, vector<32x32xf32>, vector<2x32xf32> -> vector<2x32xf32>
    %cst_66 = arith.constant dense<0.000000e+00> : vector<2x32xf32>
    %92 = tpu.matmul %89, %28, %cst_66 {dimension_numbers = #tpu.dot_dimension_numbers<[1], [0], [0], [1], [0, 0, 1, 1], [], []>} : vector<2x32xf32>, vector<32x32xf32>, vector<2x32xf32> -> vector<2x32xf32>
    %cst_67 = arith.constant dense<0.000000e+00> : vector<2x32xf32>
    %93 = tpu.matmul %89, %30, %cst_67 {dimension_numbers = #tpu.dot_dimension_numbers<[1], [0], [0], [1], [0, 0, 1, 1], [], []>} : vector<2x32xf32>, vector<32x32xf32>, vector<2x32xf32> -> vector<2x32xf32>
    %c4 = arith.constant 4 : index
    %c0_68 = arith.constant 0 : index
    %94 = vector.load %arg12[%c4, %c0_68] : memref<16x32xf32, #tpu.memory_space<vmem>>, vector<2x32xf32>
    %95 = arith.addf %94, %91 : vector<2x32xf32>
    %96 = arith.negf %95 : vector<2x32xf32>
    %97 = math.exp %96 : vector<2x32xf32>
    %cst_69 = arith.constant 1.000000e+00 : f32
    %98 = vector.broadcast %cst_69 : f32 to vector<2x32xf32>
    %99 = arith.addf %98, %97 : vector<2x32xf32>
    %100 = arith.divf %98, %99 : vector<2x32xf32>
    %c4_70 = arith.constant 4 : index
    %c0_71 = arith.constant 0 : index
    %101 = vector.load %arg13[%c4_70, %c0_71] : memref<16x32xf32, #tpu.memory_space<vmem>>, vector<2x32xf32>
    %102 = arith.addf %101, %92 : vector<2x32xf32>
    %103 = arith.negf %102 : vector<2x32xf32>
    %104 = math.exp %103 : vector<2x32xf32>
    %cst_72 = arith.constant 1.000000e+00 : f32
    %105 = vector.broadcast %cst_72 : f32 to vector<2x32xf32>
    %106 = arith.addf %105, %104 : vector<2x32xf32>
    %107 = arith.divf %105, %106 : vector<2x32xf32>
    %c4_73 = arith.constant 4 : index
    %c0_74 = arith.constant 0 : index
    %108 = vector.load %arg14[%c4_73, %c0_74] : memref<16x32xf32, #tpu.memory_space<vmem>>, vector<2x32xf32>
    %109 = vector.broadcast %31 : vector<1x32xf32> to vector<2x32xf32>
    %110 = arith.addf %93, %109 : vector<2x32xf32>
    %111 = arith.mulf %100, %110 : vector<2x32xf32>
    %112 = arith.addf %108, %111 : vector<2x32xf32>
    %113 = math.tanh %112 : vector<2x32xf32>
    %cst_75 = arith.constant 1.000000e+00 : f32
    %114 = vector.broadcast %cst_75 : f32 to vector<2x32xf32>
    %115 = arith.subf %114, %107 : vector<2x32xf32>
    %116 = arith.mulf %115, %113 : vector<2x32xf32>
    %117 = arith.mulf %107, %89 : vector<2x32xf32>
    %118 = arith.addf %116, %117 : vector<2x32xf32>
    %c4_76 = arith.constant 4 : index
    %c0_77 = arith.constant 0 : index
    %119 = vector.load %arg15[%c4_76, %c0_77] : memref<16x32xf32, #tpu.memory_space<vmem>>, vector<2x32xf32>
    tpu.vector_store %arg15[%c4_76, %c0_77], %118 {strides = array<i32>} : memref<16x32xf32, #tpu.memory_space<vmem>>, vector<2x32xf32>,
    %cst_78 = arith.constant dense<0.000000e+00> : vector<2x32xf32>
    %120 = tpu.matmul %118, %26, %cst_78 {dimension_numbers = #tpu.dot_dimension_numbers<[1], [0], [0], [1], [0, 0, 1, 1], [], []>} : vector<2x32xf32>, vector<32x32xf32>, vector<2x32xf32> -> vector<2x32xf32>
    %cst_79 = arith.constant dense<0.000000e+00> : vector<2x32xf32>
    %121 = tpu.matmul %118, %28, %cst_79 {dimension_numbers = #tpu.dot_dimension_numbers<[1], [0], [0], [1], [0, 0, 1, 1], [], []>} : vector<2x32xf32>, vector<32x32xf32>, vector<2x32xf32> -> vector<2x32xf32>
    %cst_80 = arith.constant dense<0.000000e+00> : vector<2x32xf32>
    %122 = tpu.matmul %118, %30, %cst_80 {dimension_numbers = #tpu.dot_dimension_numbers<[1], [0], [0], [1], [0, 0, 1, 1], [], []>} : vector<2x32xf32>, vector<32x32xf32>, vector<2x32xf32> -> vector<2x32xf32>
    %c6 = arith.constant 6 : index
    %c0_81 = arith.constant 0 : index
    %123 = vector.load %arg12[%c6, %c0_81] : memref<16x32xf32, #tpu.memory_space<vmem>>, vector<2x32xf32>
    %124 = arith.addf %123, %120 : vector<2x32xf32>
    %125 = arith.negf %124 : vector<2x32xf32>
    %126 = math.exp %125 : vector<2x32xf32>
    %cst_82 = arith.constant 1.000000e+00 : f32
    %127 = vector.broadcast %cst_82 : f32 to vector<2x32xf32>
    %128 = arith.addf %127, %126 : vector<2x32xf32>
    %129 = arith.divf %127, %128 : vector<2x32xf32>
    %c6_83 = arith.constant 6 : index
    %c0_84 = arith.constant 0 : index
    %130 = vector.load %arg13[%c6_83, %c0_84] : memref<16x32xf32, #tpu.memory_space<vmem>>, vector<2x32xf32>
    %131 = arith.addf %130, %121 : vector<2x32xf32>
    %132 = arith.negf %131 : vector<2x32xf32>
    %133 = math.exp %132 : vector<2x32xf32>
    %cst_85 = arith.constant 1.000000e+00 : f32
    %134 = vector.broadcast %cst_85 : f32 to vector<2x32xf32>
    %135 = arith.addf %134, %133 : vector<2x32xf32>
    %136 = arith.divf %134, %135 : vector<2x32xf32>
    %c6_86 = arith.constant 6 : index
    %c0_87 = arith.constant 0 : index
    %137 = vector.load %arg14[%c6_86, %c0_87] : memref<16x32xf32, #tpu.memory_space<vmem>>, vector<2x32xf32>
    %138 = vector.broadcast %31 : vector<1x32xf32> to vector<2x32xf32>
    %139 = arith.addf %122, %138 : vector<2x32xf32>
    %140 = arith.mulf %129, %139 : vector<2x32xf32>
    %141 = arith.addf %137, %140 : vector<2x32xf32>
    %142 = math.tanh %141 : vector<2x32xf32>
    %cst_88 = arith.constant 1.000000e+00 : f32
    %143 = vector.broadcast %cst_88 : f32 to vector<2x32xf32>
    %144 = arith.subf %143, %136 : vector<2x32xf32>
    %145 = arith.mulf %144, %142 : vector<2x32xf32>
    %146 = arith.mulf %136, %118 : vector<2x32xf32>
    %147 = arith.addf %145, %146 : vector<2x32xf32>
    %c6_89 = arith.constant 6 : index
    %c0_90 = arith.constant 0 : index
    %148 = vector.load %arg15[%c6_89, %c0_90] : memref<16x32xf32, #tpu.memory_space<vmem>>, vector<2x32xf32>
    tpu.vector_store %arg15[%c6_89, %c0_90], %147 {strides = array<i32>} : memref<16x32xf32, #tpu.memory_space<vmem>>, vector<2x32xf32>,
    %cst_91 = arith.constant dense<0.000000e+00> : vector<2x32xf32>
    %149 = tpu.matmul %147, %26, %cst_91 {dimension_numbers = #tpu.dot_dimension_numbers<[1], [0], [0], [1], [0, 0, 1, 1], [], []>} : vector<2x32xf32>, vector<32x32xf32>, vector<2x32xf32> -> vector<2x32xf32>
    %cst_92 = arith.constant dense<0.000000e+00> : vector<2x32xf32>
    %150 = tpu.matmul %147, %28, %cst_92 {dimension_numbers = #tpu.dot_dimension_numbers<[1], [0], [0], [1], [0, 0, 1, 1], [], []>} : vector<2x32xf32>, vector<32x32xf32>, vector<2x32xf32> -> vector<2x32xf32>
    %cst_93 = arith.constant dense<0.000000e+00> : vector<2x32xf32>
    %151 = tpu.matmul %147, %30, %cst_93 {dimension_numbers = #tpu.dot_dimension_numbers<[1], [0], [0], [1], [0, 0, 1, 1], [], []>} : vector<2x32xf32>, vector<32x32xf32>, vector<2x32xf32> -> vector<2x32xf32>
    %c8 = arith.constant 8 : index
    %c0_94 = arith.constant 0 : index
    %152 = vector.load %arg12[%c8, %c0_94] : memref<16x32xf32, #tpu.memory_space<vmem>>, vector<2x32xf32>
    %153 = arith.addf %152, %149 : vector<2x32xf32>
    %154 = arith.negf %153 : vector<2x32xf32>
    %155 = math.exp %154 : vector<2x32xf32>
    %cst_95 = arith.constant 1.000000e+00 : f32
    %156 = vector.broadcast %cst_95 : f32 to vector<2x32xf32>
    %157 = arith.addf %156, %155 : vector<2x32xf32>
    %158 = arith.divf %156, %157 : vector<2x32xf32>
    %c8_96 = arith.constant 8 : index
    %c0_97 = arith.constant 0 : index
    %159 = vector.load %arg13[%c8_96, %c0_97] : memref<16x32xf32, #tpu.memory_space<vmem>>, vector<2x32xf32>
    %160 = arith.addf %159, %150 : vector<2x32xf32>
    %161 = arith.negf %160 : vector<2x32xf32>
    %162 = math.exp %161 : vector<2x32xf32>
    %cst_98 = arith.constant 1.000000e+00 : f32
    %163 = vector.broadcast %cst_98 : f32 to vector<2x32xf32>
    %164 = arith.addf %163, %162 : vector<2x32xf32>
    %165 = arith.divf %163, %164 : vector<2x32xf32>
    %c8_99 = arith.constant 8 : index
    %c0_100 = arith.constant 0 : index
    %166 = vector.load %arg14[%c8_99, %c0_100] : memref<16x32xf32, #tpu.memory_space<vmem>>, vector<2x32xf32>
    %167 = vector.broadcast %31 : vector<1x32xf32> to vector<2x32xf32>
    %168 = arith.addf %151, %167 : vector<2x32xf32>
    %169 = arith.mulf %158, %168 : vector<2x32xf32>
    %170 = arith.addf %166, %169 : vector<2x32xf32>
    %171 = math.tanh %170 : vector<2x32xf32>
    %cst_101 = arith.constant 1.000000e+00 : f32
    %172 = vector.broadcast %cst_101 : f32 to vector<2x32xf32>
    %173 = arith.subf %172, %165 : vector<2x32xf32>
    %174 = arith.mulf %173, %171 : vector<2x32xf32>
    %175 = arith.mulf %165, %147 : vector<2x32xf32>
    %176 = arith.addf %174, %175 : vector<2x32xf32>
    %c8_102 = arith.constant 8 : index
    %c0_103 = arith.constant 0 : index
    %177 = vector.load %arg15[%c8_102, %c0_103] : memref<16x32xf32, #tpu.memory_space<vmem>>, vector<2x32xf32>
    tpu.vector_store %arg15[%c8_102, %c0_103], %176 {strides = array<i32>} : memref<16x32xf32, #tpu.memory_space<vmem>>, vector<2x32xf32>,
    %cst_104 = arith.constant dense<0.000000e+00> : vector<2x32xf32>
    %178 = tpu.matmul %176, %26, %cst_104 {dimension_numbers = #tpu.dot_dimension_numbers<[1], [0], [0], [1], [0, 0, 1, 1], [], []>} : vector<2x32xf32>, vector<32x32xf32>, vector<2x32xf32> -> vector<2x32xf32>
    %cst_105 = arith.constant dense<0.000000e+00> : vector<2x32xf32>
    %179 = tpu.matmul %176, %28, %cst_105 {dimension_numbers = #tpu.dot_dimension_numbers<[1], [0], [0], [1], [0, 0, 1, 1], [], []>} : vector<2x32xf32>, vector<32x32xf32>, vector<2x32xf32> -> vector<2x32xf32>
    %cst_106 = arith.constant dense<0.000000e+00> : vector<2x32xf32>
    %180 = tpu.matmul %176, %30, %cst_106 {dimension_numbers = #tpu.dot_dimension_numbers<[1], [0], [0], [1], [0, 0, 1, 1], [], []>} : vector<2x32xf32>, vector<32x32xf32>, vector<2x32xf32> -> vector<2x32xf32>
    %c10 = arith.constant 10 : index
    %c0_107 = arith.constant 0 : index
    %181 = vector.load %arg12[%c10, %c0_107] : memref<16x32xf32, #tpu.memory_space<vmem>>, vector<2x32xf32>
    %182 = arith.addf %181, %178 : vector<2x32xf32>
    %183 = arith.negf %182 : vector<2x32xf32>
    %184 = math.exp %183 : vector<2x32xf32>
    %cst_108 = arith.constant 1.000000e+00 : f32
    %185 = vector.broadcast %cst_108 : f32 to vector<2x32xf32>
    %186 = arith.addf %185, %184 : vector<2x32xf32>
    %187 = arith.divf %185, %186 : vector<2x32xf32>
    %c10_109 = arith.constant 10 : index
    %c0_110 = arith.constant 0 : index
    %188 = vector.load %arg13[%c10_109, %c0_110] : memref<16x32xf32, #tpu.memory_space<vmem>>, vector<2x32xf32>
    %189 = arith.addf %188, %179 : vector<2x32xf32>
    %190 = arith.negf %189 : vector<2x32xf32>
    %191 = math.exp %190 : vector<2x32xf32>
    %cst_111 = arith.constant 1.000000e+00 : f32
    %192 = vector.broadcast %cst_111 : f32 to vector<2x32xf32>
    %193 = arith.addf %192, %191 : vector<2x32xf32>
    %194 = arith.divf %192, %193 : vector<2x32xf32>
    %c10_112 = arith.constant 10 : index
    %c0_113 = arith.constant 0 : index
    %195 = vector.load %arg14[%c10_112, %c0_113] : memref<16x32xf32, #tpu.memory_space<vmem>>, vector<2x32xf32>
    %196 = vector.broadcast %31 : vector<1x32xf32> to vector<2x32xf32>
    %197 = arith.addf %180, %196 : vector<2x32xf32>
    %198 = arith.mulf %187, %197 : vector<2x32xf32>
    %199 = arith.addf %195, %198 : vector<2x32xf32>
    %200 = math.tanh %199 : vector<2x32xf32>
    %cst_114 = arith.constant 1.000000e+00 : f32
    %201 = vector.broadcast %cst_114 : f32 to vector<2x32xf32>
    %202 = arith.subf %201, %194 : vector<2x32xf32>
    %203 = arith.mulf %202, %200 : vector<2x32xf32>
    %204 = arith.mulf %194, %176 : vector<2x32xf32>
    %205 = arith.addf %203, %204 : vector<2x32xf32>
    %c10_115 = arith.constant 10 : index
    %c0_116 = arith.constant 0 : index
    %206 = vector.load %arg15[%c10_115, %c0_116] : memref<16x32xf32, #tpu.memory_space<vmem>>, vector<2x32xf32>
    tpu.vector_store %arg15[%c10_115, %c0_116], %205 {strides = array<i32>} : memref<16x32xf32, #tpu.memory_space<vmem>>, vector<2x32xf32>,
    %cst_117 = arith.constant dense<0.000000e+00> : vector<2x32xf32>
    %207 = tpu.matmul %205, %26, %cst_117 {dimension_numbers = #tpu.dot_dimension_numbers<[1], [0], [0], [1], [0, 0, 1, 1], [], []>} : vector<2x32xf32>, vector<32x32xf32>, vector<2x32xf32> -> vector<2x32xf32>
    %cst_118 = arith.constant dense<0.000000e+00> : vector<2x32xf32>
    %208 = tpu.matmul %205, %28, %cst_118 {dimension_numbers = #tpu.dot_dimension_numbers<[1], [0], [0], [1], [0, 0, 1, 1], [], []>} : vector<2x32xf32>, vector<32x32xf32>, vector<2x32xf32> -> vector<2x32xf32>
    %cst_119 = arith.constant dense<0.000000e+00> : vector<2x32xf32>
    %209 = tpu.matmul %205, %30, %cst_119 {dimension_numbers = #tpu.dot_dimension_numbers<[1], [0], [0], [1], [0, 0, 1, 1], [], []>} : vector<2x32xf32>, vector<32x32xf32>, vector<2x32xf32> -> vector<2x32xf32>
    %c12 = arith.constant 12 : index
    %c0_120 = arith.constant 0 : index
    %210 = vector.load %arg12[%c12, %c0_120] : memref<16x32xf32, #tpu.memory_space<vmem>>, vector<2x32xf32>
    %211 = arith.addf %210, %207 : vector<2x32xf32>
    %212 = arith.negf %211 : vector<2x32xf32>
    %213 = math.exp %212 : vector<2x32xf32>
    %cst_121 = arith.constant 1.000000e+00 : f32
    %214 = vector.broadcast %cst_121 : f32 to vector<2x32xf32>
    %215 = arith.addf %214, %213 : vector<2x32xf32>
    %216 = arith.divf %214, %215 : vector<2x32xf32>
    %c12_122 = arith.constant 12 : index
    %c0_123 = arith.constant 0 : index
    %217 = vector.load %arg13[%c12_122, %c0_123] : memref<16x32xf32, #tpu.memory_space<vmem>>, vector<2x32xf32>
    %218 = arith.addf %217, %208 : vector<2x32xf32>
    %219 = arith.negf %218 : vector<2x32xf32>
    %220 = math.exp %219 : vector<2x32xf32>
    %cst_124 = arith.constant 1.000000e+00 : f32
    %221 = vector.broadcast %cst_124 : f32 to vector<2x32xf32>
    %222 = arith.addf %221, %220 : vector<2x32xf32>
    %223 = arith.divf %221, %222 : vector<2x32xf32>
    %c12_125 = arith.constant 12 : index
    %c0_126 = arith.constant 0 : index
    %224 = vector.load %arg14[%c12_125, %c0_126] : memref<16x32xf32, #tpu.memory_space<vmem>>, vector<2x32xf32>
    %225 = vector.broadcast %31 : vector<1x32xf32> to vector<2x32xf32>
    %226 = arith.addf %209, %225 : vector<2x32xf32>
    %227 = arith.mulf %216, %226 : vector<2x32xf32>
    %228 = arith.addf %224, %227 : vector<2x32xf32>
    %229 = math.tanh %228 : vector<2x32xf32>
    %cst_127 = arith.constant 1.000000e+00 : f32
    %230 = vector.broadcast %cst_127 : f32 to vector<2x32xf32>
    %231 = arith.subf %230, %223 : vector<2x32xf32>
    %232 = arith.mulf %231, %229 : vector<2x32xf32>
    %233 = arith.mulf %223, %205 : vector<2x32xf32>
    %234 = arith.addf %232, %233 : vector<2x32xf32>
    %c12_128 = arith.constant 12 : index
    %c0_129 = arith.constant 0 : index
    %235 = vector.load %arg15[%c12_128, %c0_129] : memref<16x32xf32, #tpu.memory_space<vmem>>, vector<2x32xf32>
    tpu.vector_store %arg15[%c12_128, %c0_129], %234 {strides = array<i32>} : memref<16x32xf32, #tpu.memory_space<vmem>>, vector<2x32xf32>,
    %cst_130 = arith.constant dense<0.000000e+00> : vector<2x32xf32>
    %236 = tpu.matmul %234, %26, %cst_130 {dimension_numbers = #tpu.dot_dimension_numbers<[1], [0], [0], [1], [0, 0, 1, 1], [], []>} : vector<2x32xf32>, vector<32x32xf32>, vector<2x32xf32> -> vector<2x32xf32>
    %cst_131 = arith.constant dense<0.000000e+00> : vector<2x32xf32>
    %237 = tpu.matmul %234, %28, %cst_131 {dimension_numbers = #tpu.dot_dimension_numbers<[1], [0], [0], [1], [0, 0, 1, 1], [], []>} : vector<2x32xf32>, vector<32x32xf32>, vector<2x32xf32> -> vector<2x32xf32>
    %cst_132 = arith.constant dense<0.000000e+00> : vector<2x32xf32>
    %238 = tpu.matmul %234, %30, %cst_132 {dimension_numbers = #tpu.dot_dimension_numbers<[1], [0], [0], [1], [0, 0, 1, 1], [], []>} : vector<2x32xf32>, vector<32x32xf32>, vector<2x32xf32> -> vector<2x32xf32>
    %c14 = arith.constant 14 : index
    %c0_133 = arith.constant 0 : index
    %239 = vector.load %arg12[%c14, %c0_133] : memref<16x32xf32, #tpu.memory_space<vmem>>, vector<2x32xf32>
    %240 = arith.addf %239, %236 : vector<2x32xf32>
    %241 = arith.negf %240 : vector<2x32xf32>
    %242 = math.exp %241 : vector<2x32xf32>
    %cst_134 = arith.constant 1.000000e+00 : f32
    %243 = vector.broadcast %cst_134 : f32 to vector<2x32xf32>
    %244 = arith.addf %243, %242 : vector<2x32xf32>
    %245 = arith.divf %243, %244 : vector<2x32xf32>
    %c14_135 = arith.constant 14 : index
    %c0_136 = arith.constant 0 : index
    %246 = vector.load %arg13[%c14_135, %c0_136] : memref<16x32xf32, #tpu.memory_space<vmem>>, vector<2x32xf32>
    %247 = arith.addf %246, %237 : vector<2x32xf32>
    %248 = arith.negf %247 : vector<2x32xf32>
    %249 = math.exp %248 : vector<2x32xf32>
    %cst_137 = arith.constant 1.000000e+00 : f32
    %250 = vector.broadcast %cst_137 : f32 to vector<2x32xf32>
    %251 = arith.addf %250, %249 : vector<2x32xf32>
    %252 = arith.divf %250, %251 : vector<2x32xf32>
    %c14_138 = arith.constant 14 : index
    %c0_139 = arith.constant 0 : index
    %253 = vector.load %arg14[%c14_138, %c0_139] : memref<16x32xf32, #tpu.memory_space<vmem>>, vector<2x32xf32>
    %254 = vector.broadcast %31 : vector<1x32xf32> to vector<2x32xf32>
    %255 = arith.addf %238, %254 : vector<2x32xf32>
    %256 = arith.mulf %245, %255 : vector<2x32xf32>
    %257 = arith.addf %253, %256 : vector<2x32xf32>
    %258 = math.tanh %257 : vector<2x32xf32>
    %cst_140 = arith.constant 1.000000e+00 : f32
    %259 = vector.broadcast %cst_140 : f32 to vector<2x32xf32>
    %260 = arith.subf %259, %252 : vector<2x32xf32>
    %261 = arith.mulf %260, %258 : vector<2x32xf32>
    %262 = arith.mulf %252, %234 : vector<2x32xf32>
    %263 = arith.addf %261, %262 : vector<2x32xf32>
    %c14_141 = arith.constant 14 : index
    %c0_142 = arith.constant 0 : index
    %264 = vector.load %arg15[%c14_141, %c0_142] : memref<16x32xf32, #tpu.memory_space<vmem>>, vector<2x32xf32>
    tpu.vector_store %arg15[%c14_141, %c0_142], %263 {strides = array<i32>} : memref<16x32xf32, #tpu.memory_space<vmem>>, vector<2x32xf32>,
    %c0_143 = arith.constant 0 : index
    %c0_144 = arith.constant 0 : index
    %265 = vector.load %arg15[%c0_143, %c0_144] : memref<16x32xf32, #tpu.memory_space<vmem>>, vector<16x32xf32>
    %c0_145 = arith.constant 0 : index
    %c0_146 = arith.constant 0 : index
    %c0_147 = arith.constant 0 : index
    %266 = vector.load %arg5[%c0_145, %c0_146, %c0_147] : memref<3x32x32xf32, #tpu.memory_space<vmem>>, vector<1x32x32xf32>
    %267 = vector.shape_cast %266 : vector<1x32x32xf32> to vector<32x32xf32>
    %cst_148 = arith.constant dense<0.000000e+00> : vector<16x32xf32>
    %268 = tpu.matmul %265, %267, %cst_148 {dimension_numbers = #tpu.dot_dimension_numbers<[1], [0], [0], [1], [0, 0, 1, 1], [], []>} : vector<16x32xf32>, vector<32x32xf32>, vector<16x32xf32> -> vector<16x32xf32>
    %c0_149 = arith.constant 0 : index
    %c0_150 = arith.constant 0 : index
    %c0_151 = arith.constant 0 : index
    %269 = vector.load %arg7[%c0_149, %c0_150, %c0_151] : memref<3x1x32xf32, #tpu.memory_space<vmem>>, vector<1x1x32xf32>
    %270 = vector.shape_cast %269 : vector<1x1x32xf32> to vector<1x32xf32>
    %271 = vector.broadcast %270 : vector<1x32xf32> to vector<16x32xf32>
    %272 = arith.addf %268, %271 : vector<16x32xf32>
    %c0_152 = arith.constant 0 : index
    %c0_153 = arith.constant 0 : index
    %273 = vector.load %arg12[%c0_152, %c0_153] : memref<16x32xf32, #tpu.memory_space<vmem>>, vector<16x32xf32>
    tpu.vector_store %arg12[%c0_152, %c0_153], %272 {strides = array<i32>} : memref<16x32xf32, #tpu.memory_space<vmem>>, vector<16x32xf32>,
    %c1_154 = arith.constant 1 : index
    %c0_155 = arith.constant 0 : index
    %c0_156 = arith.constant 0 : index
    %274 = vector.load %arg5[%c1_154, %c0_155, %c0_156] : memref<3x32x32xf32, #tpu.memory_space<vmem>>, vector<1x32x32xf32>
    %275 = vector.shape_cast %274 : vector<1x32x32xf32> to vector<32x32xf32>
    %cst_157 = arith.constant dense<0.000000e+00> : vector<16x32xf32>
    %276 = tpu.matmul %265, %275, %cst_157 {dimension_numbers = #tpu.dot_dimension_numbers<[1], [0], [0], [1], [0, 0, 1, 1], [], []>} : vector<16x32xf32>, vector<32x32xf32>, vector<16x32xf32> -> vector<16x32xf32>
    %c1_158 = arith.constant 1 : index
    %c0_159 = arith.constant 0 : index
    %c0_160 = arith.constant 0 : index
    %277 = vector.load %arg7[%c1_158, %c0_159, %c0_160] : memref<3x1x32xf32, #tpu.memory_space<vmem>>, vector<1x1x32xf32>
    %278 = vector.shape_cast %277 : vector<1x1x32xf32> to vector<1x32xf32>
    %279 = vector.broadcast %278 : vector<1x32xf32> to vector<16x32xf32>
    %280 = arith.addf %276, %279 : vector<16x32xf32>
    %c0_161 = arith.constant 0 : index
    %c0_162 = arith.constant 0 : index
    %281 = vector.load %arg13[%c0_161, %c0_162] : memref<16x32xf32, #tpu.memory_space<vmem>>, vector<16x32xf32>
    tpu.vector_store %arg13[%c0_161, %c0_162], %280 {strides = array<i32>} : memref<16x32xf32, #tpu.memory_space<vmem>>, vector<16x32xf32>,
    %c2_163 = arith.constant 2 : index
    %c0_164 = arith.constant 0 : index
    %c0_165 = arith.constant 0 : index
    %282 = vector.load %arg5[%c2_163, %c0_164, %c0_165] : memref<3x32x32xf32, #tpu.memory_space<vmem>>, vector<1x32x32xf32>
    %283 = vector.shape_cast %282 : vector<1x32x32xf32> to vector<32x32xf32>
    %cst_166 = arith.constant dense<0.000000e+00> : vector<16x32xf32>
    %284 = tpu.matmul %265, %283, %cst_166 {dimension_numbers = #tpu.dot_dimension_numbers<[1], [0], [0], [1], [0, 0, 1, 1], [], []>} : vector<16x32xf32>, vector<32x32xf32>, vector<16x32xf32> -> vector<16x32xf32>
    %c2_167 = arith.constant 2 : index
    %c0_168 = arith.constant 0 : index
    %c0_169 = arith.constant 0 : index
    %285 = vector.load %arg7[%c2_167, %c0_168, %c0_169] : memref<3x1x32xf32, #tpu.memory_space<vmem>>, vector<1x1x32xf32>
    %286 = vector.shape_cast %285 : vector<1x1x32xf32> to vector<1x32xf32>
    %287 = vector.broadcast %286 : vector<1x32xf32> to vector<16x32xf32>
    %288 = arith.addf %284, %287 : vector<16x32xf32>
    %c0_170 = arith.constant 0 : index
    %c0_171 = arith.constant 0 : index
    %289 = vector.load %arg14[%c0_170, %c0_171] : memref<16x32xf32, #tpu.memory_space<vmem>>, vector<16x32xf32>
    tpu.vector_store %arg14[%c0_170, %c0_171], %288 {strides = array<i32>} : memref<16x32xf32, #tpu.memory_space<vmem>>, vector<16x32xf32>,
    %c0_172 = arith.constant 0 : index
    %c0_173 = arith.constant 0 : index
    %c0_174 = arith.constant 0 : index
    %290 = vector.load %arg6[%c0_172, %c0_173, %c0_174] : memref<3x32x32xf32, #tpu.memory_space<vmem>>, vector<1x32x32xf32>
    %291 = vector.shape_cast %290 : vector<1x32x32xf32> to vector<32x32xf32>
    %c1_175 = arith.constant 1 : index
    %c0_176 = arith.constant 0 : index
    %c0_177 = arith.constant 0 : index
    %292 = vector.load %arg6[%c1_175, %c0_176, %c0_177] : memref<3x32x32xf32, #tpu.memory_space<vmem>>, vector<1x32x32xf32>
    %293 = vector.shape_cast %292 : vector<1x32x32xf32> to vector<32x32xf32>
    %c2_178 = arith.constant 2 : index
    %c0_179 = arith.constant 0 : index
    %c0_180 = arith.constant 0 : index
    %294 = vector.load %arg6[%c2_178, %c0_179, %c0_180] : memref<3x32x32xf32, #tpu.memory_space<vmem>>, vector<1x32x32xf32>
    %295 = vector.shape_cast %294 : vector<1x32x32xf32> to vector<32x32xf32>
    %c0_181 = arith.constant 0 : index
    %c0_182 = arith.constant 0 : index
    %296 = vector.load %arg8[%c0_181, %c0_182] : memref<1x32xf32, #tpu.memory_space<vmem>>, vector<1x32xf32>
    %cst_183 = arith.constant 0.000000e+00 : f32
    %297 = vector.broadcast %cst_183 : f32 to vector<2x32xf32>
    %cst_184 = arith.constant dense<0.000000e+00> : vector<2x32xf32>
    %298 = tpu.matmul %297, %291, %cst_184 {dimension_numbers = #tpu.dot_dimension_numbers<[1], [0], [0], [1], [0, 0, 1, 1], [], []>} : vector<2x32xf32>, vector<32x32xf32>, vector<2x32xf32> -> vector<2x32xf32>
    %cst_185 = arith.constant dense<0.000000e+00> : vector<2x32xf32>
    %299 = tpu.matmul %297, %293, %cst_185 {dimension_numbers = #tpu.dot_dimension_numbers<[1], [0], [0], [1], [0, 0, 1, 1], [], []>} : vector<2x32xf32>, vector<32x32xf32>, vector<2x32xf32> -> vector<2x32xf32>
    %cst_186 = arith.constant dense<0.000000e+00> : vector<2x32xf32>
    %300 = tpu.matmul %297, %295, %cst_186 {dimension_numbers = #tpu.dot_dimension_numbers<[1], [0], [0], [1], [0, 0, 1, 1], [], []>} : vector<2x32xf32>, vector<32x32xf32>, vector<2x32xf32> -> vector<2x32xf32>
    %c0_187 = arith.constant 0 : index
    %c0_188 = arith.constant 0 : index
    %301 = vector.load %arg12[%c0_187, %c0_188] : memref<16x32xf32, #tpu.memory_space<vmem>>, vector<2x32xf32>
    %302 = arith.addf %301, %298 : vector<2x32xf32>
    %303 = arith.negf %302 : vector<2x32xf32>
    %304 = math.exp %303 : vector<2x32xf32>
    %cst_189 = arith.constant 1.000000e+00 : f32
    %305 = vector.broadcast %cst_189 : f32 to vector<2x32xf32>
    %306 = arith.addf %305, %304 : vector<2x32xf32>
    %307 = arith.divf %305, %306 : vector<2x32xf32>
    %c0_190 = arith.constant 0 : index
    %c0_191 = arith.constant 0 : index
    %308 = vector.load %arg13[%c0_190, %c0_191] : memref<16x32xf32, #tpu.memory_space<vmem>>, vector<2x32xf32>
    %309 = arith.addf %308, %299 : vector<2x32xf32>
    %310 = arith.negf %309 : vector<2x32xf32>
    %311 = math.exp %310 : vector<2x32xf32>
    %cst_192 = arith.constant 1.000000e+00 : f32
    %312 = vector.broadcast %cst_192 : f32 to vector<2x32xf32>
    %313 = arith.addf %312, %311 : vector<2x32xf32>
    %314 = arith.divf %312, %313 : vector<2x32xf32>
    %c0_193 = arith.constant 0 : index
    %c0_194 = arith.constant 0 : index
    %315 = vector.load %arg14[%c0_193, %c0_194] : memref<16x32xf32, #tpu.memory_space<vmem>>, vector<2x32xf32>
    %316 = vector.broadcast %296 : vector<1x32xf32> to vector<2x32xf32>
    %317 = arith.addf %300, %316 : vector<2x32xf32>
    %318 = arith.mulf %307, %317 : vector<2x32xf32>
    %319 = arith.addf %315, %318 : vector<2x32xf32>
    %320 = math.tanh %319 : vector<2x32xf32>
    %cst_195 = arith.constant 1.000000e+00 : f32
    %321 = vector.broadcast %cst_195 : f32 to vector<2x32xf32>
    %322 = arith.subf %321, %314 : vector<2x32xf32>
    %323 = arith.mulf %322, %320 : vector<2x32xf32>
    %324 = arith.mulf %314, %297 : vector<2x32xf32>
    %325 = arith.addf %323, %324 : vector<2x32xf32>
    %cst_196 = arith.constant dense<0.000000e+00> : vector<2x32xf32>
    %326 = tpu.matmul %325, %291, %cst_196 {dimension_numbers = #tpu.dot_dimension_numbers<[1], [0], [0], [1], [0, 0, 1, 1], [], []>} : vector<2x32xf32>, vector<32x32xf32>, vector<2x32xf32> -> vector<2x32xf32>
    %cst_197 = arith.constant dense<0.000000e+00> : vector<2x32xf32>
    %327 = tpu.matmul %325, %293, %cst_197 {dimension_numbers = #tpu.dot_dimension_numbers<[1], [0], [0], [1], [0, 0, 1, 1], [], []>} : vector<2x32xf32>, vector<32x32xf32>, vector<2x32xf32> -> vector<2x32xf32>
    %cst_198 = arith.constant dense<0.000000e+00> : vector<2x32xf32>
    %328 = tpu.matmul %325, %295, %cst_198 {dimension_numbers = #tpu.dot_dimension_numbers<[1], [0], [0], [1], [0, 0, 1, 1], [], []>} : vector<2x32xf32>, vector<32x32xf32>, vector<2x32xf32> -> vector<2x32xf32>
    %c2_199 = arith.constant 2 : index
    %c0_200 = arith.constant 0 : index
    %329 = vector.load %arg12[%c2_199, %c0_200] : memref<16x32xf32, #tpu.memory_space<vmem>>, vector<2x32xf32>
    %330 = arith.addf %329, %326 : vector<2x32xf32>
    %331 = arith.negf %330 : vector<2x32xf32>
    %332 = math.exp %331 : vector<2x32xf32>
    %cst_201 = arith.constant 1.000000e+00 : f32
    %333 = vector.broadcast %cst_201 : f32 to vector<2x32xf32>
    %334 = arith.addf %333, %332 : vector<2x32xf32>
    %335 = arith.divf %333, %334 : vector<2x32xf32>
    %c2_202 = arith.constant 2 : index
    %c0_203 = arith.constant 0 : index
    %336 = vector.load %arg13[%c2_202, %c0_203] : memref<16x32xf32, #tpu.memory_space<vmem>>, vector<2x32xf32>
    %337 = arith.addf %336, %327 : vector<2x32xf32>
    %338 = arith.negf %337 : vector<2x32xf32>
    %339 = math.exp %338 : vector<2x32xf32>
    %cst_204 = arith.constant 1.000000e+00 : f32
    %340 = vector.broadcast %cst_204 : f32 to vector<2x32xf32>
    %341 = arith.addf %340, %339 : vector<2x32xf32>
    %342 = arith.divf %340, %341 : vector<2x32xf32>
    %c2_205 = arith.constant 2 : index
    %c0_206 = arith.constant 0 : index
    %343 = vector.load %arg14[%c2_205, %c0_206] : memref<16x32xf32, #tpu.memory_space<vmem>>, vector<2x32xf32>
    %344 = vector.broadcast %296 : vector<1x32xf32> to vector<2x32xf32>
    %345 = arith.addf %328, %344 : vector<2x32xf32>
    %346 = arith.mulf %335, %345 : vector<2x32xf32>
    %347 = arith.addf %343, %346 : vector<2x32xf32>
    %348 = math.tanh %347 : vector<2x32xf32>
    %cst_207 = arith.constant 1.000000e+00 : f32
    %349 = vector.broadcast %cst_207 : f32 to vector<2x32xf32>
    %350 = arith.subf %349, %342 : vector<2x32xf32>
    %351 = arith.mulf %350, %348 : vector<2x32xf32>
    %352 = arith.mulf %342, %325 : vector<2x32xf32>
    %353 = arith.addf %351, %352 : vector<2x32xf32>
    %cst_208 = arith.constant dense<0.000000e+00> : vector<2x32xf32>
    %354 = tpu.matmul %353, %291, %cst_208 {dimension_numbers = #tpu.dot_dimension_numbers<[1], [0], [0], [1], [0, 0, 1, 1], [], []>} : vector<2x32xf32>, vector<32x32xf32>, vector<2x32xf32> -> vector<2x32xf32>
    %cst_209 = arith.constant dense<0.000000e+00> : vector<2x32xf32>
    %355 = tpu.matmul %353, %293, %cst_209 {dimension_numbers = #tpu.dot_dimension_numbers<[1], [0], [0], [1], [0, 0, 1, 1], [], []>} : vector<2x32xf32>, vector<32x32xf32>, vector<2x32xf32> -> vector<2x32xf32>
    %cst_210 = arith.constant dense<0.000000e+00> : vector<2x32xf32>
    %356 = tpu.matmul %353, %295, %cst_210 {dimension_numbers = #tpu.dot_dimension_numbers<[1], [0], [0], [1], [0, 0, 1, 1], [], []>} : vector<2x32xf32>, vector<32x32xf32>, vector<2x32xf32> -> vector<2x32xf32>
    %c4_211 = arith.constant 4 : index
    %c0_212 = arith.constant 0 : index
    %357 = vector.load %arg12[%c4_211, %c0_212] : memref<16x32xf32, #tpu.memory_space<vmem>>, vector<2x32xf32>
    %358 = arith.addf %357, %354 : vector<2x32xf32>
    %359 = arith.negf %358 : vector<2x32xf32>
    %360 = math.exp %359 : vector<2x32xf32>
    %cst_213 = arith.constant 1.000000e+00 : f32
    %361 = vector.broadcast %cst_213 : f32 to vector<2x32xf32>
    %362 = arith.addf %361, %360 : vector<2x32xf32>
    %363 = arith.divf %361, %362 : vector<2x32xf32>
    %c4_214 = arith.constant 4 : index
    %c0_215 = arith.constant 0 : index
    %364 = vector.load %arg13[%c4_214, %c0_215] : memref<16x32xf32, #tpu.memory_space<vmem>>, vector<2x32xf32>
    %365 = arith.addf %364, %355 : vector<2x32xf32>
    %366 = arith.negf %365 : vector<2x32xf32>
    %367 = math.exp %366 : vector<2x32xf32>
    %cst_216 = arith.constant 1.000000e+00 : f32
    %368 = vector.broadcast %cst_216 : f32 to vector<2x32xf32>
    %369 = arith.addf %368, %367 : vector<2x32xf32>
    %370 = arith.divf %368, %369 : vector<2x32xf32>
    %c4_217 = arith.constant 4 : index
    %c0_218 = arith.constant 0 : index
    %371 = vector.load %arg14[%c4_217, %c0_218] : memref<16x32xf32, #tpu.memory_space<vmem>>, vector<2x32xf32>
    %372 = vector.broadcast %296 : vector<1x32xf32> to vector<2x32xf32>
    %373 = arith.addf %356, %372 : vector<2x32xf32>
    %374 = arith.mulf %363, %373 : vector<2x32xf32>
    %375 = arith.addf %371, %374 : vector<2x32xf32>
    %376 = math.tanh %375 : vector<2x32xf32>
    %cst_219 = arith.constant 1.000000e+00 : f32
    %377 = vector.broadcast %cst_219 : f32 to vector<2x32xf32>
    %378 = arith.subf %377, %370 : vector<2x32xf32>
    %379 = arith.mulf %378, %376 : vector<2x32xf32>
    %380 = arith.mulf %370, %353 : vector<2x32xf32>
    %381 = arith.addf %379, %380 : vector<2x32xf32>
    %cst_220 = arith.constant dense<0.000000e+00> : vector<2x32xf32>
    %382 = tpu.matmul %381, %291, %cst_220 {dimension_numbers = #tpu.dot_dimension_numbers<[1], [0], [0], [1], [0, 0, 1, 1], [], []>} : vector<2x32xf32>, vector<32x32xf32>, vector<2x32xf32> -> vector<2x32xf32>
    %cst_221 = arith.constant dense<0.000000e+00> : vector<2x32xf32>
    %383 = tpu.matmul %381, %293, %cst_221 {dimension_numbers = #tpu.dot_dimension_numbers<[1], [0], [0], [1], [0, 0, 1, 1], [], []>} : vector<2x32xf32>, vector<32x32xf32>, vector<2x32xf32> -> vector<2x32xf32>
    %cst_222 = arith.constant dense<0.000000e+00> : vector<2x32xf32>
    %384 = tpu.matmul %381, %295, %cst_222 {dimension_numbers = #tpu.dot_dimension_numbers<[1], [0], [0], [1], [0, 0, 1, 1], [], []>} : vector<2x32xf32>, vector<32x32xf32>, vector<2x32xf32> -> vector<2x32xf32>
    %c6_223 = arith.constant 6 : index
    %c0_224 = arith.constant 0 : index
    %385 = vector.load %arg12[%c6_223, %c0_224] : memref<16x32xf32, #tpu.memory_space<vmem>>, vector<2x32xf32>
    %386 = arith.addf %385, %382 : vector<2x32xf32>
    %387 = arith.negf %386 : vector<2x32xf32>
    %388 = math.exp %387 : vector<2x32xf32>
    %cst_225 = arith.constant 1.000000e+00 : f32
    %389 = vector.broadcast %cst_225 : f32 to vector<2x32xf32>
    %390 = arith.addf %389, %388 : vector<2x32xf32>
    %391 = arith.divf %389, %390 : vector<2x32xf32>
    %c6_226 = arith.constant 6 : index
    %c0_227 = arith.constant 0 : index
    %392 = vector.load %arg13[%c6_226, %c0_227] : memref<16x32xf32, #tpu.memory_space<vmem>>, vector<2x32xf32>
    %393 = arith.addf %392, %383 : vector<2x32xf32>
    %394 = arith.negf %393 : vector<2x32xf32>
    %395 = math.exp %394 : vector<2x32xf32>
    %cst_228 = arith.constant 1.000000e+00 : f32
    %396 = vector.broadcast %cst_228 : f32 to vector<2x32xf32>
    %397 = arith.addf %396, %395 : vector<2x32xf32>
    %398 = arith.divf %396, %397 : vector<2x32xf32>
    %c6_229 = arith.constant 6 : index
    %c0_230 = arith.constant 0 : index
    %399 = vector.load %arg14[%c6_229, %c0_230] : memref<16x32xf32, #tpu.memory_space<vmem>>, vector<2x32xf32>
    %400 = vector.broadcast %296 : vector<1x32xf32> to vector<2x32xf32>
    %401 = arith.addf %384, %400 : vector<2x32xf32>
    %402 = arith.mulf %391, %401 : vector<2x32xf32>
    %403 = arith.addf %399, %402 : vector<2x32xf32>
    %404 = math.tanh %403 : vector<2x32xf32>
    %cst_231 = arith.constant 1.000000e+00 : f32
    %405 = vector.broadcast %cst_231 : f32 to vector<2x32xf32>
    %406 = arith.subf %405, %398 : vector<2x32xf32>
    %407 = arith.mulf %406, %404 : vector<2x32xf32>
    %408 = arith.mulf %398, %381 : vector<2x32xf32>
    %409 = arith.addf %407, %408 : vector<2x32xf32>
    %cst_232 = arith.constant dense<0.000000e+00> : vector<2x32xf32>
    %410 = tpu.matmul %409, %291, %cst_232 {dimension_numbers = #tpu.dot_dimension_numbers<[1], [0], [0], [1], [0, 0, 1, 1], [], []>} : vector<2x32xf32>, vector<32x32xf32>, vector<2x32xf32> -> vector<2x32xf32>
    %cst_233 = arith.constant dense<0.000000e+00> : vector<2x32xf32>
    %411 = tpu.matmul %409, %293, %cst_233 {dimension_numbers = #tpu.dot_dimension_numbers<[1], [0], [0], [1], [0, 0, 1, 1], [], []>} : vector<2x32xf32>, vector<32x32xf32>, vector<2x32xf32> -> vector<2x32xf32>
    %cst_234 = arith.constant dense<0.000000e+00> : vector<2x32xf32>
    %412 = tpu.matmul %409, %295, %cst_234 {dimension_numbers = #tpu.dot_dimension_numbers<[1], [0], [0], [1], [0, 0, 1, 1], [], []>} : vector<2x32xf32>, vector<32x32xf32>, vector<2x32xf32> -> vector<2x32xf32>
    %c8_235 = arith.constant 8 : index
    %c0_236 = arith.constant 0 : index
    %413 = vector.load %arg12[%c8_235, %c0_236] : memref<16x32xf32, #tpu.memory_space<vmem>>, vector<2x32xf32>
    %414 = arith.addf %413, %410 : vector<2x32xf32>
    %415 = arith.negf %414 : vector<2x32xf32>
    %416 = math.exp %415 : vector<2x32xf32>
    %cst_237 = arith.constant 1.000000e+00 : f32
    %417 = vector.broadcast %cst_237 : f32 to vector<2x32xf32>
    %418 = arith.addf %417, %416 : vector<2x32xf32>
    %419 = arith.divf %417, %418 : vector<2x32xf32>
    %c8_238 = arith.constant 8 : index
    %c0_239 = arith.constant 0 : index
    %420 = vector.load %arg13[%c8_238, %c0_239] : memref<16x32xf32, #tpu.memory_space<vmem>>, vector<2x32xf32>
    %421 = arith.addf %420, %411 : vector<2x32xf32>
    %422 = arith.negf %421 : vector<2x32xf32>
    %423 = math.exp %422 : vector<2x32xf32>
    %cst_240 = arith.constant 1.000000e+00 : f32
    %424 = vector.broadcast %cst_240 : f32 to vector<2x32xf32>
    %425 = arith.addf %424, %423 : vector<2x32xf32>
    %426 = arith.divf %424, %425 : vector<2x32xf32>
    %c8_241 = arith.constant 8 : index
    %c0_242 = arith.constant 0 : index
    %427 = vector.load %arg14[%c8_241, %c0_242] : memref<16x32xf32, #tpu.memory_space<vmem>>, vector<2x32xf32>
    %428 = vector.broadcast %296 : vector<1x32xf32> to vector<2x32xf32>
    %429 = arith.addf %412, %428 : vector<2x32xf32>
    %430 = arith.mulf %419, %429 : vector<2x32xf32>
    %431 = arith.addf %427, %430 : vector<2x32xf32>
    %432 = math.tanh %431 : vector<2x32xf32>
    %cst_243 = arith.constant 1.000000e+00 : f32
    %433 = vector.broadcast %cst_243 : f32 to vector<2x32xf32>
    %434 = arith.subf %433, %426 : vector<2x32xf32>
    %435 = arith.mulf %434, %432 : vector<2x32xf32>
    %436 = arith.mulf %426, %409 : vector<2x32xf32>
    %437 = arith.addf %435, %436 : vector<2x32xf32>
    %cst_244 = arith.constant dense<0.000000e+00> : vector<2x32xf32>
    %438 = tpu.matmul %437, %291, %cst_244 {dimension_numbers = #tpu.dot_dimension_numbers<[1], [0], [0], [1], [0, 0, 1, 1], [], []>} : vector<2x32xf32>, vector<32x32xf32>, vector<2x32xf32> -> vector<2x32xf32>
    %cst_245 = arith.constant dense<0.000000e+00> : vector<2x32xf32>
    %439 = tpu.matmul %437, %293, %cst_245 {dimension_numbers = #tpu.dot_dimension_numbers<[1], [0], [0], [1], [0, 0, 1, 1], [], []>} : vector<2x32xf32>, vector<32x32xf32>, vector<2x32xf32> -> vector<2x32xf32>
    %cst_246 = arith.constant dense<0.000000e+00> : vector<2x32xf32>
    %440 = tpu.matmul %437, %295, %cst_246 {dimension_numbers = #tpu.dot_dimension_numbers<[1], [0], [0], [1], [0, 0, 1, 1], [], []>} : vector<2x32xf32>, vector<32x32xf32>, vector<2x32xf32> -> vector<2x32xf32>
    %c10_247 = arith.constant 10 : index
    %c0_248 = arith.constant 0 : index
    %441 = vector.load %arg12[%c10_247, %c0_248] : memref<16x32xf32, #tpu.memory_space<vmem>>, vector<2x32xf32>
    %442 = arith.addf %441, %438 : vector<2x32xf32>
    %443 = arith.negf %442 : vector<2x32xf32>
    %444 = math.exp %443 : vector<2x32xf32>
    %cst_249 = arith.constant 1.000000e+00 : f32
    %445 = vector.broadcast %cst_249 : f32 to vector<2x32xf32>
    %446 = arith.addf %445, %444 : vector<2x32xf32>
    %447 = arith.divf %445, %446 : vector<2x32xf32>
    %c10_250 = arith.constant 10 : index
    %c0_251 = arith.constant 0 : index
    %448 = vector.load %arg13[%c10_250, %c0_251] : memref<16x32xf32, #tpu.memory_space<vmem>>, vector<2x32xf32>
    %449 = arith.addf %448, %439 : vector<2x32xf32>
    %450 = arith.negf %449 : vector<2x32xf32>
    %451 = math.exp %450 : vector<2x32xf32>
    %cst_252 = arith.constant 1.000000e+00 : f32
    %452 = vector.broadcast %cst_252 : f32 to vector<2x32xf32>
    %453 = arith.addf %452, %451 : vector<2x32xf32>
    %454 = arith.divf %452, %453 : vector<2x32xf32>
    %c10_253 = arith.constant 10 : index
    %c0_254 = arith.constant 0 : index
    %455 = vector.load %arg14[%c10_253, %c0_254] : memref<16x32xf32, #tpu.memory_space<vmem>>, vector<2x32xf32>
    %456 = vector.broadcast %296 : vector<1x32xf32> to vector<2x32xf32>
    %457 = arith.addf %440, %456 : vector<2x32xf32>
    %458 = arith.mulf %447, %457 : vector<2x32xf32>
    %459 = arith.addf %455, %458 : vector<2x32xf32>
    %460 = math.tanh %459 : vector<2x32xf32>
    %cst_255 = arith.constant 1.000000e+00 : f32
    %461 = vector.broadcast %cst_255 : f32 to vector<2x32xf32>
    %462 = arith.subf %461, %454 : vector<2x32xf32>
    %463 = arith.mulf %462, %460 : vector<2x32xf32>
    %464 = arith.mulf %454, %437 : vector<2x32xf32>
    %465 = arith.addf %463, %464 : vector<2x32xf32>
    %cst_256 = arith.constant dense<0.000000e+00> : vector<2x32xf32>
    %466 = tpu.matmul %465, %291, %cst_256 {dimension_numbers = #tpu.dot_dimension_numbers<[1], [0], [0], [1], [0, 0, 1, 1], [], []>} : vector<2x32xf32>, vector<32x32xf32>, vector<2x32xf32> -> vector<2x32xf32>
    %cst_257 = arith.constant dense<0.000000e+00> : vector<2x32xf32>
    %467 = tpu.matmul %465, %293, %cst_257 {dimension_numbers = #tpu.dot_dimension_numbers<[1], [0], [0], [1], [0, 0, 1, 1], [], []>} : vector<2x32xf32>, vector<32x32xf32>, vector<2x32xf32> -> vector<2x32xf32>
    %cst_258 = arith.constant dense<0.000000e+00> : vector<2x32xf32>
    %468 = tpu.matmul %465, %295, %cst_258 {dimension_numbers = #tpu.dot_dimension_numbers<[1], [0], [0], [1], [0, 0, 1, 1], [], []>} : vector<2x32xf32>, vector<32x32xf32>, vector<2x32xf32> -> vector<2x32xf32>
    %c12_259 = arith.constant 12 : index
    %c0_260 = arith.constant 0 : index
    %469 = vector.load %arg12[%c12_259, %c0_260] : memref<16x32xf32, #tpu.memory_space<vmem>>, vector<2x32xf32>
    %470 = arith.addf %469, %466 : vector<2x32xf32>
    %471 = arith.negf %470 : vector<2x32xf32>
    %472 = math.exp %471 : vector<2x32xf32>
    %cst_261 = arith.constant 1.000000e+00 : f32
    %473 = vector.broadcast %cst_261 : f32 to vector<2x32xf32>
    %474 = arith.addf %473, %472 : vector<2x32xf32>
    %475 = arith.divf %473, %474 : vector<2x32xf32>
    %c12_262 = arith.constant 12 : index
    %c0_263 = arith.constant 0 : index
    %476 = vector.load %arg13[%c12_262, %c0_263] : memref<16x32xf32, #tpu.memory_space<vmem>>, vector<2x32xf32>
    %477 = arith.addf %476, %467 : vector<2x32xf32>
    %478 = arith.negf %477 : vector<2x32xf32>
    %479 = math.exp %478 : vector<2x32xf32>
    %cst_264 = arith.constant 1.000000e+00 : f32
    %480 = vector.broadcast %cst_264 : f32 to vector<2x32xf32>
    %481 = arith.addf %480, %479 : vector<2x32xf32>
    %482 = arith.divf %480, %481 : vector<2x32xf32>
    %c12_265 = arith.constant 12 : index
    %c0_266 = arith.constant 0 : index
    %483 = vector.load %arg14[%c12_265, %c0_266] : memref<16x32xf32, #tpu.memory_space<vmem>>, vector<2x32xf32>
    %484 = vector.broadcast %296 : vector<1x32xf32> to vector<2x32xf32>
    %485 = arith.addf %468, %484 : vector<2x32xf32>
    %486 = arith.mulf %475, %485 : vector<2x32xf32>
    %487 = arith.addf %483, %486 : vector<2x32xf32>
    %488 = math.tanh %487 : vector<2x32xf32>
    %cst_267 = arith.constant 1.000000e+00 : f32
    %489 = vector.broadcast %cst_267 : f32 to vector<2x32xf32>
    %490 = arith.subf %489, %482 : vector<2x32xf32>
    %491 = arith.mulf %490, %488 : vector<2x32xf32>
    %492 = arith.mulf %482, %465 : vector<2x32xf32>
    %493 = arith.addf %491, %492 : vector<2x32xf32>
    %cst_268 = arith.constant dense<0.000000e+00> : vector<2x32xf32>
    %494 = tpu.matmul %493, %291, %cst_268 {dimension_numbers = #tpu.dot_dimension_numbers<[1], [0], [0], [1], [0, 0, 1, 1], [], []>} : vector<2x32xf32>, vector<32x32xf32>, vector<2x32xf32> -> vector<2x32xf32>
    %cst_269 = arith.constant dense<0.000000e+00> : vector<2x32xf32>
    %495 = tpu.matmul %493, %293, %cst_269 {dimension_numbers = #tpu.dot_dimension_numbers<[1], [0], [0], [1], [0, 0, 1, 1], [], []>} : vector<2x32xf32>, vector<32x32xf32>, vector<2x32xf32> -> vector<2x32xf32>
    %cst_270 = arith.constant dense<0.000000e+00> : vector<2x32xf32>
    %496 = tpu.matmul %493, %295, %cst_270 {dimension_numbers = #tpu.dot_dimension_numbers<[1], [0], [0], [1], [0, 0, 1, 1], [], []>} : vector<2x32xf32>, vector<32x32xf32>, vector<2x32xf32> -> vector<2x32xf32>
    %c14_271 = arith.constant 14 : index
    %c0_272 = arith.constant 0 : index
    %497 = vector.load %arg12[%c14_271, %c0_272] : memref<16x32xf32, #tpu.memory_space<vmem>>, vector<2x32xf32>
    %498 = arith.addf %497, %494 : vector<2x32xf32>
    %499 = arith.negf %498 : vector<2x32xf32>
    %500 = math.exp %499 : vector<2x32xf32>
    %cst_273 = arith.constant 1.000000e+00 : f32
    %501 = vector.broadcast %cst_273 : f32 to vector<2x32xf32>
    %502 = arith.addf %501, %500 : vector<2x32xf32>
    %503 = arith.divf %501, %502 : vector<2x32xf32>
    %c14_274 = arith.constant 14 : index
    %c0_275 = arith.constant 0 : index
    %504 = vector.load %arg13[%c14_274, %c0_275] : memref<16x32xf32, #tpu.memory_space<vmem>>, vector<2x32xf32>
    %505 = arith.addf %504, %495 : vector<2x32xf32>
    %506 = arith.negf %505 : vector<2x32xf32>
    %507 = math.exp %506 : vector<2x32xf32>
    %cst_276 = arith.constant 1.000000e+00 : f32
    %508 = vector.broadcast %cst_276 : f32 to vector<2x32xf32>
    %509 = arith.addf %508, %507 : vector<2x32xf32>
    %510 = arith.divf %508, %509 : vector<2x32xf32>
    %c14_277 = arith.constant 14 : index
    %c0_278 = arith.constant 0 : index
    %511 = vector.load %arg14[%c14_277, %c0_278] : memref<16x32xf32, #tpu.memory_space<vmem>>, vector<2x32xf32>
    %512 = vector.broadcast %296 : vector<1x32xf32> to vector<2x32xf32>
    %513 = arith.addf %496, %512 : vector<2x32xf32>
    %514 = arith.mulf %503, %513 : vector<2x32xf32>
    %515 = arith.addf %511, %514 : vector<2x32xf32>
    %516 = math.tanh %515 : vector<2x32xf32>
    %cst_279 = arith.constant 1.000000e+00 : f32
    %517 = vector.broadcast %cst_279 : f32 to vector<2x32xf32>
    %518 = arith.subf %517, %510 : vector<2x32xf32>
    %519 = arith.mulf %518, %516 : vector<2x32xf32>
    %520 = arith.mulf %510, %493 : vector<2x32xf32>
    %521 = arith.addf %519, %520 : vector<2x32xf32>
    %c0_280 = arith.constant 0 : index
    %c0_281 = arith.constant 0 : index
    %522 = vector.load %arg9[%c0_280, %c0_281] : memref<32x4xf32, #tpu.memory_space<vmem>>, vector<32x4xf32>
    %cst_282 = arith.constant dense<0.000000e+00> : vector<2x4xf32>
    %523 = tpu.matmul %521, %522, %cst_282 {dimension_numbers = #tpu.dot_dimension_numbers<[1], [0], [0], [1], [0, 0, 1, 1], [], []>} : vector<2x32xf32>, vector<32x4xf32>, vector<2x4xf32> -> vector<2x4xf32>
    %c0_283 = arith.constant 0 : index
    %c0_284 = arith.constant 0 : index
    %524 = vector.load %arg10[%c0_283, %c0_284] : memref<1x4xf32, #tpu.memory_space<vmem>>, vector<1x4xf32>
    %525 = vector.broadcast %524 : vector<1x4xf32> to vector<2x4xf32>
    %526 = arith.addf %523, %525 : vector<2x4xf32>
    %c0_285 = arith.constant 0 : index
    %c0_286 = arith.constant 0 : index
    %527 = vector.load %arg11[%c0_285, %c0_286] : memref<2x4xf32, #tpu.memory_space<vmem>>, vector<2x4xf32>
    tpu.vector_store %arg11[%c0_285, %c0_286], %526 {strides = array<i32>} : memref<2x4xf32, #tpu.memory_space<vmem>>, vector<2x4xf32>,
    return
  }
}

</mosaic_0001>

<bundles_post_ra>
// kernel: tpu_custom_call.1
= control target key start
LH: loop header
LB: loop body
LE: loop exit
PB: predicated region body
PF: predicated region fallthrough
CT: control target
= control target key end

     0   :  { %16 = vsyncpa [#allocation7], 0  ;;  %s3153_s0 = inlined_call_operand.vmem [shape: f32[16,8], index: 0, kind: input, shape index: {}]   ;;  %s3154_s1 = inlined_call_operand.vmem [shape: f32[3,8,32], index: 1, kind: input, shape index: {}]   ;;  %s3155_s2 = inlined_call_operand.hbm [shape: f32[3,32,32], index: 2, kind: input, shape index: {}]   ;;  %s3156_s3 = inlined_call_operand.vmem [shape: f32[3,1,32], index: 3, kind: input, shape index: {}]   ;;  %s3157_s4 = inlined_call_operand.vmem [shape: f32[1,32], index: 4, kind: input, shape index: {}]   ;;  %s3158_s5 = inlined_call_operand.hbm [shape: f32[3,32,32], index: 5, kind: input, shape index: {}]   ;;  %s3159_s6 = inlined_call_operand.hbm [shape: f32[3,32,32], index: 6, kind: input, shape index: {}]   ;;  %s3160_s7 = inlined_call_operand.vmem [shape: f32[3,1,32], index: 7, kind: input, shape index: {}]   ;;  %s3161_s8 = inlined_call_operand.vmem [shape: f32[1,32], index: 8, kind: input, shape index: {}]   ;;  %s3162_s9 = inlined_call_operand.vmem [shape: f32[32,4], index: 9, kind: input, shape index: {}]   ;;  %s3163_s10 = inlined_call_operand.vmem [shape: f32[1,4], index: 10, kind: input, shape index: {}]   ;;  %s3164_s11 = inlined_call_operand.hbm [shape: f32[2,4], index: 11, kind: output, shape index: {}]  }
   0x1   :  { %17 = vsyncpa [#allocation10], 0 }
   0x2   :  { %18 = vsyncpa [#allocation8], 0  ;;  %s44_s19 = sshll.u32 %s3158_s5, 4  ;;  %s2574_s20 = smov [#allocation9]   ;;  %s45_s19 = int_to_ptr.hbm [resolvable:$true] %s44_s19 }
   0x3   :  { %s46_s21 = sshll.u32 %s2574_s20, 4  ;;  %s27_s24 = sshll.u32 %s3155_s2, 4  ;;  %s47_s21 = int_to_ptr.vmem [resolvable:$true] %s46_s21  ;;  %s28_s24 = int_to_ptr.hbm [resolvable:$true] %s27_s24 }
   0x4   :  { %s2575_s25 = smov 128   ;;  %s2576_s26 = smov 8  }
   0x5   :  { %52 = dma.hbm_to_vmem [thread:$0]  %s45_s19, 1536, %s47_s21, [#allocation10], %s2575_s25, %s2575_s25, %s2576_s26  }
   0x6   :  { %s2577_s27 = smov [#allocation6]   ;;  %s57_s12 = sshll.u32 %s3159_s6, 4  ;;  %s58_s12 = int_to_ptr.hbm [resolvable:$true] %s57_s12 }
   0x7   :  { %s29_s28 = sshll.u32 %s2577_s27, 4  ;;  %s2578_s5 = smov [#allocation11]   ;;  %s30_s28 = int_to_ptr.vmem [resolvable:$true] %s29_s28 }
   0x8   :  { %35 = dma.hbm_to_vmem [thread:$0]  %s28_s24, 1536, %s30_s28, [#allocation7], %s2575_s25, %s2575_s25, %s2576_s26  }
   0x9   :  { %s59_s13 = sshll.u32 %s2578_s5, 4  ;;  %s60_s13 = int_to_ptr.vmem [resolvable:$true] %s59_s13 }
   0xa   :  { %65 = dma.hbm_to_vmem [thread:$0]  %s58_s12, 1536, %s60_s13, [#allocation10], %s2575_s25, %s2575_s25, %s2576_s26  }
   0xb   :  { %2568 = dma.done.wait [#allocation7], 1536  }
   0xc   :  { %2569 = vsyncadd [#allocation7], 4294965760 }
   0xd   :  { %2570 = dma.done.wait [#allocation10], 3072  }
   0xe   :  { %2571 = vsyncadd [#allocation10], 4294964224  ;;  %vm93_vm0 = vcmask 64512   ;;  %v2650_v0 = vld [vmem:[#allocation6 + $0x18] sm:$0xff]  ;;  %v88_v1 = vld [vmem:[%s3154_s1] sm:$0xff]  ;;  %v2579_v15 = vmov 0.0  }
   0xf   :  { %v2655_v2 = vld [vmem:[#allocation6 + $0x10] sm:$0xff]  ;;  %220 = vmatpush.msra.mxu3 %v2650_v0  ;;  %115 = vmatpush.msra.mxu0 %v88_v1  ;;  %v86_v3 = vld [vmem:[%s3153_s0] sm:$0xff]  ;;  %v2662_v4 = vld [vmem:[#allocation6 + $0x8] sm:$0xff]  ;;  %vm123_vm1 = vcmask 261120   ;;  %vm321_vm10 = vcmask 254976   ;;  %s2580_s21 = smov [#allocation12]  }
  0x10   :  { %2202 = vmatmul.msk.f32.vlgmr.msra.gmra.mxu0 %vm93_vm0, %v86_v3  ;;  %v2204_v5 = vld [vmem:[%s3154_s1 + $0x8] sm:$0xff]  ;;  %v2668_v6 = vld [vmem:[#allocation6] sm:$0xff]  ;;  %v2670_v7 = vld [vmem:[#allocation6 + $0x58] sm:$0xff]  ;;  %s2191_s23 = sshll.u32 %s3164_s11, 4  ;;  %s2192_s23 = int_to_ptr.hbm [resolvable:$true] %s2191_s23 }
  0x11   :  { %221 = vmatpush.msra.mxu3 %v2655_v2  ;;  %148 = vmatpush.msra.mxu1 %v2204_v5  ;;  %v2672_v8 = vld [vmem:[#allocation6 + $0x38] sm:$0xff]  ;;  %v2208_v9 = vld [vmem:[%s3154_s1 + $0x10] sm:$0xff]  ;;  %v87_v11 = vld [vmem:[%s3153_s0 + $0x8] sm:$0xff]  ;;  %s2189_s0 = sshll.u32 %s2580_s21, 4  ;;  %s2190_s0 = int_to_ptr.vmem [resolvable:$true] %s2189_s0 }
  0x12   :  { %2206 = vmatmul.msk.f32.vlgmr.msra.gmra.mxu1 %vm93_vm0, %v86_v3  ;;  %306 = vmatpush.msrb.mxu0 %v2670_v7  ;;  %v2679_v10 = vld [vmem:[#allocation6 + $0x50] sm:$0xff]  ;;  %v2685_v12 = vld [vmem:[#allocation6 + $0x48] sm:$0xff]  ;;  %v2691_v14 = vld [vmem:[#allocation6 + $0x40] sm:$0xff] }
  0x13   :  { %222 = vmatpush.msra.mxu3 %v2662_v4  ;;  %180 = vmatpush.msra.mxu2 %v2208_v9  ;;  %v2687_v13 = vld [vmem:[#allocation6 + $0x30] sm:$0xff]  ;;  %v2699_v16 = vld [vmem:[#allocation6 + $0x28] sm:$0xff]  ;;  %v2705_v17 = vld [vmem:[#allocation6 + $0x20] sm:$0xff] }
  0x14   :  { %2210 = vmatmul.msk.f32.vlgmr.msra.gmra.mxu2 %vm93_vm0, %v86_v3  ;;  %307 = vmatpush.msrb.mxu0 %v2679_v10  ;;  %v2302_v18 = vld [vmem:[%s3156_s3] ss:$0 sm:$0xff]  ;;  %v2303_v19 = vld [vmem:[%s3156_s3 + $0x1] ss:$0 sm:$0xff]  ;;  %v2304_v24 = vld [vmem:[%s3156_s3 + $0x2] ss:$0 sm:$0xff] }
  0x15   :  { %223 = vmatpush.msra.mxu3 %v2668_v6  ;;  %338 = vmatpush.msrb.mxu1 %v2650_v0  ;;  %v2760_v48 = vld [vmem:[%s3157_s4] ss:$0 sm:$0xff] }
  0x16   :  { %224 = vmatmul.f32.vlgmr.msra.gmra.mxu3 %v2579_v15  ;;  %308 = vmatpush.msrb.mxu0 %v2685_v12 }
  0x17   :  { %240 = vmatpush.msrb.mxu3 %v2672_v8  ;;  %358 = vmatpush.msrb.mxu2 %v2672_v8 }
  0x18   :  { %2203 = vmatmul.msk.f32.gmra.mxu0 %vm93_vm0, %v87_v11  ;;  %339 = vmatpush.msrb.mxu1 %v2655_v2 }
  0x19   :  { %241 = vmatpush.msrb.mxu3 %v2687_v13  ;;  %309 = vmatpush.msrb.mxu0 %v2691_v14 }
  0x1a   :  { %359 = vmatpush.msrb.mxu2 %v2687_v13  ;;  %2207 = vmatmul.msk.f32.gmra.mxu1 %vm93_vm0, %v87_v11 }
  0x1b   :  { %242 = vmatpush.msrb.mxu3 %v2699_v16  ;;  %340 = vmatpush.msrb.mxu1 %v2662_v4 }
  0x1c   :  { %2211 = vmatmul.msk.f32.gmra.mxu2 %vm93_vm0, %v87_v11  ;;  %452 = vmatpush.msra.mxu0 %v2650_v0 }
  0x1d   :  { %243 = vmatpush.msrb.mxu3 %v2705_v17  ;;  %360 = vmatpush.msrb.mxu2 %v2699_v16 }
  0x1e   :  { %244 = vmatmul.f32.vlgmr.msrb.gmra.mxu3 %v2579_v15  ;;  %341 = vmatpush.msrb.mxu1 %v2668_v6 }
  0x1f   :  { %421 = vmatpush.msra.mxu3 %v2670_v7  ;;  %361 = vmatpush.msrb.mxu2 %v2705_v17 }
  0x20   :  { %310 = vmatmul.f32.vlgmr.msrb.gmra.mxu0 %v2579_v15  ;;  %472 = vmatpush.msra.mxu1 %v2672_v8 }
  0x21   :  { %422 = vmatpush.msra.mxu3 %v2679_v10  ;;  %535 = vmatpush.msra.mxu2 %v2670_v7 }
  0x22   :  { %453 = vmatpush.msra.mxu0 %v2655_v2  ;;  %473 = vmatpush.msra.mxu1 %v2687_v13 }
  0x23   :  { %423 = vmatpush.msra.mxu3 %v2685_v12  ;;  %536 = vmatpush.msra.mxu2 %v2679_v10 }
  0x24   :  { %454 = vmatpush.msra.mxu0 %v2662_v4  ;;  %474 = vmatpush.msra.mxu1 %v2699_v16 }
  0x25   :  { %424 = vmatpush.msra.mxu3 %v2691_v14  ;;  %537 = vmatpush.msra.mxu2 %v2685_v12 }
  0x26   :  { %455 = vmatpush.msra.mxu0 %v2668_v6  ;;  %475 = vmatpush.msra.mxu1 %v2705_v17 }
  0x27   :  { %538 = vmatpush.msra.mxu2 %v2691_v14  ;;  %566 = vmatpush.msrb.mxu3 %v2650_v0 }
  0x28   :  { %586 = vmatpush.msrb.mxu0 %v2672_v8 }
  0x29   :  { %567 = vmatpush.msrb.mxu3 %v2655_v2 }
  0x2a   :  { %587 = vmatpush.msrb.mxu0 %v2687_v13 }
  0x2b   :  { %568 = vmatpush.msrb.mxu3 %v2662_v4 }
  0x2c   :  { %588 = vmatpush.msrb.mxu0 %v2699_v16 }
  0x2d   :  { %569 = vmatpush.msrb.mxu3 %v2668_v6 }
  0x2e   :  { %589 = vmatpush.msrb.mxu0 %v2705_v17 }
  0x8d   :  { %v117_v20 = vpop.f32.mrf.mxu0 }
  0x8e   :  { %v118_v21 = vadd.f32 %v2302_v18, %v117_v20 }
  0x8f   :  { %v150_v22 = vpop.f32.mrf.mxu1 }
  0x90   :  { %124 = vst.msk [vmem:[#allocation2] sm:$0xff] %vm123_vm1, %v118_v21  ;;  %v151_v23 = vadd.f32 %v2303_v19, %v150_v22 }
  0x92   :  { %156 = vst.msk [vmem:[#allocation3] sm:$0xff] %vm123_vm1, %v151_v23 }
  0x95   :  { %v120_v25 = vpop.f32.mrf.mxu0 }
  0x96   :  { %v121_v26 = vadd.f32 %v2302_v18, %v120_v25 }
  0x97   :  { %v248_v27 = vld [vmem:[#allocation2] sm:$0x3]  ;;  %v182_v28 = vpop.f32.mrf.mxu2  ;;  %v153_v39 = vpop.f32.mrf.mxu1 }
  0x98   :  { %125 = vst.msk [vmem:[#allocation2 + $0x8] sm:$0xff] %vm123_vm1, %v121_v26  ;;  %v183_v29 = vadd.f32 %v2304_v24, %v182_v28  ;;  %v154_v41 = vadd.f32 %v2303_v19, %v153_v39  ;;  %v366_v26 = vld [vmem:[#allocation2 + $0x2] sm:$0x3] }
  0x99   :  { %v225_v30 = vpop.f32.mrf.mxu3  ;;  %v269_v33 = vld [vmem:[#allocation3] sm:$0x3] }
  0x9a   :  { %v249_v31 = vadd.f32 %v248_v27, %v225_v30  ;;  %188 = vst.msk [vmem:[#allocation4] sm:$0xff] %vm123_vm1, %v183_v29  ;;  %v387_v30 = vld [vmem:[#allocation3 + $0x2] sm:$0x3] }
  0x9b   :  { %157 = vst.msk [vmem:[#allocation3 + $0x8] sm:$0xff] %vm123_vm1, %v154_v41 }
  0x9c   :  { %v2212_v32 = vmul.f32 -1.442695, %v249_v31 }
  0x9d   :  { %v311_v50 = vpop.f32.mrf.mxu0 }
  0x9e   :  { %2311 = vpow2.f32 %v2212_v32  ;;  %v312_v54 = vadd.f32 %v2760_v48, %v311_v50 }
  0x9f   :  { %v185_v40 = vpop.f32.mrf.mxu2 }
  0xa0   :  { %v186_v42 = vadd.f32 %v2304_v24, %v185_v40 }
  0xa1   :  { %v245_v34 = vpop.f32.mrf.mxu3  ;;  %v290_v60 = vld [vmem:[#allocation4] sm:$0x3] }
  0xa2   :  { %v270_v35 = vadd.f32 %v269_v33, %v245_v34  ;;  %189 = vst.msk [vmem:[#allocation4 + $0x8] sm:$0xff] %vm123_vm1, %v186_v42 }
  0xa4   :  { %v2312_v36 = vpop.eup %2311  ;;  %v2213_v37 = vmul.f32 -1.442695, %v270_v35 }
  0xa5   :  { %v253_v38 = vadd.f32 1.0, %v2312_v36 }
  0xa6   :  { %2313 = vpow2.f32 %v2213_v37 }
  0xa7   :  { %2315 = vrcp.f32 %v253_v38  ;;  %v265_v49 = vand.u32 2147483648, %v253_v38  ;;  %v263_v52 = vand.u32 2147483647, %v253_v38  ;;  %vm259_vm3 = vweird.f32 %v253_v38 }
  0xa9   :  { %v266_v56 = vor.u32 1.1754944e-38, %v265_v49  ;;  %vm264_vm5 = vcmp.eq.f32.partialorder %v263_v52, 8.507059e+37 }
  0xac   :  { %v2314_v43 = vpop.eup %2313 }
  0xad   :  { %v2316_v44 = vpop.eup %2315  ;;  %v274_v45 = vadd.f32 1.0, %v2314_v43 }
  0xae   :  { %v255_v46 = vmul.f32 %v2316_v44, %v253_v38  ;;  %vm260_vm2 = vweird.f32 %v2316_v44 }
  0xaf   :  { %2317 = vrcp.f32 %v274_v45  ;;  %vm261_vm4 = vmor %vm259_vm3, %vm260_vm2  ;;  %v286_v63 = vand.u32 2147483648, %v274_v45  ;;  %v284_v3 = vand.u32 2147483647, %v274_v45  ;;  %vm280_vm7 = vweird.f32 %v274_v45 }
  0xb0   :  { %v256_v47 = vsub.f32 1.0, %v255_v46 }
  0xb1   :  { %v287_v11 = vor.u32 1.1754944e-38, %v286_v63  ;;  %vm285_vm9 = vcmp.eq.f32.partialorder %v284_v3, 8.507059e+37 }
  0xb2   :  { %v257_v51 = vmul.f32 %v2316_v44, %v256_v47 }
  0xb4   :  { %v258_v53 = vadd.f32 %v2316_v44, %v257_v51 }
  0xb5   :  { %v2318_v55 = vpop.eup %2317 }
  0xb6   :  { %v276_v57 = vmul.f32 %v2318_v55, %v274_v45  ;;  %v262_v58 = vsel %vm261_vm4, %v2316_v44, %v258_v53  ;;  %vm281_vm6 = vweird.f32 %v2318_v55 }
  0xb7   :  { %v267_v59 = vsel %vm264_vm5, %v266_v56, %v262_v58  ;;  %vm282_vm8 = vmor %vm280_vm7, %vm281_vm6 }
  0xb8   :  { %v277_v61 = vsub.f32 1.0, %v276_v57  ;;  %v314_v62 = vmul.f32 %v312_v54, %v267_v59  ;;  %v408_v57 = vld [vmem:[#allocation4 + $0x2] sm:$0x3] }
  0xba   :  { %v278_v1 = vmul.f32 %v2318_v55, %v277_v61  ;;  %v315_v5 = vadd.f32 %v314_v62, %v290_v60 }
  0xbc   :  { %v279_v9 = vadd.f32 %v2318_v55, %v278_v1  ;;  %2319 = vtanh.f32 %v315_v5 }
  0xbe   :  { %v283_v18 = vsel %vm282_vm8, %v2318_v55, %v279_v9 }
  0xbf   :  { %v288_v19 = vsel %vm285_vm9, %v287_v11, %v283_v18  ;;  %v480_v18 = vld [vmem:[#allocation2 + $0x4] sm:$0x3] }
  0xc0   :  { %v317_v20 = vsub.f32 1.0, %v288_v19  ;;  %v319_v23 = vmul.f32 0.0, %v288_v19 }
  0xc2   :  { %v2320_v21 = vpop.eup %2319 }
  0xc3   :  { %v318_v22 = vmul.f32 %v2320_v21, %v317_v20  ;;  %v501_v20 = vld [vmem:[#allocation3 + $0x4] sm:$0x3] }
  0xc5   :  { %v2763_v24 = vadd.f32 %v319_v23, %v318_v22 }
  0xc7   :  { %322 = vst.msk [vmem:[#allocation5] sm:$0x3] %vm321_vm10, %v2763_v24  ;;  %2214 = vmatmul.msk.f32.vlgmr.msrb.gmra.mxu1 %vm123_vm1, %v2763_v24  ;;  %2215 = vmatmul.msk.f32.vlgmr.msrb.gmra.mxu2 %vm123_vm1, %v2763_v24 }
  0xc8   :  { %2218 = vmatmul.msk.f32.vlgmr.msra.gmra.mxu3 %vm123_vm1, %v2763_v24  ;;  %649 = vmatpush.msrb.mxu1 %v2670_v7 }
  0xc9   :  { %680 = vmatpush.msrb.mxu2 %v2650_v0  ;;  %700 = vmatpush.msra.mxu3 %v2672_v8 }
  0xca   :  { %650 = vmatpush.msrb.mxu1 %v2679_v10 }
  0xcb   :  { %681 = vmatpush.msrb.mxu2 %v2655_v2  ;;  %701 = vmatpush.msra.mxu3 %v2687_v13 }
  0xcc   :  { %651 = vmatpush.msrb.mxu1 %v2685_v12 }
  0xcd   :  { %682 = vmatpush.msrb.mxu2 %v2662_v4  ;;  %702 = vmatpush.msra.mxu3 %v2699_v16 }
  0xce   :  { %652 = vmatpush.msrb.mxu1 %v2691_v14 }
  0xcf   :  { %683 = vmatpush.msrb.mxu2 %v2668_v6  ;;  %703 = vmatpush.msra.mxu3 %v2705_v17 }
 0x144   :  { %v343_v25 = vpop.f32.mrf.mxu1 }
 0x145   :  { %v367_v27 = vadd.f32 %v366_v26, %v343_v25 }
 0x147   :  { %v2216_v28 = vmul.f32 -1.442695, %v367_v27 }
 0x149   :  { %2321 = vpow2.f32 %v2216_v28 }
 0x14a   :  { %v363_v29 = vpop.f32.mrf.mxu2 }
 0x14b   :  { %v388_v31 = vadd.f32 %v387_v30, %v363_v29  ;;  %v426_v44 = vpop.f32.mrf.mxu3 }
 0x14c   :  { %v427_v51 = vadd.f32 %v2760_v48, %v426_v44 }
 0x14d   :  { %v2217_v32 = vmul.f32 -1.442695, %v388_v31 }
 0x14f   :  { %v2322_v33 = vpop.eup %2321  ;;  %2323 = vpow2.f32 %v2217_v32 }
 0x150   :  { %v371_v34 = vadd.f32 1.0, %v2322_v33 }
 0x152   :  { %2325 = vrcp.f32 %v371_v34  ;;  %v383_v40 = vand.u32 2147483648, %v371_v34  ;;  %v381_v42 = vand.u32 2147483647, %v371_v34  ;;  %vm377_vm12 = vweird.f32 %v371_v34 }
 0x154   :  { %v384_v47 = vor.u32 1.1754944e-38, %v383_v40  ;;  %vm382_vm14 = vcmp.eq.f32.partialorder %v381_v42, 8.507059e+37 }
 0x155   :  { %v2324_v35 = vpop.eup %2323 }
 0x156   :  { %v392_v36 = vadd.f32 1.0, %v2324_v35 }
 0x158   :  { %v2326_v37 = vpop.eup %2325  ;;  %2327 = vrcp.f32 %v392_v36  ;;  %v404_v54 = vand.u32 2147483648, %v392_v36  ;;  %v402_v56 = vand.u32 2147483647, %v392_v36  ;;  %vm398_vm0 = vweird.f32 %v392_v36 }
 0x159   :  { %v373_v38 = vmul.f32 %v2326_v37, %v371_v34  ;;  %vm378_vm11 = vweird.f32 %v2326_v37 }
 0x15a   :  { %vm379_vm13 = vmor %vm377_vm12, %vm378_vm11  ;;  %v405_v60 = vor.u32 1.1754944e-38, %v404_v54  ;;  %vm403_vm3 = vcmp.eq.f32.partialorder %v402_v56, 8.507059e+37 }
 0x15b   :  { %v374_v39 = vsub.f32 1.0, %v373_v38 }
 0x15d   :  { %v375_v41 = vmul.f32 %v2326_v37, %v374_v39 }
 0x15e   :  { %v2328_v43 = vpop.eup %2327 }
 0x15f   :  { %v394_v45 = vmul.f32 %v2328_v43, %v392_v36  ;;  %v376_v46 = vadd.f32 %v2326_v37, %v375_v41  ;;  %vm399_vm15 = vweird.f32 %v2328_v43 }
 0x160   :  { %vm400_vm2 = vmor %vm398_vm0, %vm399_vm15 }
 0x161   :  { %v395_v49 = vsub.f32 1.0, %v394_v45  ;;  %v380_v50 = vsel %vm379_vm13, %v2326_v37, %v376_v46 }
 0x162   :  { %v385_v52 = vsel %vm382_vm14, %v384_v47, %v380_v50  ;;  %v522_v50 = vld [vmem:[#allocation4 + $0x4] sm:$0x3] }
 0x163   :  { %v396_v53 = vmul.f32 %v2328_v43, %v395_v49  ;;  %v429_v55 = vmul.f32 %v427_v51, %v385_v52 }
 0x165   :  { %v397_v58 = vadd.f32 %v2328_v43, %v396_v53  ;;  %v430_v59 = vadd.f32 %v429_v55, %v408_v57 }
 0x167   :  { %v401_v61 = vsel %vm400_vm2, %v2328_v43, %v397_v58  ;;  %2329 = vtanh.f32 %v430_v59 }
 0x168   :  { %v406_v62 = vsel %vm403_vm3, %v405_v60, %v401_v61  ;;  %v615_v61 = vld [vmem:[#allocation3 + $0x6] sm:$0x3] }
 0x169   :  { %v432_v63 = vsub.f32 1.0, %v406_v62  ;;  %v434_v5 = vmul.f32 %v406_v62, %v2763_v24 }
 0x16d   :  { %v2330_v1 = vpop.eup %2329 }
 0x16e   :  { %v433_v3 = vmul.f32 %v2330_v1, %v432_v63 }
 0x170   :  { %v2787_v9 = vadd.f32 %v434_v5, %v433_v3  ;;  %v594_v3 = vld [vmem:[#allocation2 + $0x6] sm:$0x3] }
 0x172   :  { %436 = vst.msk [vmem:[#allocation5 + $0x2] sm:$0x3] %vm321_vm10, %v2787_v9  ;;  %2219 = vmatmul.msk.f32.vlgmr.msra.gmra.mxu0 %vm123_vm1, %v2787_v9  ;;  %2220 = vmatmul.msk.f32.vlgmr.msra.gmra.mxu1 %vm123_vm1, %v2787_v9 }
 0x173   :  { %2223 = vmatmul.msk.f32.vlgmr.msra.gmra.mxu2 %vm123_vm1, %v2787_v9  ;;  %763 = vmatpush.msra.mxu0 %v2670_v7 }
 0x174   :  { %794 = vmatpush.msra.mxu1 %v2650_v0  ;;  %814 = vmatpush.msra.mxu2 %v2672_v8 }
 0x175   :  { %764 = vmatpush.msra.mxu0 %v2679_v10 }
 0x176   :  { %795 = vmatpush.msra.mxu1 %v2655_v2  ;;  %815 = vmatpush.msra.mxu2 %v2687_v13 }
 0x177   :  { %765 = vmatpush.msra.mxu0 %v2685_v12 }
 0x178   :  { %796 = vmatpush.msra.mxu1 %v2662_v4  ;;  %816 = vmatpush.msra.mxu2 %v2699_v16 }
 0x179   :  { %766 = vmatpush.msra.mxu0 %v2691_v14 }
 0x17a   :  { %797 = vmatpush.msra.mxu1 %v2668_v6  ;;  %817 = vmatpush.msra.mxu2 %v2705_v17 }
 0x1ef   :  { %v457_v11 = vpop.f32.mrf.mxu0  ;;  %v477_v19 = vpop.f32.mrf.mxu1 }
 0x1f0   :  { %v481_v21 = vadd.f32 %v480_v18, %v457_v11  ;;  %v502_v22 = vadd.f32 %v501_v20, %v477_v19 }
 0x1f2   :  { %v2221_v23 = vmul.f32 -1.442695, %v481_v21  ;;  %v2222_v24 = vmul.f32 -1.442695, %v502_v22 }
 0x1f4   :  { %2331 = vpow2.f32 %v2221_v23 }
 0x1f5   :  { %2333 = vpow2.f32 %v2222_v24 }
 0x1f6   :  { %v540_v39 = vpop.f32.mrf.mxu2 }
 0x1f7   :  { %v541_v43 = vadd.f32 %v2760_v48, %v540_v39 }
 0x1fa   :  { %v2332_v25 = vpop.eup %2331 }
 0x1fb   :  { %v2334_v26 = vpop.eup %2333  ;;  %v485_v27 = vadd.f32 1.0, %v2332_v25 }
 0x1fc   :  { %v506_v28 = vadd.f32 1.0, %v2334_v26 }
 0x1fd   :  { %2335 = vrcp.f32 %v485_v27  ;;  %v497_v35 = vand.u32 2147483648, %v485_v27  ;;  %v495_v37 = vand.u32 2147483647, %v485_v27  ;;  %vm491_vm5 = vweird.f32 %v485_v27 }
 0x1fe   :  { %2337 = vrcp.f32 %v506_v28  ;;  %v518_v46 = vand.u32 2147483648, %v506_v28  ;;  %vm512_vm9 = vweird.f32 %v506_v28  ;;  %v516_v49 = vand.u32 2147483647, %v506_v28 }
 0x1ff   :  { %v498_v41 = vor.u32 1.1754944e-38, %v497_v35  ;;  %vm496_vm7 = vcmp.eq.f32.partialorder %v495_v37, 8.507059e+37 }
 0x200   :  { %v519_v53 = vor.u32 1.1754944e-38, %v518_v46  ;;  %vm517_vm12 = vcmp.eq.f32.partialorder %v516_v49, 8.507059e+37 }
 0x203   :  { %v2336_v29 = vpop.eup %2335 }
 0x204   :  { %v2338_v30 = vpop.eup %2337  ;;  %v487_v31 = vmul.f32 %v2336_v29, %v485_v27  ;;  %vm492_vm4 = vweird.f32 %v2336_v29 }
 0x205   :  { %v508_v32 = vmul.f32 %v2338_v30, %v506_v28  ;;  %vm493_vm6 = vmor %vm491_vm5, %vm492_vm4  ;;  %vm513_vm8 = vweird.f32 %v2338_v30 }
 0x206   :  { %v488_v33 = vsub.f32 1.0, %v487_v31  ;;  %vm514_vm11 = vmor %vm512_vm9, %vm513_vm8 }
 0x207   :  { %v509_v34 = vsub.f32 1.0, %v508_v32 }
 0x208   :  { %v489_v36 = vmul.f32 %v2336_v29, %v488_v33 }
 0x209   :  { %v510_v38 = vmul.f32 %v2338_v30, %v509_v34 }
 0x20a   :  { %v490_v40 = vadd.f32 %v2336_v29, %v489_v36 }
 0x20b   :  { %v511_v44 = vadd.f32 %v2338_v30, %v510_v38 }
 0x20c   :  { %v494_v42 = vsel %vm493_vm6, %v2336_v29, %v490_v40 }
 0x20d   :  { %v499_v45 = vsel %vm496_vm7, %v498_v41, %v494_v42  ;;  %v515_v52 = vsel %vm514_vm11, %v2338_v30, %v511_v44  ;;  %v636_v41 = vld [vmem:[#allocation4 + $0x6] sm:$0x3] }
 0x20e   :  { %v543_v47 = vmul.f32 %v541_v43, %v499_v45  ;;  %v520_v54 = vsel %vm517_vm12, %v519_v53, %v515_v52  ;;  %v729_v53 = vld [vmem:[#allocation3 + $0x8] sm:$0x3] }
 0x20f   :  { %v546_v55 = vsub.f32 1.0, %v520_v54  ;;  %v548_v58 = vmul.f32 %v520_v54, %v2787_v9 }
 0x210   :  { %v544_v51 = vadd.f32 %v543_v47, %v522_v50 }
 0x212   :  { %2339 = vtanh.f32 %v544_v51 }
 0x218   :  { %v2340_v56 = vpop.eup %2339 }
 0x219   :  { %v547_v57 = vmul.f32 %v2340_v56, %v546_v55 }
 0x21b   :  { %v2811_v59 = vadd.f32 %v548_v58, %v547_v57 }
 0x21d   :  { %550 = vst.msk [vmem:[#allocation5 + $0x4] sm:$0x3] %vm321_vm10, %v2811_v59  ;;  %2224 = vmatmul.msk.f32.vlgmr.msrb.gmra.mxu3 %vm123_vm1, %v2811_v59  ;;  %2225 = vmatmul.msk.f32.vlgmr.msrb.gmra.mxu0 %vm123_vm1, %v2811_v59 }
 0x21e   :  { %2228 = vmatmul.msk.f32.vlgmr.msrb.gmra.mxu1 %vm123_vm1, %v2811_v59  ;;  %877 = vmatpush.msrb.mxu3 %v2670_v7 }
 0x21f   :  { %908 = vmatpush.msrb.mxu0 %v2650_v0  ;;  %928 = vmatpush.msrb.mxu1 %v2672_v8 }
 0x220   :  { %878 = vmatpush.msrb.mxu3 %v2679_v10 }
 0x221   :  { %909 = vmatpush.msrb.mxu0 %v2655_v2  ;;  %929 = vmatpush.msrb.mxu1 %v2687_v13 }
 0x222   :  { %879 = vmatpush.msrb.mxu3 %v2685_v12 }
 0x223   :  { %910 = vmatpush.msrb.mxu0 %v2662_v4  ;;  %930 = vmatpush.msrb.mxu1 %v2699_v16 }
 0x224   :  { %880 = vmatpush.msrb.mxu3 %v2691_v14 }
 0x225   :  { %911 = vmatpush.msrb.mxu0 %v2668_v6  ;;  %931 = vmatpush.msrb.mxu1 %v2705_v17 }
 0x29a   :  { %v591_v60 = vpop.f32.mrf.mxu0 }
 0x29b   :  { %v616_v62 = vadd.f32 %v615_v61, %v591_v60  ;;  %v654_v31 = vpop.f32.mrf.mxu1 }
 0x29c   :  { %v655_v34 = vadd.f32 %v2760_v48, %v654_v31 }
 0x29d   :  { %v2227_v63 = vmul.f32 -1.442695, %v616_v62 }
 0x29f   :  { %2341 = vpow2.f32 %v2227_v63 }
 0x2a0   :  { %v571_v1 = vpop.f32.mrf.mxu3 }
 0x2a1   :  { %v595_v5 = vadd.f32 %v594_v3, %v571_v1 }
 0x2a3   :  { %v2226_v9 = vmul.f32 -1.442695, %v595_v5 }
 0x2a5   :  { %v2342_v11 = vpop.eup %2341  ;;  %2343 = vpow2.f32 %v2226_v9 }
 0x2a6   :  { %v620_v18 = vadd.f32 1.0, %v2342_v11 }
 0x2a8   :  { %2345 = vrcp.f32 %v620_v18  ;;  %v632_v38 = vand.u32 2147483648, %v620_v18  ;;  %vm626_vm3 = vweird.f32 %v620_v18  ;;  %v630_v40 = vand.u32 2147483647, %v620_v18 }
 0x2aa   :  { %v633_v44 = vor.u32 1.1754944e-38, %v632_v38  ;;  %vm631_vm5 = vcmp.eq.f32.partialorder %v630_v40, 8.507059e+37  ;;  %v843_v40 = vld [vmem:[#allocation3 + $0xa] sm:$0x3] }
 0x2ab   :  { %v2344_v19 = vpop.eup %2343 }
 0x2ac   :  { %v599_v20 = vadd.f32 1.0, %v2344_v19 }
 0x2ae   :  { %2347 = vrcp.f32 %v599_v20  ;;  %v2346_v21 = vpop.eup %2345  ;;  %v611_v27 = vand.u32 2147483648, %v599_v20  ;;  %v609_v29 = vand.u32 2147483647, %v599_v20  ;;  %vm605_vm14 = vweird.f32 %v599_v20 }
 0x2af   :  { %v622_v22 = vmul.f32 %v2346_v21, %v620_v18  ;;  %vm627_vm2 = vweird.f32 %v2346_v21 }
 0x2b0   :  { %v612_v33 = vor.u32 1.1754944e-38, %v611_v27  ;;  %vm610_vm0 = vcmp.eq.f32.partialorder %v609_v29, 8.507059e+37  ;;  %vm628_vm4 = vmor %vm626_vm3, %vm627_vm2 }
 0x2b1   :  { %v623_v25 = vsub.f32 1.0, %v622_v22 }
 0x2b3   :  { %v624_v30 = vmul.f32 %v2346_v21, %v623_v25  ;;  %v750_v25 = vld [vmem:[#allocation4 + $0x8] sm:$0x3] }
 0x2b4   :  { %v2348_v23 = vpop.eup %2347 }
 0x2b5   :  { %v601_v24 = vmul.f32 %v2348_v23, %v599_v20  ;;  %vm606_vm13 = vweird.f32 %v2348_v23  ;;  %v625_v36 = vadd.f32 %v2346_v21, %v624_v30 }
 0x2b6   :  { %vm607_vm15 = vmor %vm605_vm14, %vm606_vm13 }
 0x2b7   :  { %v602_v26 = vsub.f32 1.0, %v601_v24  ;;  %v629_v43 = vsel %vm628_vm4, %v2346_v21, %v625_v36  ;;  %v822_v36 = vld [vmem:[#allocation2 + $0xa] sm:$0x3] }
 0x2b8   :  { %v634_v45 = vsel %vm631_vm5, %v633_v44, %v629_v43 }
 0x2b9   :  { %v603_v28 = vmul.f32 %v2348_v23, %v602_v26  ;;  %v660_v46 = vsub.f32 1.0, %v634_v45  ;;  %v662_v50 = vmul.f32 %v634_v45, %v2811_v59  ;;  %v1125_v45 = vld [vmem:[#allocation9 + $0x10] sm:$0xff] }
 0x2bb   :  { %v604_v32 = vadd.f32 %v2348_v23, %v603_v28 }
 0x2bd   :  { %v608_v35 = vsel %vm607_vm15, %v2348_v23, %v604_v32 }
 0x2be   :  { %v613_v37 = vsel %vm610_vm0, %v612_v33, %v608_v35 }
 0x2bf   :  { %v657_v39 = vmul.f32 %v655_v34, %v613_v37 }
 0x2c1   :  { %v658_v42 = vadd.f32 %v657_v39, %v636_v41 }
 0x2c3   :  { %2349 = vtanh.f32 %v658_v42 }
 0x2c9   :  { %v2350_v47 = vpop.eup %2349 }
 0x2ca   :  { %v661_v49 = vmul.f32 %v2350_v47, %v660_v46 }
 0x2cc   :  { %v2835_v51 = vadd.f32 %v662_v50, %v661_v49 }
 0x2ce   :  { %664 = vst.msk [vmem:[#allocation5 + $0x6] sm:$0x3] %vm321_vm10, %v2835_v51  ;;  %2229 = vmatmul.msk.f32.vlgmr.msrb.gmra.mxu2 %vm123_vm1, %v2835_v51  ;;  %2230 = vmatmul.msk.f32.vlgmr.msra.gmra.mxu3 %vm123_vm1, %v2835_v51 }
 0x2cf   :  { %2233 = vmatmul.msk.f32.vlgmr.msra.gmra.mxu0 %vm123_vm1, %v2835_v51  ;;  %991 = vmatpush.msrb.mxu2 %v2670_v7 }
 0x2d0   :  { %1022 = vmatpush.msra.mxu3 %v2650_v0  ;;  %1042 = vmatpush.msra.mxu0 %v2672_v8  ;;  %v708_v8 = vld [vmem:[#allocation2 + $0x8] sm:$0x3] }
 0x2d1   :  { %992 = vmatpush.msrb.mxu2 %v2679_v10 }
 0x2d2   :  { %1023 = vmatpush.msra.mxu3 %v2655_v2  ;;  %1043 = vmatpush.msra.mxu0 %v2687_v13 }
 0x2d3   :  { %993 = vmatpush.msrb.mxu2 %v2685_v12 }
 0x2d4   :  { %1024 = vmatpush.msra.mxu3 %v2662_v4  ;;  %1044 = vmatpush.msra.mxu0 %v2699_v16 }
 0x2d5   :  { %994 = vmatpush.msrb.mxu2 %v2691_v14 }
 0x2d6   :  { %1025 = vmatpush.msra.mxu3 %v2668_v6  ;;  %1045 = vmatpush.msra.mxu0 %v2705_v17 }
 0x34c   :  { %v768_v3 = vpop.f32.mrf.mxu0 }
 0x34d   :  { %v769_v18 = vadd.f32 %v2760_v48, %v768_v3 }
 0x351   :  { %v685_v0 = vpop.f32.mrf.mxu2  ;;  %v705_v52 = vpop.f32.mrf.mxu3 }
 0x352   :  { %v709_v54 = vadd.f32 %v708_v8, %v685_v0  ;;  %v730_v2 = vadd.f32 %v729_v53, %v705_v52 }
 0x354   :  { %v2231_v55 = vmul.f32 -1.442695, %v709_v54  ;;  %v2232_v13 = vmul.f32 -1.442695, %v730_v2 }
 0x356   :  { %2351 = vpow2.f32 %v2231_v55 }
 0x357   :  { %2353 = vpow2.f32 %v2232_v13 }
 0x35c   :  { %v2352_v56 = vpop.eup %2351 }
 0x35d   :  { %v2354_v4 = vpop.eup %2353  ;;  %v713_v57 = vadd.f32 1.0, %v2352_v56 }
 0x35e   :  { %v734_v16 = vadd.f32 1.0, %v2354_v4 }
 0x35f   :  { %2355 = vrcp.f32 %v713_v57  ;;  %v725_v61 = vand.u32 2147483648, %v713_v57  ;;  %v723_v1 = vand.u32 2147483647, %v713_v57  ;;  %vm719_vm7 = vweird.f32 %v713_v57 }
 0x360   :  { %2357 = vrcp.f32 %v734_v16  ;;  %v746_v23 = vand.u32 2147483648, %v734_v16  ;;  %vm740_vm12 = vweird.f32 %v734_v16  ;;  %v744_v24 = vand.u32 2147483647, %v734_v16 }
 0x361   :  { %v726_v11 = vor.u32 1.1754944e-38, %v725_v61  ;;  %vm724_vm9 = vcmp.eq.f32.partialorder %v723_v1, 8.507059e+37 }
 0x362   :  { %v747_v28 = vor.u32 1.1754944e-38, %v746_v23  ;;  %vm745_vm14 = vcmp.eq.f32.partialorder %v744_v24, 8.507059e+37  ;;  %v957_v23 = vld [vmem:[#allocation3 + $0xc] sm:$0x3] }
 0x365   :  { %v2356_v58 = vpop.eup %2355 }
 0x366   :  { %v2358_v6 = vpop.eup %2357  ;;  %v715_v59 = vmul.f32 %v2356_v58, %v713_v57  ;;  %vm720_vm6 = vweird.f32 %v2356_v58 }
 0x367   :  { %v736_v17 = vmul.f32 %v2358_v6, %v734_v16  ;;  %vm721_vm8 = vmor %vm719_vm7, %vm720_vm6  ;;  %vm741_vm11 = vweird.f32 %v2358_v6 }
 0x368   :  { %v716_v60 = vsub.f32 1.0, %v715_v59  ;;  %vm742_vm13 = vmor %vm740_vm12, %vm741_vm11 }
 0x369   :  { %v737_v62 = vsub.f32 1.0, %v736_v17  ;;  %v864_v17 = vld [vmem:[#allocation4 + $0xa] sm:$0x3] }
 0x36a   :  { %v717_v63 = vmul.f32 %v2356_v58, %v716_v60 }
 0x36b   :  { %v738_v5 = vmul.f32 %v2358_v6, %v737_v62 }
 0x36c   :  { %v718_v9 = vadd.f32 %v2356_v58, %v717_v63 }
 0x36d   :  { %v739_v21 = vadd.f32 %v2358_v6, %v738_v5 }
 0x36e   :  { %v722_v19 = vsel %vm721_vm8, %v2356_v58, %v718_v9 }
 0x36f   :  { %v727_v20 = vsel %vm724_vm9, %v726_v11, %v722_v19  ;;  %v743_v27 = vsel %vm742_vm13, %v2358_v6, %v739_v21  ;;  %v2885_v19 = vld [vmem:[#allocation5] sm:$0xff]  ;;  %v936_v21 = vld [vmem:[#allocation2 + $0xc] sm:$0x3] }
 0x370   :  { %v771_v22 = vmul.f32 %v769_v18, %v727_v20  ;;  %v748_v29 = vsel %vm745_vm14, %v747_v28, %v743_v27 }
 0x371   :  { %v774_v30 = vsub.f32 1.0, %v748_v29  ;;  %v776_v33 = vmul.f32 %v748_v29, %v2835_v51 }
 0x372   :  { %v772_v26 = vadd.f32 %v771_v22, %v750_v25 }
 0x374   :  { %2359 = vtanh.f32 %v772_v26 }
 0x37a   :  { %v2360_v31 = vpop.eup %2359 }
 0x37b   :  { %v775_v32 = vmul.f32 %v2360_v31, %v774_v30 }
 0x37d   :  { %v2859_v34 = vadd.f32 %v776_v33, %v775_v32  ;;  %v2892_v32 = vld [vmem:[%s3160_s7] ss:$0 sm:$0xff] }
 0x37f   :  { %778 = vst.msk [vmem:[#allocation5 + $0x8] sm:$0x3] %vm321_vm10, %v2859_v34  ;;  %2234 = vmatmul.msk.f32.vlgmr.msra.gmra.mxu1 %vm123_vm1, %v2859_v34  ;;  %2235 = vmatmul.msk.f32.vlgmr.msra.gmra.mxu2 %vm123_vm1, %v2859_v34 }
 0x380   :  { %2238 = vmatmul.msk.f32.vlgmr.msrb.gmra.mxu3 %vm123_vm1, %v2859_v34  ;;  %1105 = vmatpush.msra.mxu1 %v2670_v7  ;;  %v1126_v7 = vld [vmem:[#allocation9 + $0x18] sm:$0xff] }
 0x381   :  { %1149 = vmatpush.msra.mxu2 %v1126_v7  ;;  %v1163_v7 = vld [vmem:[#allocation9 + $0x20] sm:$0xff] }
 0x382   :  { %1106 = vmatpush.msra.mxu1 %v2679_v10 }
 0x383   :  { %1150 = vmatpush.msra.mxu2 %v1125_v45  ;;  %v1198_v45 = vld [vmem:[#allocation9 + $0x40] sm:$0xff] }
 0x384   :  { %1107 = vmatpush.msra.mxu1 %v2685_v12  ;;  %v1124_v12 = vld [vmem:[#allocation9 + $0x8] sm:$0xff] }
 0x385   :  { %1151 = vmatpush.msra.mxu2 %v1124_v12  ;;  %v2904_v12 = vld [vmem:[#allocation11] sm:$0xff] }
 0x386   :  { %1108 = vmatpush.msra.mxu1 %v2691_v14  ;;  %v1123_v14 = vld [vmem:[#allocation9] sm:$0xff] }
 0x387   :  { %1152 = vmatpush.msra.mxu2 %v1123_v14 }
 0x3fc   :  { %v799_v35 = vpop.f32.mrf.mxu1 }
 0x3fd   :  { %v823_v37 = vadd.f32 %v822_v36, %v799_v35  ;;  %v1166_v35 = vld [vmem:[#allocation9 + $0x38] sm:$0xff] }
 0x3fe   :  { %v1201_v36 = vld [vmem:[#allocation9 + $0x58] sm:$0xff]  ;;  %1184 = vmatpush.msrb.mxu3 %v1166_v35 }
 0x3ff   :  { %v2236_v38 = vmul.f32 -1.442695, %v823_v37  ;;  %v2894_v37 = vld [vmem:[#allocation11 + $0x18] sm:$0xff] }
 0x401   :  { %2361 = vpow2.f32 %v2236_v38 }
 0x402   :  { %v819_v39 = vpop.f32.mrf.mxu2 }
 0x403   :  { %v844_v41 = vadd.f32 %v843_v40, %v819_v39  ;;  %v882_v53 = vpop.f32.mrf.mxu3  ;;  %v1165_v39 = vld [vmem:[#allocation9 + $0x30] sm:$0xff] }
 0x404   :  { %v883_v4 = vadd.f32 %v2760_v48, %v882_v53  ;;  %v1200_v40 = vld [vmem:[#allocation9 + $0x50] sm:$0xff]  ;;  %1185 = vmatpush.msrb.mxu3 %v1165_v39 }
 0x405   :  { %v2237_v42 = vmul.f32 -1.442695, %v844_v41  ;;  %v2897_v41 = vld [vmem:[#allocation11 + $0x10] sm:$0xff] }
 0x406   :  { %v2969_v39 = vld [vmem:[#allocation11 + $0x50] sm:$0xff] }
 0x407   :  { %v2362_v43 = vpop.eup %2361  ;;  %2363 = vpow2.f32 %v2237_v42  ;;  %v1164_v42 = vld [vmem:[#allocation9 + $0x28] sm:$0xff] }
 0x408   :  { %v827_v44 = vadd.f32 1.0, %v2362_v43  ;;  %v1199_v43 = vld [vmem:[#allocation9 + $0x48] sm:$0xff]  ;;  %1186 = vmatpush.msrb.mxu3 %v1164_v42 }
 0x40a   :  { %2365 = vrcp.f32 %v827_v44  ;;  %v839_v51 = vand.u32 2147483648, %v827_v44  ;;  %v837_v8 = vand.u32 2147483647, %v827_v44  ;;  %vm833_vm0 = vweird.f32 %v827_v44  ;;  %1187 = vmatpush.msrb.mxu3 %v1163_v7 }
 0x40c   :  { %v840_v55 = vor.u32 1.1754944e-38, %v839_v51  ;;  %vm838_vm3 = vcmp.eq.f32.partialorder %v837_v8, 8.507059e+37 }
 0x40d   :  { %v2364_v10 = vpop.eup %2363 }
 0x40e   :  { %v848_v46 = vadd.f32 1.0, %v2364_v10 }
 0x410   :  { %v2366_v47 = vpop.eup %2365  ;;  %2367 = vrcp.f32 %v848_v46  ;;  %v860_v58 = vand.u32 2147483648, %v848_v46  ;;  %v858_v59 = vand.u32 2147483647, %v848_v46  ;;  %vm854_vm5 = vweird.f32 %v848_v46 }
 0x411   :  { %v829_v49 = vmul.f32 %v2366_v47, %v827_v44  ;;  %vm834_vm15 = vweird.f32 %v2366_v47  ;;  %v2901_v44 = vld [vmem:[#allocation11 + $0x8] sm:$0xff] }
 0x412   :  { %vm835_vm2 = vmor %vm833_vm0, %vm834_vm15  ;;  %v861_v62 = vor.u32 1.1754944e-38, %v860_v58  ;;  %vm859_vm7 = vcmp.eq.f32.partialorder %v858_v59, 8.507059e+37  ;;  %v978_v58 = vld [vmem:[#allocation4 + $0xc] sm:$0x3] }
 0x413   :  { %v830_v50 = vsub.f32 1.0, %v829_v49 }
 0x415   :  { %v831_v0 = vmul.f32 %v2366_v47, %v830_v50 }
 0x416   :  { %v2368_v52 = vpop.eup %2367 }
 0x417   :  { %v850_v54 = vmul.f32 %v2368_v52, %v848_v46  ;;  %v832_v2 = vadd.f32 %v2366_v47, %v831_v0  ;;  %vm855_vm4 = vweird.f32 %v2368_v52 }
 0x418   :  { %vm856_vm6 = vmor %vm854_vm5, %vm855_vm4 }
 0x419   :  { %v851_v13 = vsub.f32 1.0, %v850_v54  ;;  %v836_v56 = vsel %vm835_vm2, %v2366_v47, %v832_v2 }
 0x41a   :  { %v841_v57 = vsel %vm838_vm3, %v840_v55, %v836_v56 }
 0x41b   :  { %v852_v16 = vmul.f32 %v2368_v52, %v851_v13  ;;  %v885_v6 = vmul.f32 %v883_v4, %v841_v57 }
 0x41d   :  { %v853_v60 = vadd.f32 %v2368_v52, %v852_v16  ;;  %v886_v61 = vadd.f32 %v885_v6, %v864_v17 }
 0x41f   :  { %v857_v63 = vsel %vm856_vm6, %v2368_v52, %v853_v60  ;;  %2369 = vtanh.f32 %v886_v61 }
 0x420   :  { %v862_v1 = vsel %vm859_vm7, %v861_v62, %v857_v63 }
 0x421   :  { %v888_v3 = vsub.f32 1.0, %v862_v1  ;;  %v890_v11 = vmul.f32 %v862_v1, %v2859_v34 }
 0x425   :  { %v2370_v5 = vpop.eup %2369 }
 0x426   :  { %v889_v9 = vmul.f32 %v2370_v5, %v888_v3  ;;  %v2912_v3 = vld [vmem:[#allocation11 + $0x38] sm:$0xff]  ;;  %v2922_v5 = vld [vmem:[#allocation11 + $0x30] sm:$0xff] }
 0x428   :  { %v2875_v18 = vadd.f32 %v890_v11, %v889_v9  ;;  %v2927_v9 = vld [vmem:[#allocation11 + $0x28] sm:$0xff]  ;;  %v2935_v11 = vld [vmem:[#allocation11 + $0x20] sm:$0xff] }
 0x42a   :  { %892 = vst.msk [vmem:[#allocation5 + $0xa] sm:$0x3] %vm321_vm10, %v2875_v18  ;;  %2239 = vmatmul.msk.f32.vlgmr.msrb.gmra.mxu0 %vm123_vm1, %v2875_v18  ;;  %2240 = vmatmul.msk.f32.vlgmr.msrb.gmra.mxu1 %vm123_vm1, %v2875_v18 }
 0x42b   :  { %2243 = vmatmul.msk.f32.vlgmr.msrb.gmra.mxu2 %vm123_vm1, %v2875_v18  ;;  %1219 = vmatpush.msrb.mxu0 %v1201_v36 }
 0x42c   :  { %1259 = vmatpush.msrb.mxu1 %v2894_v37 }
 0x42d   :  { %1220 = vmatpush.msrb.mxu0 %v1200_v40 }
 0x42e   :  { %1260 = vmatpush.msrb.mxu1 %v2897_v41 }
 0x42f   :  { %1221 = vmatpush.msrb.mxu0 %v1199_v43 }
 0x430   :  { %1261 = vmatpush.msrb.mxu1 %v2901_v44 }
 0x431   :  { %1222 = vmatpush.msrb.mxu0 %v1198_v45 }
 0x432   :  { %1262 = vmatpush.msrb.mxu1 %v2904_v12 }
 0x433   :  { %2249 = vmatmul.msk.f32.vlgmr.msra.gmra.mxu2 %vm123_vm1, %v2885_v19 }
 0x4a7   :  { %v913_v20 = vpop.f32.mrf.mxu0  ;;  %v933_v22 = vpop.f32.mrf.mxu1 }
 0x4a8   :  { %v937_v24 = vadd.f32 %v936_v21, %v913_v20  ;;  %v958_v25 = vadd.f32 %v957_v23, %v933_v22  ;;  %v1071_v20 = vld [vmem:[#allocation3 + $0xe] sm:$0x3]  ;;  %v2953_v22 = vld [vmem:[%s3160_s7 + $0x2] ss:$0 sm:$0xff] }
 0x4aa   :  { %v2241_v26 = vmul.f32 -1.442695, %v937_v24  ;;  %v2242_v27 = vmul.f32 -1.442695, %v958_v25  ;;  %v1050_v24 = vld [vmem:[#allocation2 + $0xe] sm:$0x3] }
 0x4ac   :  { %2371 = vpow2.f32 %v2241_v26 }
 0x4ad   :  { %2373 = vpow2.f32 %v2242_v27 }
 0x4ae   :  { %v996_v28 = vpop.f32.mrf.mxu2 }
 0x4af   :  { %v997_v55 = vadd.f32 %v2760_v48, %v996_v28 }
 0x4b2   :  { %v2372_v29 = vpop.eup %2371 }
 0x4b3   :  { %v2374_v30 = vpop.eup %2373  ;;  %v941_v31 = vadd.f32 1.0, %v2372_v29 }
 0x4b4   :  { %v962_v33 = vadd.f32 1.0, %v2374_v30  ;;  %v2960_v30 = vld [vmem:[%s3160_s7 + $0x1] ss:$0 sm:$0xff] }
 0x4b5   :  { %2375 = vrcp.f32 %v941_v31  ;;  %v953_v51 = vand.u32 2147483648, %v941_v31  ;;  %v951_v8 = vand.u32 2147483647, %v941_v31  ;;  %vm947_vm9 = vweird.f32 %v941_v31 }
 0x4b6   :  { %2377 = vrcp.f32 %v962_v33  ;;  %v1154_v34 = vpop.f32.mrf.mxu2  ;;  %v974_v4 = vand.u32 2147483648, %v962_v33  ;;  %vm968_vm14 = vweird.f32 %v962_v33  ;;  %v972_v16 = vand.u32 2147483647, %v962_v33 }
 0x4b7   :  { %v1155_v38 = vadd.f32 %v2892_v32, %v1154_v34  ;;  %v954_v54 = vor.u32 1.1754944e-38, %v953_v51  ;;  %vm952_vm12 = vcmp.eq.f32.partialorder %v951_v8, 8.507059e+37 }
 0x4b8   :  { %v975_v17 = vor.u32 1.1754944e-38, %v974_v4  ;;  %vm973_vm0 = vcmp.eq.f32.partialorder %v972_v16, 8.507059e+37  ;;  %v1092_v16 = vld [vmem:[#allocation4 + $0xe] sm:$0x3] }
 0x4b9   :  { %1160 = vst.msk [vmem:[#allocation2] sm:$0xff] %vm123_vm1, %v1155_v38  ;;  %v2967_v38 = vld [vmem:[#allocation11 + $0x58] sm:$0xff] }
 0x4ba   :  { %1345 = vmatpush.msrb.mxu2 %v2967_v38 }
 0x4bb   :  { %v2376_v10 = vpop.eup %2375 }
 0x4bc   :  { %v2378_v46 = vpop.eup %2377  ;;  %v943_v14 = vmul.f32 %v2376_v10, %v941_v31  ;;  %vm948_vm8 = vweird.f32 %v2376_v10  ;;  %1346 = vmatpush.msrb.mxu2 %v2969_v39 }
 0x4bd   :  { %v964_v47 = vmul.f32 %v2378_v46, %v962_v33  ;;  %vm949_vm11 = vmor %vm947_vm9, %vm948_vm8  ;;  %vm969_vm13 = vweird.f32 %v2378_v46 }
 0x4be   :  { %v944_v49 = vsub.f32 1.0, %v943_v14  ;;  %vm970_vm15 = vmor %vm968_vm14, %vm969_vm13  ;;  %v2980_v14 = vld [vmem:[#allocation11 + $0x40] sm:$0xff] }
 0x4bf   :  { %v965_v50 = vsub.f32 1.0, %v964_v47 }
 0x4c0   :  { %v945_v0 = vmul.f32 %v2376_v10, %v944_v49 }
 0x4c1   :  { %v966_v52 = vmul.f32 %v2378_v46, %v965_v50 }
 0x4c2   :  { %v946_v53 = vadd.f32 %v2376_v10, %v945_v0 }
 0x4c3   :  { %v967_v13 = vadd.f32 %v2378_v46, %v966_v52 }
 0x4c4   :  { %v950_v2 = vsel %vm949_vm11, %v2376_v10, %v946_v53  ;;  %v2471_v53 = vld [vmem:[%s3157_s4] ss:$0 sm:$0xff] }
 0x4c5   :  { %v955_v56 = vsel %vm952_vm12, %v954_v54, %v950_v2  ;;  %v971_v59 = vsel %vm970_vm15, %v2378_v46, %v967_v13  ;;  %v2978_v46 = vld [vmem:[#allocation11 + $0x48] sm:$0xff] }
 0x4c6   :  { %v999_v57 = vmul.f32 %v997_v55, %v955_v56  ;;  %v976_v60 = vsel %vm973_vm0, %v975_v17, %v971_v59  ;;  %1347 = vmatpush.msrb.mxu2 %v2978_v46 }
 0x4c7   :  { %v1002_v61 = vsub.f32 1.0, %v976_v60  ;;  %v1004_v48 = vmul.f32 %v976_v60, %v2875_v18 }
 0x4c8   :  { %v1000_v6 = vadd.f32 %v999_v57, %v978_v58  ;;  %1348 = vmatpush.msrb.mxu2 %v2980_v14 }
 0x4ca   :  { %2379 = vtanh.f32 %v1000_v6  ;;  %1488 = vmatpush.msra.mxu2 %v2894_v37 }
 0x4cc   :  { %1489 = vmatpush.msra.mxu2 %v2897_v41 }
 0x4ce   :  { %1490 = vmatpush.msra.mxu2 %v2901_v44 }
 0x4d0   :  { %v2380_v62 = vpop.eup %2379  ;;  %1491 = vmatpush.msra.mxu2 %v2904_v12 }
 0x4d1   :  { %v1003_v63 = vmul.f32 %v2380_v62, %v1002_v61 }
 0x4d3   :  { %v2910_v1 = vadd.f32 %v1004_v48, %v1003_v63 }
 0x4d5   :  { %1006 = vst.msk [vmem:[#allocation5 + $0xc] sm:$0x3] %vm321_vm10, %v2910_v1  ;;  %2244 = vmatmul.msk.f32.vlgmr.msra.gmra.mxu3 %vm123_vm1, %v2910_v1  ;;  %2245 = vmatmul.msk.f32.vlgmr.msra.gmra.mxu0 %vm123_vm1, %v2910_v1 }
 0x4d6   :  { %2248 = vmatmul.msk.f32.vlgmr.msra.gmra.mxu1 %vm123_vm1, %v2910_v1  ;;  %1375 = vmatpush.msra.mxu3 %v2894_v37 }
 0x4d7   :  { %1279 = vmatpush.msra.mxu1 %v2912_v3  ;;  %1395 = vmatpush.msra.mxu0 %v2912_v3 }
 0x4d8   :  { %1376 = vmatpush.msra.mxu3 %v2897_v41 }
 0x4d9   :  { %1280 = vmatpush.msra.mxu1 %v2922_v5  ;;  %1396 = vmatpush.msra.mxu0 %v2922_v5 }
 0x4da   :  { %1377 = vmatpush.msra.mxu3 %v2901_v44 }
 0x4db   :  { %1281 = vmatpush.msra.mxu1 %v2927_v9  ;;  %1397 = vmatpush.msra.mxu0 %v2927_v9 }
 0x4dc   :  { %1378 = vmatpush.msra.mxu3 %v2904_v12 }
 0x4dd   :  { %2252 = vmatmul.msk.f32.vlgmr.msrb.gmra.mxu3 %vm123_vm1, %v2885_v19  ;;  %2255 = vmatmul.msk.f32.vlgmr.msrb.gmra.mxu0 %vm123_vm1, %v2885_v19 }
 0x4de   :  { %1263 = vmatmul.f32.vlgmr.msrb.gmra.mxu1 %v2579_v15  ;;  %1398 = vmatpush.msra.mxu0 %v2935_v11 }
 0x4df   :  { %1282 = vmatpush.msra.mxu1 %v2935_v11  ;;  %1508 = vmatpush.msrb.mxu3 %v2912_v3 }
 0x4e0   :  { %1571 = vmatpush.msrb.mxu0 %v2967_v38 }
 0x4e1   :  { %1509 = vmatpush.msrb.mxu3 %v2922_v5  ;;  %1458 = vmatpush.msrb.mxu1 %v2967_v38 }
 0x4e2   :  { %1572 = vmatpush.msrb.mxu0 %v2969_v39 }
 0x4e3   :  { %1510 = vmatpush.msrb.mxu3 %v2927_v9  ;;  %1459 = vmatpush.msrb.mxu1 %v2969_v39 }
 0x4e4   :  { %1573 = vmatpush.msrb.mxu0 %v2978_v46 }
 0x4e5   :  { %1511 = vmatpush.msrb.mxu3 %v2935_v11  ;;  %1460 = vmatpush.msrb.mxu1 %v2978_v46 }
 0x4e6   :  { %1283 = vmatmul.f32.vlgmr.msra.gmra.mxu1 %v2579_v15  ;;  %1574 = vmatpush.msrb.mxu0 %v2980_v14 }
 0x4e7   :  { %1461 = vmatpush.msrb.mxu1 %v2980_v14 }
 0x4e9   :  { %1601 = vmatpush.msra.mxu1 %v2894_v37 }
 0x4eb   :  { %1602 = vmatpush.msra.mxu1 %v2897_v41 }
 0x4ed   :  { %1603 = vmatpush.msra.mxu1 %v2901_v44 }
 0x4ef   :  { %1604 = vmatpush.msra.mxu1 %v2904_v12 }
 0x552   :  { %v1047_v18 = vpop.f32.mrf.mxu0 }
 0x553   :  { %v1072_v21 = vadd.f32 %v1071_v20, %v1047_v18  ;;  %v1110_v0 = vpop.f32.mrf.mxu1  ;;  %v1287_v20 = vld [vmem:[#allocation2] sm:$0x3] }
 0x554   :  { %v1111_v54 = vadd.f32 %v2471_v53, %v1110_v0  ;;  %v3021_v0 = vld [vmem:[%s3161_s8] ss:$0 sm:$0xff] }
 0x555   :  { %v2247_v19 = vmul.f32 -1.442695, %v1072_v21 }
 0x557   :  { %2381 = vpow2.f32 %v2247_v19 }
 0x558   :  { %v1027_v23 = vpop.f32.mrf.mxu3 }
 0x559   :  { %v1051_v25 = vadd.f32 %v1050_v24, %v1027_v23 }
 0x55a   :  { %v1224_v26 = vpop.f32.mrf.mxu0 }
 0x55b   :  { %v2246_v27 = vmul.f32 -1.442695, %v1051_v25  ;;  %v1225_v28 = vadd.f32 %v2953_v22, %v1224_v26 }
 0x55d   :  { %v2382_v29 = vpop.eup %2381  ;;  %2383 = vpow2.f32 %v2246_v27  ;;  %1230 = vst.msk [vmem:[#allocation4] sm:$0xff] %vm123_vm1, %v1225_v28 }
 0x55e   :  { %v2962_v31 = vadd.f32 1.0, %v2382_v29 }
 0x560   :  { %v1189_v33 = vpop.f32.mrf.mxu3  ;;  %2385 = vrcp.f32 %v2962_v31  ;;  %v1088_v56 = vand.u32 2147483648, %v2962_v31  ;;  %vm1082_vm7 = vweird.f32 %v2962_v31  ;;  %v1086_v57 = vand.u32 2147483647, %v2962_v31 }
 0x561   :  { %v1190_v34 = vadd.f32 %v2960_v30, %v1189_v33 }
 0x562   :  { %v1089_v59 = vor.u32 1.1754944e-38, %v1088_v56  ;;  %vm1087_vm9 = vcmp.eq.f32.partialorder %v1086_v57, 8.507059e+37 }
 0x563   :  { %v2384_v35 = vpop.eup %2383  ;;  %1195 = vst.msk [vmem:[#allocation3] sm:$0xff] %vm123_vm1, %v1190_v34 }
 0x564   :  { %v1055_v36 = vadd.f32 1.0, %v2384_v35 }
 0x566   :  { %2387 = vrcp.f32 %v1055_v36  ;;  %v2386_v40 = vpop.eup %2385  ;;  %v1067_v47 = vand.u32 2147483648, %v1055_v36  ;;  %v1065_v50 = vand.u32 2147483647, %v1055_v36  ;;  %vm1061_vm3 = vweird.f32 %v1055_v36 }
 0x567   :  { %v1078_v42 = vmul.f32 %v2386_v40, %v2962_v31  ;;  %vm1083_vm6 = vweird.f32 %v2386_v40 }
 0x568   :  { %v1068_v52 = vor.u32 1.1754944e-38, %v1067_v47  ;;  %vm1066_vm5 = vcmp.eq.f32.partialorder %v1065_v50, 8.507059e+37  ;;  %vm1084_vm8 = vmor %vm1082_vm7, %vm1083_vm6 }
 0x569   :  { %v1079_v45 = vsub.f32 1.0, %v1078_v42 }
 0x56a   :  { %v1308_v24 = vld [vmem:[#allocation3] sm:$0x3] }
 0x56b   :  { %v1080_v51 = vmul.f32 %v2386_v40, %v1079_v45 }
 0x56c   :  { %v2388_v43 = vpop.eup %2387 }
 0x56d   :  { %v1057_v7 = vmul.f32 %v2388_v43, %v1055_v36  ;;  %vm1062_vm2 = vweird.f32 %v2388_v43  ;;  %v1081_v55 = vadd.f32 %v2386_v40, %v1080_v51 }
 0x56e   :  { %vm1063_vm4 = vmor %vm1061_vm3, %vm1062_vm2 }
 0x56f   :  { %v1058_v10 = vsub.f32 1.0, %v1057_v7  ;;  %v1085_v6 = vsel %vm1084_vm8, %v2386_v40, %v1081_v55 }
 0x570   :  { %v1090_v17 = vsel %vm1087_vm9, %v1089_v59, %v1085_v6 }
 0x571   :  { %v1059_v49 = vmul.f32 %v2388_v43, %v1058_v10  ;;  %v1116_v60 = vsub.f32 1.0, %v1090_v17  ;;  %v1118_v62 = vmul.f32 %v1090_v17, %v2910_v1  ;;  %v1264_v1 = vpop.f32.mrf.mxu1 }
 0x572   :  { %v1288_v21 = vadd.f32 %v1287_v20, %v1264_v1 }
 0x573   :  { %v1060_v8 = vadd.f32 %v2388_v43, %v1059_v49 }
 0x574   :  { %v2257_v19 = vmul.f32 -1.442695, %v1288_v21  ;;  %v1403_v21 = vld [vmem:[#allocation2 + $0x2] sm:$0x3] }
 0x575   :  { %v1064_v2 = vsel %vm1063_vm4, %v2388_v43, %v1060_v8 }
 0x576   :  { %v1069_v13 = vsel %vm1066_vm5, %v1068_v52, %v1064_v2 }
 0x577   :  { %v1113_v4 = vmul.f32 %v1111_v54, %v1069_v13 }
 0x579   :  { %v1114_v58 = vadd.f32 %v1113_v4, %v1092_v16  ;;  %v1284_v23 = vpop.f32.mrf.mxu1  ;;  %v1329_v4 = vld [vmem:[#allocation4] sm:$0x3] }
 0x57a   :  { %v1309_v25 = vadd.f32 %v1308_v24, %v1284_v23 }
 0x57b   :  { %2389 = vtanh.f32 %v1114_v58 }
 0x57c   :  { %2391 = vpow2.f32 %v2257_v19  ;;  %v2258_v26 = vmul.f32 -1.442695, %v1309_v25 }
 0x57e   :  { %2393 = vpow2.f32 %v2258_v26 }
 0x581   :  { %v2390_v61 = vpop.eup %2389 }
 0x582   :  { %v1117_v63 = vmul.f32 %v2390_v61, %v1116_v60  ;;  %v2392_v27 = vpop.eup %2391 }
 0x584   :  { %v1119_v48 = vadd.f32 %v1118_v62, %v1117_v63  ;;  %v2394_v28 = vpop.eup %2393 }
 0x585   :  { %v1313_v29 = vadd.f32 1.0, %v2394_v28 }
 0x586   :  { %1120 = vst.msk [vmem:[#allocation5 + $0xe] sm:$0x3] %vm321_vm10, %v1119_v48  ;;  %v1424_v48 = vld [vmem:[#allocation3 + $0x2] sm:$0x3] }
 0x587   :  { %v1325_v55 = vand.u32 2147483648, %v1313_v29  ;;  %vm1319_vm15 = vweird.f32 %v1313_v29  ;;  %v1323_v56 = vand.u32 2147483647, %v1313_v29 }
 0x589   :  { %v1326_v58 = vor.u32 1.1754944e-38, %v1325_v55  ;;  %vm1324_vm2 = vcmp.eq.f32.partialorder %v1323_v56, 8.507059e+37 }
 0x58d   :  { %v1122_v18 = vld [vmem:[#allocation5 + $0x8] sm:$0xff] }
 0x58e   :  { %2250 = vmatmul.msk.f32.gmra.mxu2 %vm123_vm1, %v1122_v18  ;;  %2253 = vmatmul.msk.f32.gmra.mxu3 %vm123_vm1, %v1122_v18 }
 0x58f   :  { %2256 = vmatmul.msk.f32.gmra.mxu0 %vm123_vm1, %v1122_v18 }
 0x596   :  { %1349 = vmatmul.f32.vlgmr.msrb.gmra.mxu2 %v2579_v15  ;;  %v1292_v15 = vadd.f32 1.0, %v2392_v27 }
 0x597   :  { %1621 = vmatpush.msrb.mxu2 %v2912_v3 }
 0x598   :  { %2395 = vrcp.f32 %v1292_v15  ;;  %v1304_v51 = vand.u32 2147483648, %v1292_v15  ;;  %vm1298_vm11 = vweird.f32 %v1292_v15 }
 0x599   :  { %1622 = vmatpush.msrb.mxu2 %v2922_v5  ;;  %2397 = vrcp.f32 %v1313_v29 }
 0x59a   :  { %v1305_v52 = vor.u32 1.1754944e-38, %v1304_v51 }
 0x59b   :  { %1623 = vmatpush.msrb.mxu2 %v2927_v9 }
 0x59d   :  { %1624 = vmatpush.msrb.mxu2 %v2935_v11 }
 0x59e   :  { %v2396_v31 = vpop.eup %2395 }
 0x59f   :  { %v1294_v33 = vmul.f32 %v2396_v31, %v1292_v15  ;;  %v2398_v34 = vpop.eup %2397  ;;  %vm1299_vm10 = vweird.f32 %v2396_v31 }
 0x5a0   :  { %v1315_v42 = vmul.f32 %v2398_v34, %v1313_v29  ;;  %vm1300_vm12 = vmor %vm1298_vm11, %vm1299_vm10  ;;  %vm1320_vm14 = vweird.f32 %v2398_v34 }
 0x5a1   :  { %v1295_v36 = vsub.f32 1.0, %v1294_v33  ;;  %vm1321_vm0 = vmor %vm1319_vm15, %vm1320_vm14 }
 0x5a2   :  { %v1316_v49 = vsub.f32 1.0, %v1315_v42 }
 0x5a3   :  { %v1296_v43 = vmul.f32 %v2396_v31, %v1295_v36 }
 0x5a4   :  { %v1317_v8 = vmul.f32 %v2398_v34, %v1316_v49 }
 0x5a5   :  { %v1297_v50 = vadd.f32 %v2396_v31, %v1296_v43 }
 0x5a6   :  { %v1318_v54 = vadd.f32 %v2398_v34, %v1317_v8 }
 0x5a8   :  { %v1322_v16 = vsel %vm1321_vm0, %v2398_v34, %v1318_v54 }
 0x5a9   :  { %v1327_v6 = vsel %vm1324_vm2, %v1326_v58, %v1322_v16  ;;  %v1516_v16 = vld [vmem:[#allocation2 + $0x4] sm:$0x3] }
 0x5aa   :  { %v1356_v59 = vsub.f32 1.0, %v1327_v6  ;;  %v1358_v61 = vmul.f32 0.0, %v1327_v6  ;;  %v1537_v6 = vld [vmem:[#allocation3 + $0x4] sm:$0x3] }
 0x60c   :  { %v1227_v35 = vpop.f32.mrf.mxu0 }
 0x60d   :  { %v1228_v40 = vadd.f32 %v2953_v22, %v1227_v35  ;;  %v1302_v22 = vand.u32 2147483647, %v1292_v15 }
 0x60f   :  { %1231 = vst.msk [vmem:[#allocation4 + $0x8] sm:$0xff] %vm123_vm1, %v1228_v40  ;;  %vm1303_vm13 = vcmp.eq.f32.partialorder %v1302_v22, 8.507059e+37 }
 0x611   :  { %v1157_v7 = vpop.f32.mrf.mxu2  ;;  %v1192_v45 = vpop.f32.mrf.mxu3 }
 0x612   :  { %v1158_v10 = vadd.f32 %v2892_v32, %v1157_v7  ;;  %v1193_v47 = vadd.f32 %v2960_v30, %v1192_v45  ;;  %v1301_v32 = vsel %vm1300_vm12, %v2396_v31, %v1297_v50 }
 0x613   :  { %v1306_v2 = vsel %vm1303_vm13, %v1305_v52, %v1301_v32  ;;  %v1445_v32 = vld [vmem:[#allocation4 + $0x2] sm:$0x3] }
 0x614   :  { %1161 = vst.msk [vmem:[#allocation2 + $0x8] sm:$0xff] %vm123_vm1, %v1158_v10 }
 0x615   :  { %1196 = vst.msk [vmem:[#allocation3 + $0x8] sm:$0xff] %vm123_vm1, %v1193_v47 }
 0x619   :  { %v1350_v30 = vpop.f32.mrf.mxu2 }
 0x61a   :  { %v1351_v53 = vadd.f32 %v3021_v0, %v1350_v30 }
 0x61c   :  { %v1353_v13 = vmul.f32 %v1351_v53, %v1306_v2 }
 0x61e   :  { %v1354_v57 = vadd.f32 %v1353_v13, %v1329_v4 }
 0x620   :  { %2399 = vtanh.f32 %v1354_v57 }
 0x626   :  { %v2400_v17 = vpop.eup %2399 }
 0x627   :  { %v1357_v60 = vmul.f32 %v2400_v17, %v1356_v59 }
 0x629   :  { %v3024_v62 = vadd.f32 %v1358_v61, %v1357_v60 }
 0x62b   :  { %2259 = vmatmul.msk.f32.vlgmr.msra.gmra.mxu3 %vm123_vm1, %v3024_v62  ;;  %2260 = vmatmul.msk.f32.vlgmr.msra.gmra.mxu0 %vm123_vm1, %v3024_v62 }
 0x62c   :  { %2263 = vmatmul.msk.f32.vlgmr.msrb.gmra.mxu1 %vm123_vm1, %v3024_v62  ;;  %1684 = vmatpush.msra.mxu3 %v2967_v38 }
 0x62d   :  { %1714 = vmatpush.msra.mxu0 %v2894_v37  ;;  %1734 = vmatpush.msrb.mxu1 %v2912_v3 }
 0x62e   :  { %1685 = vmatpush.msra.mxu3 %v2969_v39 }
 0x62f   :  { %1715 = vmatpush.msra.mxu0 %v2897_v41  ;;  %1735 = vmatpush.msrb.mxu1 %v2922_v5 }
 0x630   :  { %1686 = vmatpush.msra.mxu3 %v2978_v46 }
 0x631   :  { %1716 = vmatpush.msra.mxu0 %v2901_v44  ;;  %1736 = vmatpush.msrb.mxu1 %v2927_v9 }
 0x632   :  { %1687 = vmatpush.msra.mxu3 %v2980_v14 }
 0x633   :  { %1717 = vmatpush.msra.mxu0 %v2904_v12  ;;  %1737 = vmatpush.msrb.mxu1 %v2935_v11 }
 0x6a8   :  { %v1400_v63 = vpop.f32.mrf.mxu0 }
 0x6a9   :  { %v1425_v18 = vadd.f32 %v1424_v48, %v1400_v63  ;;  %v1463_v43 = vpop.f32.mrf.mxu1 }
 0x6aa   :  { %v1464_v10 = vadd.f32 %v3021_v0, %v1463_v43 }
 0x6ab   :  { %v2262_v1 = vmul.f32 -1.442695, %v1425_v18 }
 0x6ad   :  { %2401 = vpow2.f32 %v2262_v1 }
 0x6ae   :  { %v1380_v20 = vpop.f32.mrf.mxu3 }
 0x6af   :  { %v1404_v19 = vadd.f32 %v1403_v21, %v1380_v20 }
 0x6b1   :  { %v2261_v23 = vmul.f32 -1.442695, %v1404_v19 }
 0x6b3   :  { %v2402_v24 = vpop.eup %2401  ;;  %2403 = vpow2.f32 %v2261_v23 }
 0x6b4   :  { %v1429_v25 = vadd.f32 1.0, %v2402_v24 }
 0x6b6   :  { %2405 = vrcp.f32 %v1429_v25  ;;  %v1441_v51 = vand.u32 2147483648, %v1429_v25  ;;  %vm1435_vm8 = vweird.f32 %v1429_v25  ;;  %v1439_v8 = vand.u32 2147483647, %v1429_v25 }
 0x6b8   :  { %v1442_v53 = vor.u32 1.1754944e-38, %v1441_v51  ;;  %vm1440_vm10 = vcmp.eq.f32.partialorder %v1439_v8, 8.507059e+37 }
 0x6b9   :  { %v2404_v26 = vpop.eup %2403 }
 0x6ba   :  { %v1408_v27 = vadd.f32 1.0, %v2404_v26 }
 0x6bc   :  { %2407 = vrcp.f32 %v1408_v27  ;;  %v2406_v15 = vpop.eup %2405  ;;  %v1420_v35 = vand.u32 2147483648, %v1408_v27  ;;  %v1418_v40 = vand.u32 2147483647, %v1408_v27  ;;  %vm1414_vm4 = vweird.f32 %v1408_v27 }
 0x6bd   :  { %v1431_v28 = vmul.f32 %v2406_v15, %v1429_v25  ;;  %vm1436_vm7 = vweird.f32 %v2406_v15 }
 0x6be   :  { %v1421_v45 = vor.u32 1.1754944e-38, %v1420_v35  ;;  %vm1419_vm6 = vcmp.eq.f32.partialorder %v1418_v40, 8.507059e+37  ;;  %vm1437_vm9 = vmor %vm1435_vm8, %vm1436_vm7 }
 0x6bf   :  { %v1432_v33 = vsub.f32 1.0, %v1431_v28 }
 0x6c1   :  { %v1433_v42 = vmul.f32 %v2406_v15, %v1432_v33 }
 0x6c2   :  { %v2408_v29 = vpop.eup %2407 }
 0x6c3   :  { %v1410_v31 = vmul.f32 %v2408_v29, %v1408_v27  ;;  %vm1415_vm3 = vweird.f32 %v2408_v29  ;;  %v1434_v49 = vadd.f32 %v2406_v15, %v1433_v42 }
 0x6c4   :  { %vm1416_vm5 = vmor %vm1414_vm4, %vm1415_vm3 }
 0x6c5   :  { %v1411_v34 = vsub.f32 1.0, %v1410_v31  ;;  %v1438_v30 = vsel %vm1437_vm9, %v2406_v15, %v1434_v49 }
 0x6c6   :  { %v1443_v54 = vsel %vm1440_vm10, %v1442_v53, %v1438_v30  ;;  %v1629_v30 = vld [vmem:[#allocation2 + $0x6] sm:$0x3] }
 0x6c7   :  { %v1412_v36 = vmul.f32 %v2408_v29, %v1411_v34  ;;  %v1469_v2 = vsub.f32 1.0, %v1443_v54  ;;  %v1471_v56 = vmul.f32 %v1443_v54, %v3024_v62 }
 0x6c9   :  { %v1413_v7 = vadd.f32 %v2408_v29, %v1412_v36 }
 0x6cb   :  { %v1417_v47 = vsel %vm1416_vm5, %v2408_v29, %v1413_v7  ;;  %v1558_v7 = vld [vmem:[#allocation4 + $0x4] sm:$0x3] }
 0x6cc   :  { %v1422_v50 = vsel %vm1419_vm6, %v1421_v45, %v1417_v47 }
 0x6cd   :  { %v1466_v22 = vmul.f32 %v1464_v10, %v1422_v50 }
 0x6cf   :  { %v1467_v52 = vadd.f32 %v1466_v22, %v1445_v32 }
 0x6d1   :  { %2409 = vtanh.f32 %v1467_v52 }
 0x6d7   :  { %v2410_v55 = vpop.eup %2409 }
 0x6d8   :  { %v1470_v13 = vmul.f32 %v2410_v55, %v1469_v2  ;;  %v1650_v55 = vld [vmem:[#allocation3 + $0x6] sm:$0x3] }
 0x6da   :  { %v3046_v4 = vadd.f32 %v1471_v56, %v1470_v13 }
 0x6dc   :  { %2264 = vmatmul.msk.f32.vlgmr.msra.gmra.mxu2 %vm123_vm1, %v3046_v4  ;;  %2265 = vmatmul.msk.f32.vlgmr.msrb.gmra.mxu3 %vm123_vm1, %v3046_v4 }
 0x6dd   :  { %2268 = vmatmul.msk.f32.vlgmr.msrb.gmra.mxu0 %vm123_vm1, %v3046_v4  ;;  %1797 = vmatpush.msra.mxu2 %v2967_v38 }
 0x6de   :  { %1827 = vmatpush.msrb.mxu3 %v2894_v37  ;;  %1847 = vmatpush.msrb.mxu0 %v2912_v3 }
 0x6df   :  { %1798 = vmatpush.msra.mxu2 %v2969_v39 }
 0x6e0   :  { %1828 = vmatpush.msrb.mxu3 %v2897_v41  ;;  %1848 = vmatpush.msrb.mxu0 %v2922_v5 }
 0x6e1   :  { %1799 = vmatpush.msra.mxu2 %v2978_v46 }
 0x6e2   :  { %1829 = vmatpush.msrb.mxu3 %v2901_v44  ;;  %1849 = vmatpush.msrb.mxu0 %v2927_v9 }
 0x6e3   :  { %1800 = vmatpush.msra.mxu2 %v2980_v14 }
 0x6e4   :  { %1830 = vmatpush.msrb.mxu3 %v2904_v12  ;;  %1850 = vmatpush.msrb.mxu0 %v2935_v11 }
 0x75a   :  { %v1576_v15 = vpop.f32.mrf.mxu0 }
 0x75b   :  { %v1577_v33 = vadd.f32 %v3021_v0, %v1576_v15 }
 0x75f   :  { %v1493_v57 = vpop.f32.mrf.mxu2  ;;  %v1513_v58 = vpop.f32.mrf.mxu3 }
 0x760   :  { %v1517_v59 = vadd.f32 %v1516_v16, %v1493_v57  ;;  %v1538_v17 = vadd.f32 %v1537_v6, %v1513_v58 }
 0x762   :  { %v2266_v60 = vmul.f32 -1.442695, %v1517_v59  ;;  %v2267_v61 = vmul.f32 -1.442695, %v1538_v17 }
 0x764   :  { %2411 = vpow2.f32 %v2266_v60 }
 0x765   :  { %2413 = vpow2.f32 %v2267_v61 }
 0x76a   :  { %v2412_v62 = vpop.eup %2411 }
 0x76b   :  { %v2414_v63 = vpop.eup %2413  ;;  %v1521_v48 = vadd.f32 1.0, %v2412_v62 }
 0x76c   :  { %v1542_v18 = vadd.f32 1.0, %v2414_v63 }
 0x76d   :  { %2415 = vrcp.f32 %v1521_v48  ;;  %v1533_v24 = vand.u32 2147483648, %v1521_v48  ;;  %v1531_v27 = vand.u32 2147483647, %v1521_v48  ;;  %vm1527_vm12 = vweird.f32 %v1521_v48 }
 0x76e   :  { %2417 = vrcp.f32 %v1542_v18  ;;  %v1554_v42 = vand.u32 2147483648, %v1542_v18  ;;  %vm1548_vm0 = vweird.f32 %v1542_v18  ;;  %v1552_v43 = vand.u32 2147483647, %v1542_v18 }
 0x76f   :  { %v1534_v31 = vor.u32 1.1754944e-38, %v1533_v24  ;;  %vm1532_vm14 = vcmp.eq.f32.partialorder %v1531_v27, 8.507059e+37 }
 0x770   :  { %v1555_v47 = vor.u32 1.1754944e-38, %v1554_v42  ;;  %vm1553_vm3 = vcmp.eq.f32.partialorder %v1552_v43, 8.507059e+37 }
 0x773   :  { %v2416_v1 = vpop.eup %2415 }
 0x774   :  { %v2418_v20 = vpop.eup %2417  ;;  %v1523_v21 = vmul.f32 %v2416_v1, %v1521_v48  ;;  %vm1528_vm11 = vweird.f32 %v2416_v1 }
 0x775   :  { %v1544_v19 = vmul.f32 %v2418_v20, %v1542_v18  ;;  %vm1529_vm13 = vmor %vm1527_vm12, %vm1528_vm11  ;;  %vm1549_vm15 = vweird.f32 %v2418_v20 }
 0x776   :  { %v1524_v23 = vsub.f32 1.0, %v1523_v21  ;;  %vm1550_vm2 = vmor %vm1548_vm0, %vm1549_vm15 }
 0x777   :  { %v1545_v25 = vsub.f32 1.0, %v1544_v19 }
 0x778   :  { %v1525_v26 = vmul.f32 %v2416_v1, %v1524_v23 }
 0x779   :  { %v1546_v28 = vmul.f32 %v2418_v20, %v1545_v25 }
 0x77a   :  { %v1526_v29 = vadd.f32 %v2416_v1, %v1525_v26 }
 0x77b   :  { %v1547_v36 = vadd.f32 %v2418_v20, %v1546_v28  ;;  %v1671_v28 = vld [vmem:[#allocation4 + $0x6] sm:$0x3] }
 0x77c   :  { %v1530_v34 = vsel %vm1529_vm13, %v2416_v1, %v1526_v29 }
 0x77d   :  { %v1535_v35 = vsel %vm1532_vm14, %v1534_v31, %v1530_v34  ;;  %v1551_v10 = vsel %vm1550_vm2, %v2418_v20, %v1547_v36 }
 0x77e   :  { %v1579_v40 = vmul.f32 %v1577_v33, %v1535_v35  ;;  %v1556_v49 = vsel %vm1553_vm3, %v1555_v47, %v1551_v10  ;;  %v1763_v10 = vld [vmem:[#allocation3 + $0x8] sm:$0x3] }
 0x77f   :  { %v1582_v50 = vsub.f32 1.0, %v1556_v49  ;;  %v1584_v8 = vmul.f32 %v1556_v49, %v3046_v4 }
 0x780   :  { %v1580_v45 = vadd.f32 %v1579_v40, %v1558_v7 }
 0x782   :  { %2419 = vtanh.f32 %v1580_v45 }
 0x788   :  { %v2420_v51 = vpop.eup %2419 }
 0x789   :  { %v1583_v22 = vmul.f32 %v2420_v51, %v1582_v50 }
 0x78b   :  { %v3068_v32 = vadd.f32 %v1584_v8, %v1583_v22 }
 0x78d   :  { %2269 = vmatmul.msk.f32.vlgmr.msra.gmra.mxu1 %vm123_vm1, %v3068_v32  ;;  %2270 = vmatmul.msk.f32.vlgmr.msrb.gmra.mxu2 %vm123_vm1, %v3068_v32 }
 0x78e   :  { %2273 = vmatmul.msk.f32.vlgmr.msra.gmra.mxu3 %vm123_vm1, %v3068_v32  ;;  %1910 = vmatpush.msra.mxu1 %v2967_v38 }
 0x78f   :  { %1940 = vmatpush.msrb.mxu2 %v2894_v37  ;;  %1960 = vmatpush.msra.mxu3 %v2912_v3 }
 0x790   :  { %1911 = vmatpush.msra.mxu1 %v2969_v39 }
 0x791   :  { %1941 = vmatpush.msrb.mxu2 %v2897_v41  ;;  %1961 = vmatpush.msra.mxu3 %v2922_v5 }
 0x792   :  { %1912 = vmatpush.msra.mxu1 %v2978_v46 }
 0x793   :  { %1942 = vmatpush.msrb.mxu2 %v2901_v44  ;;  %1962 = vmatpush.msra.mxu3 %v2927_v9 }
 0x794   :  { %1913 = vmatpush.msra.mxu1 %v2980_v14 }
 0x795   :  { %1943 = vmatpush.msrb.mxu2 %v2904_v12  ;;  %1963 = vmatpush.msra.mxu3 %v2935_v11 }
 0x80a   :  { %v1606_v52 = vpop.f32.mrf.mxu1 }
 0x80b   :  { %v1630_v53 = vadd.f32 %v1629_v30, %v1606_v52 }
 0x80d   :  { %v2271_v54 = vmul.f32 -1.442695, %v1630_v53 }
 0x80f   :  { %2421 = vpow2.f32 %v2271_v54 }
 0x810   :  { %v1626_v2 = vpop.f32.mrf.mxu2 }
 0x811   :  { %v1651_v13 = vadd.f32 %v1650_v55, %v1626_v2  ;;  %v1689_v48 = vpop.f32.mrf.mxu3 }
 0x812   :  { %v1690_v23 = vadd.f32 %v3021_v0, %v1689_v48 }
 0x813   :  { %v2272_v56 = vmul.f32 -1.442695, %v1651_v13 }
 0x815   :  { %v2422_v4 = vpop.eup %2421  ;;  %2423 = vpow2.f32 %v2272_v56 }
 0x816   :  { %v1634_v57 = vadd.f32 1.0, %v2422_v4 }
 0x818   :  { %2425 = vrcp.f32 %v1634_v57  ;;  %v1646_v60 = vand.u32 2147483648, %v1634_v57  ;;  %v1644_v62 = vand.u32 2147483647, %v1634_v57  ;;  %vm1640_vm5 = vweird.f32 %v1634_v57 }
 0x81a   :  { %v1647_v20 = vor.u32 1.1754944e-38, %v1646_v60  ;;  %vm1645_vm7 = vcmp.eq.f32.partialorder %v1644_v62, 8.507059e+37  ;;  %v1784_v60 = vld [vmem:[#allocation4 + $0x8] sm:$0x3] }
 0x81b   :  { %v2424_v16 = vpop.eup %2423 }
 0x81c   :  { %v1655_v58 = vadd.f32 1.0, %v2424_v16 }
 0x81e   :  { %v2426_v6 = vpop.eup %2425  ;;  %2427 = vrcp.f32 %v1655_v58  ;;  %v1667_v26 = vand.u32 2147483648, %v1655_v58  ;;  %v1665_v15 = vand.u32 2147483647, %v1655_v58  ;;  %vm1661_vm9 = vweird.f32 %v1655_v58 }
 0x81f   :  { %v1636_v59 = vmul.f32 %v2426_v6, %v1634_v57  ;;  %vm1641_vm4 = vweird.f32 %v2426_v6 }
 0x820   :  { %vm1642_vm6 = vmor %vm1640_vm5, %vm1641_vm4  ;;  %v1668_v33 = vor.u32 1.1754944e-38, %v1667_v26  ;;  %vm1666_vm11 = vcmp.eq.f32.partialorder %v1665_v15, 8.507059e+37  ;;  %v1855_v15 = vld [vmem:[#allocation2 + $0xa] sm:$0x3] }
 0x821   :  { %v1637_v17 = vsub.f32 1.0, %v1636_v59 }
 0x823   :  { %v1638_v61 = vmul.f32 %v2426_v6, %v1637_v17 }
 0x824   :  { %v2428_v63 = vpop.eup %2427 }
 0x825   :  { %v1657_v18 = vmul.f32 %v2428_v63, %v1655_v58  ;;  %v1639_v1 = vadd.f32 %v2426_v6, %v1638_v61  ;;  %vm1662_vm8 = vweird.f32 %v2428_v63 }
 0x826   :  { %vm1663_vm10 = vmor %vm1661_vm9, %vm1662_vm8 }
 0x827   :  { %v1658_v21 = vsub.f32 1.0, %v1657_v18  ;;  %v1643_v19 = vsel %vm1642_vm6, %v2426_v6, %v1639_v1 }
 0x828   :  { %v1648_v24 = vsel %vm1645_vm7, %v1647_v20, %v1643_v19 }
 0x829   :  { %v1659_v25 = vmul.f32 %v2428_v63, %v1658_v21  ;;  %v1692_v27 = vmul.f32 %v1690_v23, %v1648_v24  ;;  %v1876_v24 = vld [vmem:[#allocation3 + $0xa] sm:$0x3] }
 0x82b   :  { %v1660_v29 = vadd.f32 %v2428_v63, %v1659_v25  ;;  %v1693_v31 = vadd.f32 %v1692_v27, %v1671_v28 }
 0x82d   :  { %v1664_v34 = vsel %vm1663_vm10, %v2428_v63, %v1660_v29  ;;  %2429 = vtanh.f32 %v1693_v31 }
 0x82e   :  { %v1669_v35 = vsel %vm1666_vm11, %v1668_v33, %v1664_v34 }
 0x82f   :  { %v1695_v36 = vsub.f32 1.0, %v1669_v35  ;;  %v1697_v43 = vmul.f32 %v1669_v35, %v3068_v32 }
 0x833   :  { %v2430_v40 = vpop.eup %2429 }
 0x834   :  { %v1696_v42 = vmul.f32 %v2430_v40, %v1695_v36 }
 0x836   :  { %v3090_v7 = vadd.f32 %v1697_v43, %v1696_v42 }
 0x838   :  { %2274 = vmatmul.msk.f32.vlgmr.msra.gmra.mxu0 %vm123_vm1, %v3090_v7  ;;  %2275 = vmatmul.msk.f32.vlgmr.msrb.gmra.mxu1 %vm123_vm1, %v3090_v7 }
 0x839   :  { %2278 = vmatmul.msk.f32.vlgmr.msra.gmra.mxu2 %vm123_vm1, %v3090_v7  ;;  %2023 = vmatpush.msra.mxu0 %v2967_v38 }
 0x83a   :  { %2053 = vmatpush.msrb.mxu1 %v2894_v37  ;;  %2073 = vmatpush.msra.mxu2 %v2912_v3  ;;  %v1742_v3 = vld [vmem:[#allocation2 + $0x8] sm:$0x3] }
 0x83b   :  { %2024 = vmatpush.msra.mxu0 %v2969_v39 }
 0x83c   :  { %2054 = vmatpush.msrb.mxu1 %v2897_v41  ;;  %2074 = vmatpush.msra.mxu2 %v2922_v5 }
 0x83d   :  { %2025 = vmatpush.msra.mxu0 %v2978_v46 }
 0x83e   :  { %2055 = vmatpush.msrb.mxu1 %v2901_v44  ;;  %2075 = vmatpush.msra.mxu2 %v2927_v9 }
 0x83f   :  { %2026 = vmatpush.msra.mxu0 %v2980_v14 }
 0x840   :  { %2056 = vmatpush.msrb.mxu1 %v2904_v12  ;;  %2076 = vmatpush.msra.mxu2 %v2935_v11 }
 0x8b5   :  { %v1719_v37 = vpop.f32.mrf.mxu0  ;;  %v1739_v45 = vpop.f32.mrf.mxu1 }
 0x8b6   :  { %v1743_v47 = vadd.f32 %v1742_v3, %v1719_v37  ;;  %v1764_v41 = vadd.f32 %v1763_v10, %v1739_v45 }
 0x8b8   :  { %v2276_v49 = vmul.f32 -1.442695, %v1743_v47  ;;  %v2277_v5 = vmul.f32 -1.442695, %v1764_v41 }
 0x8ba   :  { %2431 = vpow2.f32 %v2276_v49 }
 0x8bb   :  { %2433 = vpow2.f32 %v2277_v5 }
 0x8bc   :  { %v1802_v55 = vpop.f32.mrf.mxu2 }
 0x8bd   :  { %v1803_v57 = vadd.f32 %v3021_v0, %v1802_v55  ;;  %v1968_v55 = vld [vmem:[#allocation2 + $0xc] sm:$0x3] }
 0x8c0   :  { %v2432_v50 = vpop.eup %2431 }
 0x8c1   :  { %v2434_v44 = vpop.eup %2433  ;;  %v1747_v51 = vadd.f32 1.0, %v2432_v50 }
 0x8c2   :  { %v1768_v9 = vadd.f32 1.0, %v2434_v44 }
 0x8c3   :  { %2435 = vrcp.f32 %v1747_v51  ;;  %v1759_v30 = vand.u32 2147483648, %v1747_v51  ;;  %v1757_v54 = vand.u32 2147483647, %v1747_v51  ;;  %vm1753_vm13 = vweird.f32 %v1747_v51 }
 0x8c4   :  { %2437 = vrcp.f32 %v1768_v9  ;;  %v1780_v6 = vand.u32 2147483648, %v1768_v9  ;;  %vm1774_vm2 = vweird.f32 %v1768_v9  ;;  %v1778_v17 = vand.u32 2147483647, %v1768_v9 }
 0x8c5   :  { %v1760_v56 = vor.u32 1.1754944e-38, %v1759_v30  ;;  %vm1758_vm15 = vcmp.eq.f32.partialorder %v1757_v54, 8.507059e+37 }
 0x8c6   :  { %v1781_v63 = vor.u32 1.1754944e-38, %v1780_v6  ;;  %vm1779_vm4 = vcmp.eq.f32.partialorder %v1778_v17, 8.507059e+37 }
 0x8c9   :  { %v2436_v22 = vpop.eup %2435 }
 0x8ca   :  { %v2438_v12 = vpop.eup %2437  ;;  %v1749_v8 = vmul.f32 %v2436_v22, %v1747_v51  ;;  %vm1754_vm12 = vweird.f32 %v2436_v22 }
 0x8cb   :  { %v1770_v11 = vmul.f32 %v2438_v12, %v1768_v9  ;;  %vm1755_vm14 = vmor %vm1753_vm13, %vm1754_vm12  ;;  %vm1775_vm0 = vweird.f32 %v2438_v12  ;;  %v1897_v9 = vld [vmem:[#allocation4 + $0xa] sm:$0x3] }
 0x8cc   :  { %v1750_v32 = vsub.f32 1.0, %v1749_v8  ;;  %vm1776_vm3 = vmor %vm1774_vm2, %vm1775_vm0 }
 0x8cd   :  { %v1771_v52 = vsub.f32 1.0, %v1770_v11 }
 0x8ce   :  { %v1751_v53 = vmul.f32 %v2436_v22, %v1750_v32 }
 0x8cf   :  { %v1772_v2 = vmul.f32 %v2438_v12, %v1771_v52 }
 0x8d0   :  { %v1752_v13 = vadd.f32 %v2436_v22, %v1751_v53 }
 0x8d1   :  { %v1773_v16 = vadd.f32 %v2438_v12, %v1772_v2 }
 0x8d2   :  { %v1756_v4 = vsel %vm1755_vm14, %v2436_v22, %v1752_v13 }
 0x8d3   :  { %v1761_v58 = vsel %vm1758_vm15, %v1760_v56, %v1756_v4  ;;  %v1777_v62 = vsel %vm1776_vm3, %v2438_v12, %v1773_v16  ;;  %v1989_v56 = vld [vmem:[#allocation3 + $0xc] sm:$0x3] }
 0x8d4   :  { %v1805_v59 = vmul.f32 %v1803_v57, %v1761_v58  ;;  %v1782_v48 = vsel %vm1779_vm4, %v1781_v63, %v1777_v62 }
 0x8d5   :  { %v1808_v18 = vsub.f32 1.0, %v1782_v48  ;;  %v1810_v21 = vmul.f32 %v1782_v48, %v3090_v7 }
 0x8d6   :  { %v1806_v61 = vadd.f32 %v1805_v59, %v1784_v60 }
 0x8d8   :  { %2439 = vtanh.f32 %v1806_v61 }
 0x8de   :  { %v2440_v1 = vpop.eup %2439 }
 0x8df   :  { %v1809_v20 = vmul.f32 %v2440_v1, %v1808_v18 }
 0x8e1   :  { %v1811_v19 = vadd.f32 %v1810_v21, %v1809_v20 }
 0x8e3   :  { %2279 = vmatmul.msk.f32.vlgmr.msrb.gmra.mxu3 %vm123_vm1, %v1811_v19  ;;  %2280 = vmatmul.msk.f32.vlgmr.msrb.gmra.mxu0 %vm123_vm1, %v1811_v19 }
 0x8e4   :  { %2283 = vmatmul.msk.f32.vlgmr.msra.gmra.mxu1 %vm123_vm1, %v1811_v19  ;;  %2136 = vmatpush.msrb.mxu3 %v2967_v38 }
 0x8e6   :  { %2137 = vmatpush.msrb.mxu3 %v2969_v39 }
 0x8e8   :  { %2138 = vmatpush.msrb.mxu3 %v2978_v46 }
 0x8ea   :  { %2139 = vmatpush.msrb.mxu3 %v2980_v14 }
 0x960   :  { %v1852_v23 = vpop.f32.mrf.mxu0 }
 0x961   :  { %v1877_v25 = vadd.f32 %v1876_v24, %v1852_v23  ;;  %v1915_v3 = vpop.f32.mrf.mxu1 }
 0x962   :  { %v1916_v47 = vadd.f32 %v3021_v0, %v1915_v3  ;;  %v2081_v3 = vld [vmem:[#allocation2 + $0xe] sm:$0x3] }
 0x963   :  { %v2282_v26 = vmul.f32 -1.442695, %v1877_v25 }
 0x965   :  { %2441 = vpow2.f32 %v2282_v26 }
 0x966   :  { %v1832_v27 = vpop.f32.mrf.mxu3 }
 0x967   :  { %v1856_v28 = vadd.f32 %v1855_v15, %v1832_v27 }
 0x969   :  { %v2281_v29 = vmul.f32 -1.442695, %v1856_v28 }
 0x96b   :  { %v2442_v31 = vpop.eup %2441  ;;  %2443 = vpow2.f32 %v2281_v29 }
 0x96c   :  { %v1881_v33 = vadd.f32 1.0, %v2442_v31 }
 0x96e   :  { %2445 = vrcp.f32 %v1881_v33  ;;  %v1893_v50 = vand.u32 2147483648, %v1881_v33  ;;  %vm1887_vm10 = vweird.f32 %v1881_v33  ;;  %v1891_v51 = vand.u32 2147483647, %v1881_v33 }
 0x970   :  { %v1894_v8 = vor.u32 1.1754944e-38, %v1893_v50  ;;  %vm1892_vm12 = vcmp.eq.f32.partialorder %v1891_v51, 8.507059e+37  ;;  %v2154_v50 = vld [vmem:[%s3162_s9 + $0x18] sm:$0xff] }
 0x971   :  { %v2444_v38 = vpop.eup %2443  ;;  %2174 = vmatpush.msrb.mxu0 %v2154_v50 }
 0x972   :  { %v1860_v34 = vadd.f32 1.0, %v2444_v38 }
 0x974   :  { %2447 = vrcp.f32 %v1860_v34  ;;  %v2446_v39 = vpop.eup %2445  ;;  %v1872_v42 = vand.u32 2147483648, %v1860_v34  ;;  %v1870_v7 = vand.u32 2147483647, %v1860_v34  ;;  %vm1866_vm6 = vweird.f32 %v1860_v34 }
 0x975   :  { %v1883_v46 = vmul.f32 %v2446_v39, %v1881_v33  ;;  %vm1888_vm9 = vweird.f32 %v2446_v39 }
 0x976   :  { %v1873_v10 = vor.u32 1.1754944e-38, %v1872_v42  ;;  %vm1871_vm8 = vcmp.eq.f32.partialorder %v1870_v7, 8.507059e+37  ;;  %vm1889_vm11 = vmor %vm1887_vm10, %vm1888_vm9 }
 0x977   :  { %v1884_v36 = vsub.f32 1.0, %v1883_v46 }
 0x979   :  { %v1885_v37 = vmul.f32 %v2446_v39, %v1884_v36 }
 0x97a   :  { %v2448_v35 = vpop.eup %2447 }
 0x97b   :  { %v1862_v14 = vmul.f32 %v2448_v35, %v1860_v34  ;;  %vm1867_vm5 = vweird.f32 %v2448_v35  ;;  %v1886_v49 = vadd.f32 %v2446_v39, %v1885_v37  ;;  %v2010_v34 = vld [vmem:[#allocation4 + $0xc] sm:$0x3] }
 0x97c   :  { %vm1868_vm7 = vmor %vm1866_vm6, %vm1867_vm5 }
 0x97d   :  { %v1863_v40 = vsub.f32 1.0, %v1862_v14  ;;  %v1890_v12 = vsel %vm1889_vm11, %v2446_v39, %v1886_v49 }
 0x97e   :  { %v1895_v11 = vsel %vm1892_vm12, %v1894_v8, %v1890_v12  ;;  %v2151_v12 = vld [vmem:[%s3162_s9] sm:$0xff] }
 0x97f   :  { %v1864_v43 = vmul.f32 %v2448_v35, %v1863_v40  ;;  %v1921_v32 = vsub.f32 1.0, %v1895_v11  ;;  %v1923_v53 = vmul.f32 %v1895_v11, %v1811_v19 }
 0x981   :  { %v1865_v45 = vadd.f32 %v2448_v35, %v1864_v43 }
 0x983   :  { %v1869_v41 = vsel %vm1868_vm7, %v2448_v35, %v1865_v45 }
 0x984   :  { %v1874_v5 = vsel %vm1871_vm8, %v1873_v10, %v1869_v41  ;;  %v2102_v41 = vld [vmem:[#allocation3 + $0xe] sm:$0x3] }
 0x985   :  { %v1918_v44 = vmul.f32 %v1916_v47, %v1874_v5 }
 0x987   :  { %v1919_v22 = vadd.f32 %v1918_v44, %v1897_v9  ;;  %v2153_v44 = vld [vmem:[%s3162_s9 + $0x10] sm:$0xff]  ;;  %v2152_v9 = vld [vmem:[%s3162_s9 + $0x8] sm:$0xff] }
 0x988   :  { %2175 = vmatpush.msrb.mxu0 %v2153_v44 }
 0x989   :  { %2449 = vtanh.f32 %v1919_v22 }
 0x98a   :  { %2176 = vmatpush.msrb.mxu0 %v2152_v9 }
 0x98c   :  { %2177 = vmatpush.msrb.mxu0 %v2151_v12 }
 0x98f   :  { %v2450_v52 = vpop.eup %2449 }
 0x990   :  { %v1922_v30 = vmul.f32 %v2450_v52, %v1921_v32 }
 0x992   :  { %v1924_v54 = vadd.f32 %v1923_v53, %v1922_v30 }
 0x994   :  { %2284 = vmatmul.msk.f32.vlgmr.msrb.gmra.mxu2 %vm123_vm1, %v1924_v54  ;;  %2285 = vmatmul.msk.f32.vlgmr.msra.gmra.mxu3 %vm123_vm1, %v1924_v54 }
 0x995   :  { %2288 = vmatmul.msk.f32.vlgmr.msra.gmra.mxu0 %vm123_vm1, %v1924_v54 }
 0xa12   :  { %v2028_v23 = vpop.f32.mrf.mxu0 }
 0xa13   :  { %v2029_v27 = vadd.f32 %v3021_v0, %v2028_v23 }
 0xa17   :  { %v1945_v2 = vpop.f32.mrf.mxu2  ;;  %v1965_v13 = vpop.f32.mrf.mxu3 }
 0xa18   :  { %v1969_v4 = vadd.f32 %v1968_v55, %v1945_v2  ;;  %v1990_v57 = vadd.f32 %v1989_v56, %v1965_v13 }
 0xa1a   :  { %v2286_v16 = vmul.f32 -1.442695, %v1969_v4  ;;  %v2287_v58 = vmul.f32 -1.442695, %v1990_v57 }
 0xa1c   :  { %2451 = vpow2.f32 %v2286_v16 }
 0xa1d   :  { %2453 = vpow2.f32 %v2287_v58 }
 0xa22   :  { %v2452_v6 = vpop.eup %2451 }
 0xa23   :  { %v2454_v59 = vpop.eup %2453  ;;  %v1973_v17 = vadd.f32 1.0, %v2452_v6 }
 0xa24   :  { %v1994_v60 = vadd.f32 1.0, %v2454_v59 }
 0xa25   :  { %2455 = vrcp.f32 %v1973_v17  ;;  %v1985_v1 = vand.u32 2147483648, %v1973_v17  ;;  %v1983_v19 = vand.u32 2147483647, %v1973_v17  ;;  %vm1979_vm14 = vweird.f32 %v1973_v17 }
 0xa26   :  { %2457 = vrcp.f32 %v1994_v60  ;;  %v2006_v33 = vand.u32 2147483648, %v1994_v60  ;;  %vm2000_vm3 = vweird.f32 %v1994_v60  ;;  %v2004_v38 = vand.u32 2147483647, %v1994_v60 }
 0xa27   :  { %v1986_v26 = vor.u32 1.1754944e-38, %v1985_v1  ;;  %vm1984_vm0 = vcmp.eq.f32.partialorder %v1983_v19, 8.507059e+37 }
 0xa28   :  { %v2007_v35 = vor.u32 1.1754944e-38, %v2006_v33  ;;  %vm2005_vm5 = vcmp.eq.f32.partialorder %v2004_v38, 8.507059e+37 }
 0xa2b   :  { %v2456_v61 = vpop.eup %2455 }
 0xa2c   :  { %v2458_v62 = vpop.eup %2457  ;;  %v1975_v63 = vmul.f32 %v2456_v61, %v1973_v17  ;;  %vm1980_vm13 = vweird.f32 %v2456_v61 }
 0xa2d   :  { %v1996_v48 = vmul.f32 %v2458_v62, %v1994_v60  ;;  %vm1981_vm15 = vmor %vm1979_vm14, %vm1980_vm13  ;;  %vm2001_vm2 = vweird.f32 %v2458_v62  ;;  %vm2182_vm14 = vcmask 25600  }
 0xa2e   :  { %v1976_v18 = vsub.f32 1.0, %v1975_v63  ;;  %vm2002_vm4 = vmor %vm2000_vm3, %vm2001_vm2  ;;  %v2123_v63 = vld [vmem:[#allocation4 + $0xe] sm:$0x3] }
 0xa2f   :  { %v1997_v20 = vsub.f32 1.0, %v1996_v48 }
 0xa30   :  { %v1977_v21 = vmul.f32 %v2456_v61, %v1976_v18 }
 0xa31   :  { %v1998_v24 = vmul.f32 %v2458_v62, %v1997_v20 }
 0xa32   :  { %v1978_v25 = vadd.f32 %v2456_v61, %v1977_v21 }
 0xa33   :  { %v1999_v29 = vadd.f32 %v2458_v62, %v1998_v24 }
 0xa34   :  { %v1982_v15 = vsel %vm1981_vm15, %v2456_v61, %v1978_v25 }
 0xa35   :  { %v1987_v28 = vsel %vm1984_vm0, %v1986_v26, %v1982_v15  ;;  %v2003_v46 = vsel %vm2002_vm4, %v2458_v62, %v1999_v29  ;;  %v2310_v26 = vld [vmem:[%s3163_s10] ss:$0 sm:$0xff] }
 0xa36   :  { %v2031_v31 = vmul.f32 %v2029_v27, %v1987_v28  ;;  %v2008_v14 = vsel %vm2005_vm5, %v2007_v35, %v2003_v46 }
 0xa37   :  { %v2034_v36 = vsub.f32 1.0, %v2008_v14  ;;  %v2036_v43 = vmul.f32 %v2008_v14, %v1924_v54 }
 0xa38   :  { %v2032_v39 = vadd.f32 %v2031_v31, %v2010_v34 }
 0xa3a   :  { %2459 = vtanh.f32 %v2032_v39 }
 0xa40   :  { %v2460_v40 = vpop.eup %2459 }
 0xa41   :  { %v2035_v42 = vmul.f32 %v2460_v40, %v2034_v36 }
 0xa43   :  { %v3124_v7 = vadd.f32 %v2036_v43, %v2035_v42 }
 0xa45   :  { %2289 = vmatmul.msk.f32.vlgmr.msrb.gmra.mxu1 %vm123_vm1, %v3124_v7  ;;  %2290 = vmatmul.msk.f32.vlgmr.msra.gmra.mxu2 %vm123_vm1, %v3124_v7 }
 0xa46   :  { %2293 = vmatmul.msk.f32.vlgmr.msrb.gmra.mxu3 %vm123_vm1, %v3124_v7 }
 0xac2   :  { %v2058_v37 = vpop.f32.mrf.mxu1 }
 0xac3   :  { %v2082_v45 = vadd.f32 %v2081_v3, %v2058_v37 }
 0xac5   :  { %v2291_v10 = vmul.f32 -1.442695, %v2082_v45 }
 0xac7   :  { %2461 = vpow2.f32 %v2291_v10 }
 0xac8   :  { %v2078_v47 = vpop.f32.mrf.mxu2 }
 0xac9   :  { %v2103_v49 = vadd.f32 %v2102_v41, %v2078_v47  ;;  %v2141_v13 = vpop.f32.mrf.mxu3 }
 0xaca   :  { %v2142_v6 = vadd.f32 %v3021_v0, %v2141_v13 }
 0xacb   :  { %v2292_v5 = vmul.f32 -1.442695, %v2103_v49 }
 0xacd   :  { %v2462_v51 = vpop.eup %2461  ;;  %2463 = vpow2.f32 %v2292_v5 }
 0xace   :  { %v2086_v22 = vadd.f32 1.0, %v2462_v51 }
 0xad0   :  { %2465 = vrcp.f32 %v2086_v22  ;;  %v2098_v53 = vand.u32 2147483648, %v2086_v22  ;;  %v2096_v2 = vand.u32 2147483647, %v2086_v22  ;;  %vm2092_vm7 = vweird.f32 %v2086_v22 }
 0xad2   :  { %v2099_v57 = vor.u32 1.1754944e-38, %v2098_v53  ;;  %vm2097_vm9 = vcmp.eq.f32.partialorder %v2096_v2, 8.507059e+37 }
 0xad3   :  { %v2464_v8 = vpop.eup %2463 }
 0xad4   :  { %v2107_v11 = vadd.f32 1.0, %v2464_v8 }
 0xad6   :  { %v2466_v32 = vpop.eup %2465  ;;  %2467 = vrcp.f32 %v2107_v11  ;;  %v2119_v60 = vand.u32 2147483648, %v2107_v11  ;;  %v2117_v62 = vand.u32 2147483647, %v2107_v11  ;;  %vm2113_vm11 = vweird.f32 %v2107_v11 }
 0xad7   :  { %v2088_v52 = vmul.f32 %v2466_v32, %v2086_v22  ;;  %vm2093_vm6 = vweird.f32 %v2466_v32 }
 0xad8   :  { %vm2094_vm8 = vmor %vm2092_vm7, %vm2093_vm6  ;;  %v2120_v1 = vor.u32 1.1754944e-38, %v2119_v60  ;;  %vm2118_vm13 = vcmp.eq.f32.partialorder %v2117_v62, 8.507059e+37 }
 0xad9   :  { %v2089_v30 = vsub.f32 1.0, %v2088_v52 }
 0xadb   :  { %v2090_v54 = vmul.f32 %v2466_v32, %v2089_v30 }
 0xadc   :  { %v2468_v55 = vpop.eup %2467 }
 0xadd   :  { %v2109_v56 = vmul.f32 %v2468_v55, %v2107_v11  ;;  %v2091_v4 = vadd.f32 %v2466_v32, %v2090_v54  ;;  %vm2114_vm10 = vweird.f32 %v2468_v55 }
 0xade   :  { %vm2115_vm12 = vmor %vm2113_vm11, %vm2114_vm10 }
 0xadf   :  { %v2110_v16 = vsub.f32 1.0, %v2109_v56  ;;  %v2095_v58 = vsel %vm2094_vm8, %v2466_v32, %v2091_v4 }
 0xae0   :  { %v2100_v59 = vsel %vm2097_vm9, %v2099_v57, %v2095_v58 }
 0xae1   :  { %v2111_v17 = vmul.f32 %v2468_v55, %v2110_v16  ;;  %v2144_v61 = vmul.f32 %v2142_v6, %v2100_v59 }
 0xae3   :  { %v2112_v48 = vadd.f32 %v2468_v55, %v2111_v17  ;;  %v2145_v18 = vadd.f32 %v2144_v61, %v2123_v63 }
 0xae5   :  { %v2116_v20 = vsel %vm2115_vm12, %v2468_v55, %v2112_v48  ;;  %2469 = vtanh.f32 %v2145_v18 }
 0xae6   :  { %v2121_v21 = vsel %vm2118_vm13, %v2120_v1, %v2116_v20 }
 0xae7   :  { %v2147_v19 = vsub.f32 1.0, %v2121_v21  ;;  %v2149_v0 = vmul.f32 %v2121_v21, %v3124_v7 }
 0xaeb   :  { %v2470_v23 = vpop.eup %2469 }
 0xaec   :  { %v2148_v24 = vmul.f32 %v2470_v23, %v2147_v19 }
 0xaee   :  { %v2150_v25 = vadd.f32 %v2149_v0, %v2148_v24 }
 0xaf0   :  { %2294 = vmatmul.msk.f32.vlgmr.msrb.gmra.mxu0 %vm123_vm1, %v2150_v25 }
 0xb6d   :  { %v2179_v27 = vpop.f32.mrf.mxu0 }
 0xb6e   :  { %v2180_v15 = vadd.f32 %v2310_v26, %v2179_v27 }
 0xb70   :  { %2183 = vst.msk [vmem:[#allocation12] sm:$0x3] %vm2182_vm14, %v2180_v15 }
 0xb71   :  { %2194 = dma.vmem_to_hbm [thread:$0]  %s2190_s0, 32, %s2192_s23, [#allocation8]  }
 0xb72   :  { %2572 = dma.done.wait [#allocation8], 32  }
 0xb73   :  { %2573 = vsyncadd [#allocation8], 4294967264 }
 0xb74   :  { %2199 = vsyncpa [#allocation7], 1 }
 0xb75   :  { %2200 = vsyncpa [#allocation10], 1 }
 0xb76   :  { %2201 = vsyncpa [#allocation8], 1 }

</bundles_post_ra>
